<compile_context>
chip_gen: v7x
topology: tpu7x:2x2x1
jax: 0.10.0
libtpu: 0.0.40
codegen_flags: <defaults>
</compile_context>

<pallas_src>
import functools

import jax
import jax.numpy as jnp
from jax import lax
from jax.experimental import pallas as pl
from jax.experimental.pallas import tpu as pltpu

_LRELU_SLOPE = 0.3               # nn.LeakyReLU(negative_slope=0.3) in the spec
_BN_EPS = 1e-5                   # nn.BatchNorm2d default eps
_VMEM_LIMIT = 48 * 1024 * 1024   # headroom even on v7x's 64 MiB / TC VMEM


def _round_up(n, m):
    return ((n + m - 1) // m) * m


# ---------------------------------------------------------------------------
# Kernel 1: conv1 (3x3, pad 1) as ONE deep-K matmul + per-item BN moments.
# ---------------------------------------------------------------------------
def _conv1_stats_kernel(xp_ref, w1_ref, h_ref, mean_ref, m2_ref):
    # xp_ref  : (1, H+2, W+2, Cip) bf16, spatially zero-padded, channel-padded x
    # w1_ref  : (9*Cip, Cp)        bf16, conv1 weights, taps stacked along K
    # h_ref   : (1, H, W, Cp)      bf16, conv1 output (bias-free; BN cancels it)
    # mean_ref: (1, 1, Cp)         f32, per-item channel mean
    # m2_ref  : (1, 1, Cp)         f32, per-item centered second moment
    _, H, W, Cp = h_ref.shape
    Cip = xp_ref.shape[-1]

    # VMEM im2col: K-concatenate the 9 shifted views -> a single K=9*Cip dot
    # instead of nine K=Cip dots (review: deeper MXU contractions).
    xfull = xp_ref[0]                                        # (H+2, W+2, Cip)
    patch = jnp.concatenate(
        [xfull[dy:dy + H, dx:dx + W, :] for dy in range(3) for dx in range(3)],
        axis=-1).reshape(H * W, 9 * Cip)
    acc = jnp.dot(patch, w1_ref[...], preferred_element_type=jnp.float32)

    hb = acc.astype(h_ref.dtype)
    h_ref[0] = hb.reshape(H, W, Cp)

    # Per-item BatchNorm moments, computed from the *rounded* activation that
    # kernel 2 will normalize (removes the f32-vs-bf16 stats mismatch), with a
    # centered second moment (no E[x^2] - E[x]^2 catastrophic cancellation).
    hf = hb.astype(jnp.float32)
    mean_i = jnp.sum(hf, axis=0, keepdims=True) * (1.0 / (H * W))
    mean_ref[0] = mean_i
    m2_ref[0] = jnp.sum((hf - mean_i) ** 2, axis=0, keepdims=True)


# ---------------------------------------------------------------------------
# Kernel 2: BN finalize + affine + LeakyReLU -> conv2 (3x3) + 1x1 residual in
#           ONE stacked-K matmul + folded biases + fused 2x2 max-pool.
# ---------------------------------------------------------------------------
def _bn_conv2_add_pool_kernel(h_ref, x_ref, mean_ref, m2_ref, gamma_ref,
                              beta_ref, w2_ref, b2_ref, o_ref, patch_ref):
    # h_ref    : (1, H, W, Cp)        bf16, conv1 output
    # x_ref    : (1, H, W, Cip)       bf16, channel-padded input (residual path)
    # mean_ref : (B, 1, Cp)           f32, per-item channel means
    # m2_ref   : (B, 1, Cp)           f32, per-item centered second moments
    # gamma/beta: (1, Cp)             f32, bn2 affine parameters
    # w2_ref   : (9*Cp + Cip, Cp)     bf16, conv2 taps stacked along K, with the
    #                                 1x1 downsample weight as the last Cip rows
    # b2_ref   : (1, Cp)              f32, conv2 bias + downsample bias
    # o_ref    : (1, H//2, W//2, Cp)  bf16, block output (after max-pool)
    # patch_ref: (H*W, 9*Cp + Cip)    bf16 VMEM im2col scratch
    _, H, W, Cp = h_ref.shape
    Cip = x_ref.shape[-1]
    nb = mean_ref.shape[0]
    n_i = float(H * W)

    # -- BatchNorm2d finalize (train-mode batch stats) folded into this kernel:
    #    stable parallel merge of per-item moments (Chan), biased variance.
    mean_b = mean_ref[...]                                   # (B, 1, Cp)
    mean = jnp.sum(mean_b, axis=0) * (1.0 / nb)              # (1, Cp)
    m2 = (jnp.sum(m2_ref[...], axis=0)
          + n_i * jnp.sum((mean_b - mean) ** 2, axis=0))
    var = m2 * (1.0 / (n_i * nb))                            # >= 0 by construction
    s = gamma_ref[...] * lax.rsqrt(var + _BN_EPS)            # (1, Cp)
    t = beta_ref[...] - mean * s

    # -- BN affine + LeakyReLU (f32 math, bf16 matmul operand).
    g = h_ref[0].reshape(H * W, Cp).astype(jnp.float32) * s + t
    g = jnp.where(g >= 0, g, _LRELU_SLOPE * g)
    g = g.astype(jnp.bfloat16).reshape(H, W, Cp)

    # -- VMEM im2col: write the 9 shifted copies of g plus the residual input
    #    into 128-lane-aligned bands of the patch scratch.  Row shifts are
    #    leading-dim concats, column shifts are value-level sublane concats,
    #    every band is fully overwritten each step (no scratch zeroing, no
    #    misaligned ref stores).
    zrow = jnp.zeros((1, W, Cp), jnp.bfloat16)
    zcol = jnp.zeros((H, 1, Cp), jnp.bfloat16)
    for dy in range(3):
        if dy == 0:
            rows = jnp.concatenate([zrow, g[:H - 1]], axis=0)
        elif dy == 1:
            rows = g
        else:
            rows = jnp.concatenate([g[1:], zrow], axis=0)
        base = 3 * dy * Cp
        patch_ref[:, base:base + Cp] = (
            jnp.concatenate([zcol, rows[:, :W - 1]], axis=1).reshape(H * W, Cp))
        patch_ref[:, base + Cp:base + 2 * Cp] = rows.reshape(H * W, Cp)
        patch_ref[:, base + 2 * Cp:base + 3 * Cp] = (
            jnp.concatenate([rows[:, 1:], zcol], axis=1).reshape(H * W, Cp))
    patch_ref[:, 9 * Cp:] = x_ref[0].reshape(H * W, Cip)

    # -- One stacked-K MXU matmul: conv2 (9 taps) + 1x1 residual, K = 9*Cp+Cip.
    acc = jnp.dot(patch_ref[...], w2_ref[...],
                  preferred_element_type=jnp.float32) + b2_ref[...]

    # -- Fused MaxPool2d(2, 2): row pairs on the untiled leading axis, column
    #    pairs via a tiny trailing (2, Cp) reduce; output stays lane-dense.
    y = acc.reshape(H // 2, 2, W, Cp)
    y = jnp.max(y, axis=1)                                   # (H//2, W, Cp)
    y = y.reshape(H // 2, W // 2, 2, Cp)
    y = jnp.max(y, axis=2)                                   # (H//2, W//2, Cp)
    o_ref[0] = y.astype(o_ref.dtype)


# ---------------------------------------------------------------------------
# Wrapper
# ---------------------------------------------------------------------------
def residual_block2d_forward(x_nchw, pk, *, cout):
    """Forward pass of Residual_block2D (training-mode BatchNorm statistics)."""
    B, cin, H, W = x_nchw.shape
    Cp = pk["w1"].shape[1]
    Cip = pk["w1"].shape[0] // 9
    Hp, Wp = H + 2, W + 2

    # NCHW -> NHWC (one-time layout move), channel pad to Cip, spatial zero pad.
    x = jnp.transpose(x_nchw, (0, 2, 3, 1))
    xc = jnp.pad(x, ((0, 0), (0, 0), (0, 0), (0, Cip - cin))).astype(jnp.bfloat16)
    xp = jnp.pad(xc, ((0, 0), (1, 1), (1, 1), (0, 0)))

    cparams = pltpu.CompilerParams(
        dimension_semantics=("parallel",), vmem_limit_bytes=_VMEM_LIMIT)

    # ---- kernel 1: conv1 (single deep-K matmul) + per-item BN moments -------
    h, mean_b, m2_b = pl.pallas_call(
        _conv1_stats_kernel,
        out_shape=(jax.ShapeDtypeStruct((B, H, W, Cp), jnp.bfloat16),
                   jax.ShapeDtypeStruct((B, 1, Cp), jnp.float32),
                   jax.ShapeDtypeStruct((B, 1, Cp), jnp.float32)),
        grid=(B,),
        in_specs=[pl.BlockSpec((1, Hp, Wp, Cip), lambda b: (b, 0, 0, 0)),
                  pl.BlockSpec((9 * Cip, Cp), lambda b: (0, 0))],
        out_specs=(pl.BlockSpec((1, H, W, Cp), lambda b: (b, 0, 0, 0)),
                   pl.BlockSpec((1, 1, Cp), lambda b: (b, 0, 0)),
                   pl.BlockSpec((1, 1, Cp), lambda b: (b, 0, 0))),
        compiler_params=cparams,
    )(xp, pk["w1"])

    # ---- kernel 2: BN finalize + lrelu + conv2 + residual + max-pool --------
    # (BN mean/var/affine are computed inside the kernel from the per-item
    #  moments -- no XLA glue dispatch between the two pallas_calls.)
    out = pl.pallas_call(
        _bn_conv2_add_pool_kernel,
        out_shape=jax.ShapeDtypeStruct((B, H // 2, W // 2, Cp), jnp.bfloat16),
        grid=(B,),
        in_specs=[pl.BlockSpec((1, H, W, Cp), lambda b: (b, 0, 0, 0)),
                  pl.BlockSpec((1, H, W, Cip), lambda b: (b, 0, 0, 0)),
                  pl.BlockSpec((B, 1, Cp), lambda b: (0, 0, 0)),
                  pl.BlockSpec((B, 1, Cp), lambda b: (0, 0, 0)),
                  pl.BlockSpec((1, Cp), lambda b: (0, 0)),
                  pl.BlockSpec((1, Cp), lambda b: (0, 0)),
                  pl.BlockSpec((9 * Cp + Cip, Cp), lambda b: (0, 0)),
                  pl.BlockSpec((1, Cp), lambda b: (0, 0))],
        out_specs=pl.BlockSpec((1, H // 2, W // 2, Cp), lambda b: (b, 0, 0, 0)),
        scratch_shapes=[pltpu.VMEM((H * W, 9 * Cp + Cip), jnp.bfloat16)],
        compiler_params=cparams,
    )(h, xc, mean_b, m2_b, pk["gamma"], pk["beta"], pk["w2"], pk["b2"])

    # Drop channel padding, cast back to f32, NHWC -> NCHW like the torch module.
    return jnp.transpose(out[..., :cout].astype(jnp.float32), (0, 3, 1, 2))


# ---------------------------------------------------------------------------
# Deterministic synthetic parameters (shapes follow the PyTorch __init__)
# ---------------------------------------------------------------------------
def init_params(key, cin, cout):
    ks = jax.random.split(key, 8)

    def nrm(k, shape, scale):
        return scale * jax.random.normal(k, shape, jnp.float32)

    p = {
        "conv1_w": nrm(ks[0], (cout, cin, 3, 3), 1.0 / (3.0 * cin ** 0.5)),
        "conv1_b": nrm(ks[1], (cout,), 0.1),
        "bn2_gamma": 1.0 + 0.1 * jax.random.normal(ks[2], (cout,), jnp.float32),
        "bn2_beta": 0.1 * jax.random.normal(ks[3], (cout,), jnp.float32),
        "conv2_w": nrm(ks[4], (cout, cout, 3, 3), 1.0 / (3.0 * cout ** 0.5)),
        "conv2_b": nrm(ks[5], (cout,), 0.1),
    }
    if cin != cout:  # downsample branch of the torch module
        p["convd_w"] = nrm(ks[6], (cout, cin, 1, 1), 1.0 / (cin ** 0.5))
        p["convd_b"] = nrm(ks[7], (cout,), 0.1)
    return p


def pack_params(p, cin, cout):
    """Pad / transpose torch-layout params into the lane-dense, K-stacked layout."""
    Cip = max(8, _round_up(cin, 8))        # input-channel pad (sublane friendly)
    Cp = max(128, _round_up(cout, 128))    # output-channel pad (lane dense)

    def tap(w_oihw, dy, dx, k_pad):
        w = jnp.transpose(w_oihw[:, :, dy, dx], (1, 0))      # (K=cin, N=cout)
        return jnp.pad(w, ((0, k_pad - w.shape[0]), (0, Cp - w.shape[1])))

    # conv1: one K-stacked (9*Cip, Cp) weight -> single deep matmul in kernel 1.
    # conv1 bias is intentionally dropped: a per-channel constant cancels
    # exactly under train-mode BatchNorm's mean subtraction.
    w1 = jnp.concatenate([tap(p["conv1_w"], dy, dx, Cip)
                          for dy in range(3) for dx in range(3)], axis=0)

    if "convd_w" in p:                     # downsample branch
        wd = p["convd_w"][:, :, 0, 0].T                       # (cin, cout)
        bd = p["convd_b"]
    else:                                  # identity shortcut
        wd = jnp.eye(cin, dtype=jnp.float32)
        bd = jnp.zeros((cout,), jnp.float32)
    wdp = jnp.pad(wd, ((0, Cip - cin), (0, Cp - cout)))

    # conv2 + residual: one K-stacked (9*Cp + Cip, Cp) weight; the 1x1
    # residual path rides the same MXU matmul as the nine conv2 taps.
    w2 = jnp.concatenate([tap(p["conv2_w"], dy, dx, Cp)
                          for dy in range(3) for dx in range(3)] + [wdp], axis=0)

    return {
        "w1": w1.astype(jnp.bfloat16),
        "w2": w2.astype(jnp.bfloat16),
        "b2": jnp.pad(p["conv2_b"] + bd, (0, Cp - cout)).reshape(1, Cp),
        "gamma": jnp.pad(p["bn2_gamma"], (0, Cp - cout)).reshape(1, Cp),
        "beta": jnp.pad(p["bn2_beta"], (0, Cp - cout)).reshape(1, Cp),
    }


# ---------------------------------------------------------------------------
# Pure-XLA f32 replica of the torch forward (correctness cross-check only)
# ---------------------------------------------------------------------------
def reference_forward(x, p, cin, cout):
    dn = ("NCHW", "OIHW", "NCHW")
    out = lax.conv_general_dilated(x, p["conv1_w"], (1, 1),
                                   [(1, 1), (1, 1)], dimension_numbers=dn)
    out = out + p["conv1_b"][None, :, None, None]
    mean = jnp.mean(out, axis=(0, 2, 3), keepdims=True)
    var = jnp.mean((out - mean) ** 2, axis=(0, 2, 3), keepdims=True)  # biased
    out = (out - mean) / jnp.sqrt(var + _BN_EPS)
    out = (out * p["bn2_gamma"][None, :, None, None]
           + p["bn2_beta"][None, :, None, None])
    out = jnp.where(out >= 0, out, _LRELU_SLOPE * out)
    out = lax.conv_general_dilated(out, p["conv2_w"], (1, 1),
                                   [(1, 1), (1, 1)], dimension_numbers=dn)
    out = out + p["conv2_b"][None, :, None, None]
    if cin != cout:
        idn = lax.conv_general_dilated(x, p["convd_w"], (1, 1),
                                       [(0, 0), (0, 0)], dimension_numbers=dn)
        idn = idn + p["convd_b"][None, :, None, None]
    else:
        idn = x
    out = out + idn
    B, C, H, W = out.shape
    out = out.reshape(B, C, H // 2, 2, W // 2, 2)
    return jnp.max(jnp.max(out, axis=5), axis=3)


# ---------------------------------------------------------------------------
if __name__ == "__main__":
    B, cin, H, W = 2, 4, 16, 16          # nb_filts = [4, 16] -> downsample path
    cout = 16

    key = jax.random.PRNGKey(0)
    kx, kp = jax.random.split(key)
    x = jax.random.normal(kx, (B, cin, H, W), jnp.float32)

    torch_params = init_params(kp, cin, cout)
    packed = pack_params(torch_params, cin, cout)

    fwd = jax.jit(functools.partial(residual_block2d_forward, cout=cout))
    out = jax.block_until_ready(fwd(x, packed))

    assert out.shape == (B, cout, H // 2, W // 2), out.shape
    assert bool(jnp.all(jnp.isfinite(out)))

    # Cross-check against the f32 XLA replica of the torch forward (the kernel
    # uses bf16 matmul operands and a bf16 output, hence the loose tolerance).
    ref = reference_forward(x, torch_params, cin, cout)
    max_err = float(jnp.max(jnp.abs(out - ref)))
    assert max_err < 1e-1, f"max abs err vs reference: {max_err}"

    print("KERNEL_OK")
</pallas_src>

<mosaic_0001>
module attributes {stable_mosaic.version = 11 : i64} {
  func.func @_conv1_stats_kernel(%arg0: i32, %arg1: memref<1x18x18x8xbf16, #tpu.memory_space<vmem>>, %arg2: memref<72x128xbf16, #tpu.memory_space<vmem>>, %arg3: memref<1x16x16x128xbf16, #tpu.memory_space<vmem>>, %arg4: memref<1x1x128xf32, #tpu.memory_space<vmem>>, %arg5: memref<1x1x128xf32, #tpu.memory_space<vmem>>) attributes {dimension_semantics = [#tpu.dimension_semantics<parallel>], iteration_bounds = array<i64: 2>, scalar_prefetch = 0 : i64, scratch_operands = 0 : i64, tpu.core_type = #tpu.core_type<tc>, window_params = [{transform_indices = @transform_0, window_bounds = array<i64: 1, 18, 18, 8>}, {pipeline_mode = #tpu.pipeline_mode<synchronous>, transform_indices = @transform_1, window_bounds = array<i64: 72, 128>}, {transform_indices = @transform_2, window_bounds = array<i64: 1, 16, 16, 128>}, {transform_indices = @transform_3, window_bounds = array<i64: 1, 1, 128>}, {transform_indices = @transform_4, window_bounds = array<i64: 1, 1, 128>}]} {
    %c0 = arith.constant 0 : index
    %c0_0 = arith.constant 0 : index
    %c0_1 = arith.constant 0 : index
    %c0_2 = arith.constant 0 : index
    %0 = vector.load %arg1[%c0, %c0_0, %c0_1, %c0_2] : memref<1x18x18x8xbf16, #tpu.memory_space<vmem>>, vector<1x18x18x8xbf16>
    %1 = vector.shape_cast %0 : vector<1x18x18x8xbf16> to vector<18x18x8xbf16>
    %2 = vector.extract_strided_slice %1 {offsets = [0, 0, 0], sizes = [16, 16, 8], strides = [1, 1, 1]} : vector<18x18x8xbf16> to vector<16x16x8xbf16>
    %3 = vector.extract_strided_slice %1 {offsets = [0, 1, 0], sizes = [16, 16, 8], strides = [1, 1, 1]} : vector<18x18x8xbf16> to vector<16x16x8xbf16>
    %4 = vector.extract_strided_slice %1 {offsets = [0, 2, 0], sizes = [16, 16, 8], strides = [1, 1, 1]} : vector<18x18x8xbf16> to vector<16x16x8xbf16>
    %5 = vector.extract_strided_slice %1 {offsets = [1, 0, 0], sizes = [16, 16, 8], strides = [1, 1, 1]} : vector<18x18x8xbf16> to vector<16x16x8xbf16>
    %6 = vector.extract_strided_slice %1 {offsets = [1, 1, 0], sizes = [16, 16, 8], strides = [1, 1, 1]} : vector<18x18x8xbf16> to vector<16x16x8xbf16>
    %7 = vector.extract_strided_slice %1 {offsets = [1, 2, 0], sizes = [16, 16, 8], strides = [1, 1, 1]} : vector<18x18x8xbf16> to vector<16x16x8xbf16>
    %8 = vector.extract_strided_slice %1 {offsets = [2, 0, 0], sizes = [16, 16, 8], strides = [1, 1, 1]} : vector<18x18x8xbf16> to vector<16x16x8xbf16>
    %9 = vector.extract_strided_slice %1 {offsets = [2, 1, 0], sizes = [16, 16, 8], strides = [1, 1, 1]} : vector<18x18x8xbf16> to vector<16x16x8xbf16>
    %10 = vector.extract_strided_slice %1 {offsets = [2, 2, 0], sizes = [16, 16, 8], strides = [1, 1, 1]} : vector<18x18x8xbf16> to vector<16x16x8xbf16>
    %11 = tpu.concatenate %2, %3, %4, %5, %6, %7, %8, %9, %10 in 2 : vector<16x16x8xbf16>, vector<16x16x8xbf16>, vector<16x16x8xbf16>, vector<16x16x8xbf16>, vector<16x16x8xbf16>, vector<16x16x8xbf16>, vector<16x16x8xbf16>, vector<16x16x8xbf16>, vector<16x16x8xbf16> -> vector<16x16x72xbf16>
    %12 = vector.shape_cast %11 : vector<16x16x72xbf16> to vector<256x72xbf16>
    %c0_3 = arith.constant 0 : index
    %c0_4 = arith.constant 0 : index
    %13 = vector.load %arg2[%c0_3, %c0_4] : memref<72x128xbf16, #tpu.memory_space<vmem>>, vector<72x128xbf16>
    %cst = arith.constant dense<0.000000e+00> : vector<256x128xf32>
    %14 = tpu.matmul %12, %13, %cst {dimension_numbers = #tpu.dot_dimension_numbers<[1], [0], [0], [1], [0, 0, 1, 1], [], []>} : vector<256x72xbf16>, vector<72x128xbf16>, vector<256x128xf32> -> vector<256x128xf32>
    %15 = arith.truncf %14 : vector<256x128xf32> to vector<256x128xbf16>
    %16 = vector.shape_cast %15 : vector<256x128xbf16> to vector<16x16x128xbf16>
    %c0_5 = arith.constant 0 : index
    %c0_6 = arith.constant 0 : index
    %c0_7 = arith.constant 0 : index
    %c0_8 = arith.constant 0 : index
    %17 = vector.load %arg3[%c0_5, %c0_6, %c0_7, %c0_8] : memref<1x16x16x128xbf16, #tpu.memory_space<vmem>>, vector<1x16x16x128xbf16>
    %18 = vector.shape_cast %17 : vector<1x16x16x128xbf16> to vector<16x16x128xbf16>
    %19 = vector.shape_cast %16 : vector<16x16x128xbf16> to vector<1x16x16x128xbf16>
    tpu.vector_store %arg3[%c0_5, %c0_6, %c0_7, %c0_8], %19 {strides = array<i32>} : memref<1x16x16x128xbf16, #tpu.memory_space<vmem>>, vector<1x16x16x128xbf16>,
    %20 = arith.extf %15 : vector<256x128xbf16> to vector<256x128xf32>
    %cst_9 = arith.constant dense<0.000000e+00> : vector<128xf32>
    %21 = vector.multi_reduction <add>, %20, %cst_9 [0] : vector<256x128xf32> to vector<128xf32>
    %22 = vector.shape_cast %21 : vector<128xf32> to vector<1x128xf32>
    %cst_10 = arith.constant 3.906250e-03 : f32
    %23 = vector.broadcast %cst_10 : f32 to vector<1x128xf32>
    %24 = arith.mulf %22, %23 : vector<1x128xf32>
    %c0_11 = arith.constant 0 : index
    %c0_12 = arith.constant 0 : index
    %c0_13 = arith.constant 0 : index
    %25 = vector.load %arg4[%c0_11, %c0_12, %c0_13] : memref<1x1x128xf32, #tpu.memory_space<vmem>>, vector<1x1x128xf32>
    %26 = vector.shape_cast %25 : vector<1x1x128xf32> to vector<1x128xf32>
    %27 = vector.shape_cast %24 : vector<1x128xf32> to vector<1x1x128xf32>
    tpu.vector_store %arg4[%c0_11, %c0_12, %c0_13], %27 {strides = array<i32>} : memref<1x1x128xf32, #tpu.memory_space<vmem>>, vector<1x1x128xf32>,
    %28 = vector.broadcast %24 : vector<1x128xf32> to vector<256x128xf32>
    %29 = arith.subf %20, %28 : vector<256x128xf32>
    %30 = arith.mulf %29, %29 : vector<256x128xf32>
    %cst_14 = arith.constant dense<0.000000e+00> : vector<128xf32>
    %31 = vector.multi_reduction <add>, %30, %cst_14 [0] : vector<256x128xf32> to vector<128xf32>
    %32 = vector.shape_cast %31 : vector<128xf32> to vector<1x128xf32>
    %c0_15 = arith.constant 0 : index
    %c0_16 = arith.constant 0 : index
    %c0_17 = arith.constant 0 : index
    %33 = vector.load %arg5[%c0_15, %c0_16, %c0_17] : memref<1x1x128xf32, #tpu.memory_space<vmem>>, vector<1x1x128xf32>
    %34 = vector.shape_cast %33 : vector<1x1x128xf32> to vector<1x128xf32>
    %35 = vector.shape_cast %32 : vector<1x128xf32> to vector<1x1x128xf32>
    tpu.vector_store %arg5[%c0_15, %c0_16, %c0_17], %35 {strides = array<i32>} : memref<1x1x128xf32, #tpu.memory_space<vmem>>, vector<1x1x128xf32>,
    return
  }
  func.func @transform_0(%arg0: i32) -> (i32, i32, i32, i32) {
    %c0_i32 = arith.constant 0 : i32
    %c0_i32_0 = arith.constant 0 : i32
    %c0_i32_1 = arith.constant 0 : i32
    %c0_i32_2 = arith.constant 0 : i32
    return %arg0, %c0_i32, %c0_i32_0, %c0_i32_1 : i32, i32, i32, i32
  }
  func.func @transform_1(%arg0: i32) -> (i32, i32) {
    %c0_i32 = arith.constant 0 : i32
    %c0_i32_0 = arith.constant 0 : i32
    %c0_i32_1 = arith.constant 0 : i32
    return %c0_i32, %c0_i32_0 : i32, i32
  }
  func.func @transform_2(%arg0: i32) -> (i32, i32, i32, i32) {
    %c0_i32 = arith.constant 0 : i32
    %c0_i32_0 = arith.constant 0 : i32
    %c0_i32_1 = arith.constant 0 : i32
    %c0_i32_2 = arith.constant 0 : i32
    return %arg0, %c0_i32, %c0_i32_0, %c0_i32_1 : i32, i32, i32, i32
  }
  func.func @transform_3(%arg0: i32) -> (i32, i32, i32) {
    %c0_i32 = arith.constant 0 : i32
    %c0_i32_0 = arith.constant 0 : i32
    %c0_i32_1 = arith.constant 0 : i32
    return %arg0, %c0_i32, %c0_i32_0 : i32, i32, i32
  }
  func.func @transform_4(%arg0: i32) -> (i32, i32, i32) {
    %c0_i32 = arith.constant 0 : i32
    %c0_i32_0 = arith.constant 0 : i32
    %c0_i32_1 = arith.constant 0 : i32
    return %arg0, %c0_i32, %c0_i32_0 : i32, i32, i32
  }
}

module attributes {stable_mosaic.version = 11 : i64} {
  func.func @_bn_conv2_add_pool_kernel(%arg0: i32, %arg1: memref<1x16x16x128xbf16, #tpu.memory_space<vmem>>, %arg2: memref<1x16x16x8xbf16, #tpu.memory_space<vmem>>, %arg3: memref<2x1x128xf32, #tpu.memory_space<vmem>>, %arg4: memref<2x1x128xf32, #tpu.memory_space<vmem>>, %arg5: memref<1x128xf32, #tpu.memory_space<vmem>>, %arg6: memref<1x128xf32, #tpu.memory_space<vmem>>, %arg7: memref<1160x128xbf16, #tpu.memory_space<vmem>>, %arg8: memref<1x128xf32, #tpu.memory_space<vmem>>, %arg9: memref<1x8x8x128xbf16, #tpu.memory_space<vmem>>, %arg10: memref<256x1160xbf16, #tpu.memory_space<vmem>>) attributes {dimension_semantics = [#tpu.dimension_semantics<parallel>], iteration_bounds = array<i64: 2>, scalar_prefetch = 0 : i64, scratch_operands = 1 : i64, tpu.core_type = #tpu.core_type<tc>, window_params = [{transform_indices = @transform_0, window_bounds = array<i64: 1, 16, 16, 128>}, {transform_indices = @transform_1, window_bounds = array<i64: 1, 16, 16, 8>}, {pipeline_mode = #tpu.pipeline_mode<synchronous>, transform_indices = @transform_2, window_bounds = array<i64: 2, 1, 128>}, {pipeline_mode = #tpu.pipeline_mode<synchronous>, transform_indices = @transform_3, window_bounds = array<i64: 2, 1, 128>}, {pipeline_mode = #tpu.pipeline_mode<synchronous>, transform_indices = @transform_4, window_bounds = array<i64: 1, 128>}, {pipeline_mode = #tpu.pipeline_mode<synchronous>, transform_indices = @transform_5, window_bounds = array<i64: 1, 128>}, {pipeline_mode = #tpu.pipeline_mode<synchronous>, transform_indices = @transform_6, window_bounds = array<i64: 1160, 128>}, {pipeline_mode = #tpu.pipeline_mode<synchronous>, transform_indices = @transform_7, window_bounds = array<i64: 1, 128>}, {transform_indices = @transform_8, window_bounds = array<i64: 1, 8, 8, 128>}]} {
    %c0 = arith.constant 0 : index
    %c0_0 = arith.constant 0 : index
    %c0_1 = arith.constant 0 : index
    %0 = vector.load %arg3[%c0, %c0_0, %c0_1] : memref<2x1x128xf32, #tpu.memory_space<vmem>>, vector<2x1x128xf32>
    %cst = arith.constant dense<0.000000e+00> : vector<1x128xf32>
    %1 = vector.multi_reduction <add>, %0, %cst [0] : vector<2x1x128xf32> to vector<1x128xf32>
    %cst_2 = arith.constant 5.000000e-01 : f32
    %2 = vector.broadcast %cst_2 : f32 to vector<1x128xf32>
    %3 = arith.mulf %1, %2 : vector<1x128xf32>
    %c0_3 = arith.constant 0 : index
    %c0_4 = arith.constant 0 : index
    %c0_5 = arith.constant 0 : index
    %4 = vector.load %arg4[%c0_3, %c0_4, %c0_5] : memref<2x1x128xf32, #tpu.memory_space<vmem>>, vector<2x1x128xf32>
    %cst_6 = arith.constant dense<0.000000e+00> : vector<1x128xf32>
    %5 = vector.multi_reduction <add>, %4, %cst_6 [0] : vector<2x1x128xf32> to vector<1x128xf32>
    %6 = vector.shape_cast %3 : vector<1x128xf32> to vector<1x1x128xf32>
    %7 = vector.broadcast %6 : vector<1x1x128xf32> to vector<2x1x128xf32>
    %8 = arith.subf %0, %7 : vector<2x1x128xf32>
    %9 = arith.mulf %8, %8 : vector<2x1x128xf32>
    %cst_7 = arith.constant dense<0.000000e+00> : vector<1x128xf32>
    %10 = vector.multi_reduction <add>, %9, %cst_7 [0] : vector<2x1x128xf32> to vector<1x128xf32>
    %cst_8 = arith.constant 2.560000e+02 : f32
    %11 = vector.broadcast %cst_8 : f32 to vector<1x128xf32>
    %12 = arith.mulf %11, %10 : vector<1x128xf32>
    %13 = arith.addf %5, %12 : vector<1x128xf32>
    %cst_9 = arith.constant 0.001953125 : f32
    %14 = vector.broadcast %cst_9 : f32 to vector<1x128xf32>
    %15 = arith.mulf %13, %14 : vector<1x128xf32>
    %c0_10 = arith.constant 0 : index
    %c0_11 = arith.constant 0 : index
    %16 = vector.load %arg5[%c0_10, %c0_11] : memref<1x128xf32, #tpu.memory_space<vmem>>, vector<1x128xf32>
    %cst_12 = arith.constant 9.99999974E-6 : f32
    %17 = vector.broadcast %cst_12 : f32 to vector<1x128xf32>
    %18 = arith.addf %15, %17 : vector<1x128xf32>
    %19 = math.rsqrt %18 : vector<1x128xf32>
    %20 = arith.mulf %16, %19 : vector<1x128xf32>
    %c0_13 = arith.constant 0 : index
    %c0_14 = arith.constant 0 : index
    %21 = vector.load %arg6[%c0_13, %c0_14] : memref<1x128xf32, #tpu.memory_space<vmem>>, vector<1x128xf32>
    %22 = arith.mulf %3, %20 : vector<1x128xf32>
    %23 = arith.subf %21, %22 : vector<1x128xf32>
    %c0_15 = arith.constant 0 : index
    %c0_16 = arith.constant 0 : index
    %c0_17 = arith.constant 0 : index
    %c0_18 = arith.constant 0 : index
    %24 = vector.load %arg1[%c0_15, %c0_16, %c0_17, %c0_18] : memref<1x16x16x128xbf16, #tpu.memory_space<vmem>>, vector<1x16x16x128xbf16>
    %25 = vector.shape_cast %24 : vector<1x16x16x128xbf16> to vector<16x16x128xbf16>
    %26 = vector.shape_cast %25 : vector<16x16x128xbf16> to vector<256x128xbf16>
    %27 = arith.extf %26 : vector<256x128xbf16> to vector<256x128xf32>
    %28 = vector.broadcast %20 : vector<1x128xf32> to vector<256x128xf32>
    %29 = arith.mulf %27, %28 : vector<256x128xf32>
    %30 = vector.broadcast %23 : vector<1x128xf32> to vector<256x128xf32>
    %31 = arith.addf %29, %30 : vector<256x128xf32>
    %cst_19 = arith.constant 0.000000e+00 : f32
    %32 = vector.broadcast %cst_19 : f32 to vector<256x128xf32>
    %33 = arith.cmpf oge, %31, %32 : vector<256x128xf32>
    %cst_20 = arith.constant 3.000000e-01 : f32
    %34 = vector.broadcast %cst_20 : f32 to vector<256x128xf32>
    %35 = arith.mulf %34, %31 : vector<256x128xf32>
    %36 = arith.select %33, %31, %35 : vector<256x128xi1>, vector<256x128xf32>
    %37 = arith.truncf %36 : vector<256x128xf32> to vector<256x128xbf16>
    %38 = vector.shape_cast %37 : vector<256x128xbf16> to vector<16x16x128xbf16>
    %cst_21 = arith.constant 0.000000e+00 : bf16
    %39 = vector.broadcast %cst_21 : bf16 to vector<1x16x128xbf16>
    %cst_22 = arith.constant 0.000000e+00 : bf16
    %40 = vector.broadcast %cst_22 : bf16 to vector<16x1x128xbf16>
    %41 = vector.extract_strided_slice %38 {offsets = [0, 0, 0], sizes = [15, 16, 128], strides = [1, 1, 1]} : vector<16x16x128xbf16> to vector<15x16x128xbf16>
    %42 = tpu.concatenate %39, %41 in 0 : vector<1x16x128xbf16>, vector<15x16x128xbf16> -> vector<16x16x128xbf16>
    %43 = vector.extract_strided_slice %42 {offsets = [0, 0, 0], sizes = [16, 15, 128], strides = [1, 1, 1]} : vector<16x16x128xbf16> to vector<16x15x128xbf16>
    %44 = tpu.concatenate %40, %43 in 1 : vector<16x1x128xbf16>, vector<16x15x128xbf16> -> vector<16x16x128xbf16>
    %45 = vector.shape_cast %44 : vector<16x16x128xbf16> to vector<256x128xbf16>
    %c0_23 = arith.constant 0 : index
    %c0_24 = arith.constant 0 : index
    %46 = vector.load %arg10[%c0_23, %c0_24] : memref<256x1160xbf16, #tpu.memory_space<vmem>>, vector<256x128xbf16>
    tpu.vector_store %arg10[%c0_23, %c0_24], %45 {strides = array<i32>} : memref<256x1160xbf16, #tpu.memory_space<vmem>>, vector<256x128xbf16>,
    %47 = vector.shape_cast %42 : vector<16x16x128xbf16> to vector<256x128xbf16>
    %c0_25 = arith.constant 0 : index
    %c128 = arith.constant 128 : index
    %48 = vector.load %arg10[%c0_25, %c128] : memref<256x1160xbf16, #tpu.memory_space<vmem>>, vector<256x128xbf16>
    tpu.vector_store %arg10[%c0_25, %c128], %47 {strides = array<i32>} : memref<256x1160xbf16, #tpu.memory_space<vmem>>, vector<256x128xbf16>,
    %49 = vector.extract_strided_slice %42 {offsets = [0, 1, 0], sizes = [16, 15, 128], strides = [1, 1, 1]} : vector<16x16x128xbf16> to vector<16x15x128xbf16>
    %50 = tpu.concatenate %49, %40 in 1 : vector<16x15x128xbf16>, vector<16x1x128xbf16> -> vector<16x16x128xbf16>
    %51 = vector.shape_cast %50 : vector<16x16x128xbf16> to vector<256x128xbf16>
    %c0_26 = arith.constant 0 : index
    %c256 = arith.constant 256 : index
    %52 = vector.load %arg10[%c0_26, %c256] : memref<256x1160xbf16, #tpu.memory_space<vmem>>, vector<256x128xbf16>
    tpu.vector_store %arg10[%c0_26, %c256], %51 {strides = array<i32>} : memref<256x1160xbf16, #tpu.memory_space<vmem>>, vector<256x128xbf16>,
    %53 = vector.extract_strided_slice %38 {offsets = [0, 0, 0], sizes = [16, 15, 128], strides = [1, 1, 1]} : vector<16x16x128xbf16> to vector<16x15x128xbf16>
    %54 = tpu.concatenate %40, %53 in 1 : vector<16x1x128xbf16>, vector<16x15x128xbf16> -> vector<16x16x128xbf16>
    %55 = vector.shape_cast %54 : vector<16x16x128xbf16> to vector<256x128xbf16>
    %c0_27 = arith.constant 0 : index
    %c384 = arith.constant 384 : index
    %56 = vector.load %arg10[%c0_27, %c384] : memref<256x1160xbf16, #tpu.memory_space<vmem>>, vector<256x128xbf16>
    tpu.vector_store %arg10[%c0_27, %c384], %55 {strides = array<i32>} : memref<256x1160xbf16, #tpu.memory_space<vmem>>, vector<256x128xbf16>,
    %57 = vector.shape_cast %38 : vector<16x16x128xbf16> to vector<256x128xbf16>
    %c0_28 = arith.constant 0 : index
    %c512 = arith.constant 512 : index
    %58 = vector.load %arg10[%c0_28, %c512] : memref<256x1160xbf16, #tpu.memory_space<vmem>>, vector<256x128xbf16>
    tpu.vector_store %arg10[%c0_28, %c512], %57 {strides = array<i32>} : memref<256x1160xbf16, #tpu.memory_space<vmem>>, vector<256x128xbf16>,
    %59 = vector.extract_strided_slice %38 {offsets = [0, 1, 0], sizes = [16, 15, 128], strides = [1, 1, 1]} : vector<16x16x128xbf16> to vector<16x15x128xbf16>
    %60 = tpu.concatenate %59, %40 in 1 : vector<16x15x128xbf16>, vector<16x1x128xbf16> -> vector<16x16x128xbf16>
    %61 = vector.shape_cast %60 : vector<16x16x128xbf16> to vector<256x128xbf16>
    %c0_29 = arith.constant 0 : index
    %c640 = arith.constant 640 : index
    %62 = vector.load %arg10[%c0_29, %c640] : memref<256x1160xbf16, #tpu.memory_space<vmem>>, vector<256x128xbf16>
    tpu.vector_store %arg10[%c0_29, %c640], %61 {strides = array<i32>} : memref<256x1160xbf16, #tpu.memory_space<vmem>>, vector<256x128xbf16>,
    %63 = vector.extract_strided_slice %38 {offsets = [1, 0, 0], sizes = [15, 16, 128], strides = [1, 1, 1]} : vector<16x16x128xbf16> to vector<15x16x128xbf16>
    %64 = tpu.concatenate %63, %39 in 0 : vector<15x16x128xbf16>, vector<1x16x128xbf16> -> vector<16x16x128xbf16>
    %65 = vector.extract_strided_slice %64 {offsets = [0, 0, 0], sizes = [16, 15, 128], strides = [1, 1, 1]} : vector<16x16x128xbf16> to vector<16x15x128xbf16>
    %66 = tpu.concatenate %40, %65 in 1 : vector<16x1x128xbf16>, vector<16x15x128xbf16> -> vector<16x16x128xbf16>
    %67 = vector.shape_cast %66 : vector<16x16x128xbf16> to vector<256x128xbf16>
    %c0_30 = arith.constant 0 : index
    %c768 = arith.constant 768 : index
    %68 = vector.load %arg10[%c0_30, %c768] : memref<256x1160xbf16, #tpu.memory_space<vmem>>, vector<256x128xbf16>
    tpu.vector_store %arg10[%c0_30, %c768], %67 {strides = array<i32>} : memref<256x1160xbf16, #tpu.memory_space<vmem>>, vector<256x128xbf16>,
    %69 = vector.shape_cast %64 : vector<16x16x128xbf16> to vector<256x128xbf16>
    %c0_31 = arith.constant 0 : index
    %c896 = arith.constant 896 : index
    %70 = vector.load %arg10[%c0_31, %c896] : memref<256x1160xbf16, #tpu.memory_space<vmem>>, vector<256x128xbf16>
    tpu.vector_store %arg10[%c0_31, %c896], %69 {strides = array<i32>} : memref<256x1160xbf16, #tpu.memory_space<vmem>>, vector<256x128xbf16>,
    %71 = vector.extract_strided_slice %64 {offsets = [0, 1, 0], sizes = [16, 15, 128], strides = [1, 1, 1]} : vector<16x16x128xbf16> to vector<16x15x128xbf16>
    %72 = tpu.concatenate %71, %40 in 1 : vector<16x15x128xbf16>, vector<16x1x128xbf16> -> vector<16x16x128xbf16>
    %73 = vector.shape_cast %72 : vector<16x16x128xbf16> to vector<256x128xbf16>
    %c0_32 = arith.constant 0 : index
    %c1024 = arith.constant 1024 : index
    %74 = vector.load %arg10[%c0_32, %c1024] : memref<256x1160xbf16, #tpu.memory_space<vmem>>, vector<256x128xbf16>
    tpu.vector_store %arg10[%c0_32, %c1024], %73 {strides = array<i32>} : memref<256x1160xbf16, #tpu.memory_space<vmem>>, vector<256x128xbf16>,
    %c0_33 = arith.constant 0 : index
    %c0_34 = arith.constant 0 : index
    %c0_35 = arith.constant 0 : index
    %c0_36 = arith.constant 0 : index
    %75 = vector.load %arg2[%c0_33, %c0_34, %c0_35, %c0_36] : memref<1x16x16x8xbf16, #tpu.memory_space<vmem>>, vector<1x16x16x8xbf16>
    %76 = vector.shape_cast %75 : vector<1x16x16x8xbf16> to vector<16x16x8xbf16>
    %77 = vector.shape_cast %76 : vector<16x16x8xbf16> to vector<256x8xbf16>
    %c0_37 = arith.constant 0 : index
    %c1152 = arith.constant 1152 : index
    %78 = vector.load %arg10[%c0_37, %c1152] : memref<256x1160xbf16, #tpu.memory_space<vmem>>, vector<256x8xbf16>
    tpu.vector_store %arg10[%c0_37, %c1152], %77 {strides = array<i32>} : memref<256x1160xbf16, #tpu.memory_space<vmem>>, vector<256x8xbf16>,
    %c0_38 = arith.constant 0 : index
    %c0_39 = arith.constant 0 : index
    %79 = vector.load %arg10[%c0_38, %c0_39] : memref<256x1160xbf16, #tpu.memory_space<vmem>>, vector<256x1160xbf16>
    %c0_40 = arith.constant 0 : index
    %c0_41 = arith.constant 0 : index
    %80 = vector.load %arg7[%c0_40, %c0_41] : memref<1160x128xbf16, #tpu.memory_space<vmem>>, vector<1160x128xbf16>
    %cst_42 = arith.constant dense<0.000000e+00> : vector<256x128xf32>
    %81 = tpu.matmul %79, %80, %cst_42 {dimension_numbers = #tpu.dot_dimension_numbers<[1], [0], [0], [1], [0, 0, 1, 1], [], []>} : vector<256x1160xbf16>, vector<1160x128xbf16>, vector<256x128xf32> -> vector<256x128xf32>
    %c0_43 = arith.constant 0 : index
    %c0_44 = arith.constant 0 : index
    %82 = vector.load %arg8[%c0_43, %c0_44] : memref<1x128xf32, #tpu.memory_space<vmem>>, vector<1x128xf32>
    %83 = vector.broadcast %82 : vector<1x128xf32> to vector<256x128xf32>
    %84 = arith.addf %81, %83 : vector<256x128xf32>
    %85 = vector.shape_cast %84 : vector<256x128xf32> to vector<8x2x16x128xf32>
    %cst_45 = arith.constant dense<0xFF800000> : vector<8x16x128xf32>
    %86 = vector.multi_reduction <maximumf>, %85, %cst_45 [1] : vector<8x2x16x128xf32> to vector<8x16x128xf32>
    %87 = vector.shape_cast %86 : vector<8x16x128xf32> to vector<8x8x2x128xf32>
    %cst_46 = arith.constant dense<0xFF800000> : vector<8x8x128xf32>
    %88 = vector.multi_reduction <maximumf>, %87, %cst_46 [2] : vector<8x8x2x128xf32> to vector<8x8x128xf32>
    %89 = arith.truncf %88 : vector<8x8x128xf32> to vector<8x8x128xbf16>
    %c0_47 = arith.constant 0 : index
    %c0_48 = arith.constant 0 : index
    %c0_49 = arith.constant 0 : index
    %c0_50 = arith.constant 0 : index
    %90 = vector.load %arg9[%c0_47, %c0_48, %c0_49, %c0_50] : memref<1x8x8x128xbf16, #tpu.memory_space<vmem>>, vector<1x8x8x128xbf16>
    %91 = vector.shape_cast %90 : vector<1x8x8x128xbf16> to vector<8x8x128xbf16>
    %92 = vector.shape_cast %89 : vector<8x8x128xbf16> to vector<1x8x8x128xbf16>
    tpu.vector_store %arg9[%c0_47, %c0_48, %c0_49, %c0_50], %92 {strides = array<i32>} : memref<1x8x8x128xbf16, #tpu.memory_space<vmem>>, vector<1x8x8x128xbf16>,
    return
  }
  func.func @transform_0(%arg0: i32) -> (i32, i32, i32, i32) {
    %c0_i32 = arith.constant 0 : i32
    %c0_i32_0 = arith.constant 0 : i32
    %c0_i32_1 = arith.constant 0 : i32
    %c0_i32_2 = arith.constant 0 : i32
    return %arg0, %c0_i32, %c0_i32_0, %c0_i32_1 : i32, i32, i32, i32
  }
  func.func @transform_1(%arg0: i32) -> (i32, i32, i32, i32) {
    %c0_i32 = arith.constant 0 : i32
    %c0_i32_0 = arith.constant 0 : i32
    %c0_i32_1 = arith.constant 0 : i32
    %c0_i32_2 = arith.constant 0 : i32
    return %arg0, %c0_i32, %c0_i32_0, %c0_i32_1 : i32, i32, i32, i32
  }
  func.func @transform_2(%arg0: i32) -> (i32, i32, i32) {
    %c0_i32 = arith.constant 0 : i32
    %c0_i32_0 = arith.constant 0 : i32
    %c0_i32_1 = arith.constant 0 : i32
    %c0_i32_2 = arith.constant 0 : i32
    return %c0_i32, %c0_i32_0, %c0_i32_1 : i32, i32, i32
  }
  func.func @transform_3(%arg0: i32) -> (i32, i32, i32) {
    %c0_i32 = arith.constant 0 : i32
    %c0_i32_0 = arith.constant 0 : i32
    %c0_i32_1 = arith.constant 0 : i32
    %c0_i32_2 = arith.constant 0 : i32
    return %c0_i32, %c0_i32_0, %c0_i32_1 : i32, i32, i32
  }
  func.func @transform_4(%arg0: i32) -> (i32, i32) {
    %c0_i32 = arith.constant 0 : i32
    %c0_i32_0 = arith.constant 0 : i32
    %c0_i32_1 = arith.constant 0 : i32
    return %c0_i32, %c0_i32_0 : i32, i32
  }
  func.func @transform_5(%arg0: i32) -> (i32, i32) {
    %c0_i32 = arith.constant 0 : i32
    %c0_i32_0 = arith.constant 0 : i32
    %c0_i32_1 = arith.constant 0 : i32
    return %c0_i32, %c0_i32_0 : i32, i32
  }
  func.func @transform_6(%arg0: i32) -> (i32, i32) {
    %c0_i32 = arith.constant 0 : i32
    %c0_i32_0 = arith.constant 0 : i32
    %c0_i32_1 = arith.constant 0 : i32
    return %c0_i32, %c0_i32_0 : i32, i32
  }
  func.func @transform_7(%arg0: i32) -> (i32, i32) {
    %c0_i32 = arith.constant 0 : i32
    %c0_i32_0 = arith.constant 0 : i32
    %c0_i32_1 = arith.constant 0 : i32
    return %c0_i32, %c0_i32_0 : i32, i32
  }
  func.func @transform_8(%arg0: i32) -> (i32, i32, i32, i32) {
    %c0_i32 = arith.constant 0 : i32
    %c0_i32_0 = arith.constant 0 : i32
    %c0_i32_1 = arith.constant 0 : i32
    %c0_i32_2 = arith.constant 0 : i32
    return %arg0, %c0_i32, %c0_i32_0, %c0_i32_1 : i32, i32, i32, i32
  }
}

</mosaic_0001>

<bundles_post_ra>
// kernel: residual_block2d_forward.2
= control target key start
LH: loop header
LB: loop body
LE: loop exit
PB: predicated region body
PF: predicated region fallthrough
CT: control target
= control target key end

     0   :  { %s2279_s15 = smov 0   ;;  %s3042_s0 = inlined_call_operand.vmem [shape: bf16[2,18,18,8], index: 0, kind: input, shape index: {}]   ;;  %s3043_s1 = inlined_call_operand.vmem [shape: bf16[72,128], index: 1, kind: input, shape index: {}]   ;;  %s3044_s2 = inlined_call_operand.vmem [shape: bf16[2,16,16,128], index: 2, kind: output, shape index: {0}]   ;;  %s3045_s3 = inlined_call_operand.vmem [shape: f32[2,1,128], index: 3, kind: output, shape index: {1}]   ;;  %s3046_s4 = inlined_call_operand.vmem [shape: f32[2,1,128], index: 4, kind: output, shape index: {2}]  }
   0x1 LB: > { %s1878_s16 = sadd.s32 4294967295, %s2244_s15   ;;  %p1882_p0 = scmp.ge.s32.totalorder %s2244_s15, 1  ;;  %s2244_s15 = sphi %s2279_s15, %s15_s15  }
   0x2   : > { %p167_p1 = scmp.lt.s32.totalorder %s2244_s15, 3 }
   0x4   : > { %p168_p2 = pnand %p1882_p0, %p167_p1 }
   0x5   : > { %p199_p3 = scmp.lt.s32.totalorder (!%p168_p2), %s1878_s16, 1  ;;  %vm623_vm0 = vcmask (!%p168_p2), 1046528   ;;  %s2246_s21 = smov (!%p168_p2), 24   ;;  %vm398_vm1 = vsmask.f32 (!%p168_p2), 7424  ;;  %v2217_v44 = vld [vmem:[%s3043_s1] sm:$0xff] (!%p168_p2)  }
   0x6   : > { %171 = sbr.rel (%p168_p2) target bundleno = 709 (0x2c5), region = 28  ;;  %s2247_s22 = smov (!%p168_p2), 40   ;;  %2126 = vmatprep.subr.bf16.mxu0 (!%p168_p2), %v2217_v44  ;;  %v2218_v45 = vld [vmem:[%s3043_s1 + $0x8] sm:$0xff] (!%p168_p2)   ;;  %2168 = vmatprep.subr.bf16.mxu1 (!%p168_p2), %v2217_v44  ;;  %v2219_v47 = vld [vmem:[%s3043_s1 + $0x10] sm:$0xff] (!%p168_p2)   ;;  %v2221_v51 = vld [vmem:[%s3043_s1 + $0x18] sm:$0xff] (!%p168_p2)   ;;  %vm1275_vm2 = vcmask (!%p168_p2), 1043456  }
   0x7   : > { %s2248_s23 = smov (!%p168_p2), 16   ;;  %s2249_s24 = smov (!%p168_p2), 8   ;;  %2127 = vmatpush3.bf16.msra.mxu0 (!%p168_p2), %v2217_v44  ;;  %2173 = vmatpush3.bf16.msra.mxu1 (!%p168_p2), %v2217_v44  ;;  %v2223_v55 = vld [vmem:[%s3043_s1 + $0x20] ss:$0 sps:$4 sm:$0xff] (!%p168_p2)   ;;  %vm942_vm3 = vcmask (!%p168_p2), 64512   ;;  %vm975_vm4 = vcmask (!%p168_p2), 130048  }
   0x8   : > { %s2250_s25 = smov (!%p168_p2), 32   ;;  %s2251_s28 = smov (!%p168_p2), 48   ;;  %2128 = vmatprep.subr.bf16.mxu0 (!%p168_p2), %v2218_v45  ;;  %2169 = vmatprep.subr.bf16.mxu1 (!%p168_p2), %v2218_v45  ;;  %v1277_v59 = vsel (!%p168_p2), %vm1275_vm2, %v2223_v55, 0  ;;  %vm1008_vm5 = vcmask (!%p168_p2), 195584   ;;  %vm1041_vm6 = vcmask (!%p168_p2), 261120   ;;  %vm1074_vm7 = vcmask (!%p168_p2), 326656  }
   0x9   : > { %s2252_s7 = smov (!%p168_p2), 56   ;;  %s2253_s10 = smov (!%p168_p2), 64   ;;  %vm1107_vm8 = vcmask (!%p168_p2), 392192   ;;  %vm1140_vm9 = vcmask (!%p168_p2), 457728   ;;  %vm1173_vm10 = vcmask (!%p168_p2), 523264   ;;  %vm1242_vm11 = vcmask (!%p168_p2), 588800  }
   0xb   : > { %2129 = vmatpush3.bf16.msra.mxu0 (!%p168_p2), %v2218_v45  ;;  %2174 = vmatpush3.bf16.msra.mxu1 (!%p168_p2), %v2218_v45 }
   0xc   : > { %2130 = vmatprep.subr.bf16.mxu0 (!%p168_p2), %v2219_v47  ;;  %2170 = vmatprep.subr.bf16.mxu1 (!%p168_p2), %v2219_v47 }
   0xd   : > { %s3048_s16 = smov (!%p199_p3, %s1878_s16), 1 }
   0xe   : > { %s2180_s17 = smul.u32 216, %s3048_s16  ;;  %s1977_s13 = sshll.u32 %s3048_s16, 7 }
   0xf   : > { %2131 = vmatpush3.bf16.msra.mxu0 %v2219_v47  ;;  %2175 = vmatpush3.bf16.msra.mxu1 %v2219_v47  ;;  %s2775_s18 = scalar_lea.vmem %s3044_s2, %s1977_s13 }
  0x10   : > { %s2293_s20 = scalar_lea.vmem %s3042_s0, %s2180_s17  ;;  %2132 = vmatprep.subr.bf16.mxu0 %v2221_v51  ;;  %2171 = vmatprep.subr.bf16.mxu1 %v2221_v51 }
  0x11   : > { %v2296_v0 = vld [vmem:[%s2293_s20 + $0x18] sm:$0xff]   ;;  %v2299_v1 = vld [vmem:[%s2293_s20 + $0xc] sm:$0xff]   ;;  %v2199_v2 = vld [vmem:[%s2293_s20 + $0x14] ss:$0 sps:$4 sm:$0x11]  }
  0x12   : > { %711 = vrot.lane.b32.xlu1 %v2296_v0, %s2246_s21  ;;  %v2305_v3 = vld [vmem:[%s2293_s20] sm:$0xff]   ;;  %709 = vrot.lane.b32.xlu0 %v2299_v1, %s2246_s21  ;;  %v627_v4 = vrot.slane %v2299_v1, 1  ;;  %v628_v5 = vrot.slane %v2199_v2, 1  ;;  %v2201_v6 = vld [vmem:[%s2293_s20 + $0x8] ss:$0 sps:$4 sm:$0x11]  }
  0x13   : > { %v624_v7 = vrot.slane %v2305_v3, 1  ;;  %v400_v8 = vshrl.u32 %v2305_v3, 16  ;;  %v402_v9 = vshll.u32 %v2305_v3, 16  ;;  %v412_v10 = vshrl.u32 %v2299_v1, 16  ;;  %v2325_v30 = vld [vmem:[%s2293_s20 + $0x24] sm:$0xff]   ;;  %v2358_v50 = vld [vmem:[%s2293_s20 + $0x30] sm:$0xff]   ;;  %2133 = vmatpush3.bf16.msra.mxu0 %v2221_v51  ;;  %2176 = vmatpush3.bf16.msra.mxu1 %v2221_v51 }
  0x14   : > { %v629_v11 = vsel %vm623_vm0, %v627_v4, %v628_v5  ;;  %v625_v12 = vrot.slane %v2201_v6, 1  ;;  %v407_v13 = vshll.u32 %v2201_v6, 16  ;;  %v2202_v14 = vld [vmem:[%s2293_s20 + $0x20] ss:$0 sps:$4 sm:$0x11]   ;;  %v414_v15 = vshll.u32 %v2299_v1, 16  ;;  %2178 = vmatprep.subr.msk.bf16.mxu0 %vm1275_vm2, %v2223_v55  ;;  %2179 = vmatprep.subr.msk.bf16.mxu1 %vm1275_vm2, %v2223_v55 }
  0x15   : > { %v404_v16 = vrot.slane %v402_v9, 1  ;;  %v419_v17 = vshll.u32 %v2199_v2, 16  ;;  %v426_v18 = vshll.u32 %v2296_v0, 16  ;;  %v630_v23 = vrot.slane %v2296_v0, 1  ;;  %v2377_v62 = vld [vmem:[%s2293_s20 + $0x3c] sm:$0xff]   ;;  %v2453_v51 = vld [vmem:[%s2293_s20 + $0x6c] sm:$0xff]  }
  0x16   : > { %791 = vrot.lane.b32.xlu0 %v629_v11, %s2247_s22  ;;  %v626_v19 = vsel %vm623_vm0, %v624_v7, %v625_v12  ;;  %v409_v20 = vrot.slane %v407_v13, 1  ;;  %v416_v21 = vrot.slane %v414_v15, 1  ;;  %v424_v25 = vshrl.u32 %v2296_v0, 16  ;;  %v2204_v33 = vld [vmem:[%s2293_s20 + $0x2c] ss:$0 sps:$4 sm:$0x11]  }
  0x17   : > { %672 = vrot.lane.b32.xlu1 %v626_v19, %s2248_s23  ;;  %v405_v22 = vor.u32 %v404_v16, %v400_v8  ;;  %v421_v24 = vrot.slane %v419_v17, 1  ;;  %v631_v26 = vrot.slane %v2202_v14, 1  ;;  %v428_v28 = vrot.slane %v426_v18, 1  ;;  %v2206_v53 = vld [vmem:[%s2293_s20 + $0x38] ss:$0 sps:$4 sm:$0x11]   ;;  %2135 = vmatpush3.bf16.msra.mxu0 %v1277_v59 }
  0x18   : > { %v417_v27 = vor.u32 %v416_v21, %v412_v10  ;;  %v431_v29 = vshll.u32 %v2202_v14, 16  ;;  %v438_v37 = vshll.u32 %v2325_v30, 16  ;;  %v436_v39 = vshrl.u32 %v2325_v30, 16  ;;  %2177 = vmatpush3.bf16.msra.mxu1 %v1277_v59  ;;  %v2208_v5 = vld [vmem:[%s2293_s20 + $0x44] ss:$0 sps:$4 sm:$0x11]  }
  0x19   : > { %v410_v31 = vsel %vm398_vm1, %v405_v22, %v409_v20  ;;  %v632_v34 = vsel %vm623_vm0, %v630_v23, %v631_v26  ;;  %v429_v35 = vor.u32 %v428_v28, %v424_v25  ;;  %v443_v41 = vshll.u32 %v2204_v33, 16  ;;  %v2402_v16 = vld [vmem:[%s2293_s20 + $0x48] sm:$0xff]   ;;  %v2210_v18 = vld [vmem:[%s2293_s20 + $0x50] ss:$0 sps:$4 sm:$0x11]   ;;  %v2415_v25 = vld [vmem:[%s2293_s20 + $0x54] sm:$0xff]  }
  0x1a   : > { %591 = vrot.lane.b32.xlu0 %v410_v31, %s2249_s24  ;;  %v422_v32 = vsel %vm398_vm1, %v417_v27, %v421_v24  ;;  %v433_v36 = vrot.slane %v431_v29, 1  ;;  %v440_v40 = vrot.slane %v438_v37, 1  ;;  %v633_v48 = vrot.slane %v2325_v30, 1  ;;  %v2212_v29 = vld [vmem:[%s2293_s20 + $0x5c] ss:$0 sps:$4 sm:$0x11]  }
  0x1b   : > { %674 = vrot.lane.b32.xlu1 %v629_v11, %s2248_s23  ;;  %v445_v43 = vrot.slane %v443_v41, 1  ;;  %v634_v49 = vrot.slane %v2204_v33, 1  ;;  %v450_v54 = vshll.u32 %v2358_v50, 16  ;;  %v448_v56 = vshrl.u32 %v2358_v50, 16  ;;  %v2440_v41 = vld [vmem:[%s2293_s20 + $0x60] sm:$0xff]  }
  0x1c   : > { %v434_v38 = vsel %vm398_vm1, %v429_v35, %v433_v36  ;;  %v441_v42 = vor.u32 %v440_v40, %v436_v39  ;;  %v455_v58 = vshll.u32 %v2206_v53, 16  ;;  %v636_v2 = vrot.slane %v2358_v50, 1  ;;  %v2216_v55 = vld [vmem:[%s2293_s20 + $0x74] ss:$0 sps:$4 sm:$0x11]  }
  0x1d   : > { %v635_v52 = vsel %vm623_vm0, %v633_v48, %v634_v49  ;;  %v452_v57 = vrot.slane %v450_v54, 1  ;;  %v637_v4 = vrot.slane %v2206_v53, 1  ;;  %v462_v6 = vshll.u32 %v2377_v62, 16 }
  0x1e   : > { %593 = vrot.lane.b32.xlu0 %v422_v32, %s2249_s24  ;;  %v446_v46 = vsel %vm398_vm1, %v441_v42, %v445_v43  ;;  %v457_v61 = vrot.slane %v455_v58, 1  ;;  %v460_v8 = vshrl.u32 %v2377_v62, 16  ;;  %v467_v10 = vshll.u32 %v2208_v5, 16  ;;  %v2214_v43 = vld [vmem:[%s2293_s20 + $0x68] ss:$0 sps:$4 sm:$0x11]  }
  0x1f   : > { %793 = vrot.lane.b32.xlu1 %v632_v34, %s2247_s22  ;;  %v453_v60 = vor.u32 %v452_v57, %v448_v56  ;;  %v638_v7 = vsel %vm623_vm0, %v636_v2, %v637_v4  ;;  %v464_v9 = vrot.slane %v462_v6, 1  ;;  %v639_v14 = vrot.slane %v2377_v62, 1 }
  0x20   : > { %v469_v12 = vrot.slane %v467_v10, 1  ;;  %v640_v15 = vrot.slane %v2208_v5, 1  ;;  %v474_v19 = vshll.u32 %v2402_v16, 16  ;;  %v472_v20 = vshrl.u32 %v2402_v16, 16 }
  0x21   : > { %v458_v63 = vsel %vm398_vm1, %v453_v60, %v457_v61  ;;  %v465_v11 = vor.u32 %v464_v9, %v460_v8  ;;  %v479_v22 = vshll.u32 %v2210_v18, 16  ;;  %v642_v27 = vrot.slane %v2402_v16, 1 }
  0x22   : > { %756 = vrot.lane.b32.xlu0 %v422_v32, %s2250_s25  ;;  %v641_v17 = vsel %vm623_vm0, %v639_v14, %v640_v15  ;;  %v476_v21 = vrot.slane %v474_v19, 1  ;;  %v643_v28 = vrot.slane %v2210_v18, 1  ;;  %v486_v31 = vshll.u32 %v2415_v25, 16  ;;  %v2222_v15 = vld [vmem:[%s2293_s20 + $0x80] ss:$0 sps:$4 sm:$0x11]  }
  0x23   : > { %758 = vrot.lane.b32.xlu1 %v434_v38, %s2250_s25  ;;  %v470_v13 = vsel %vm398_vm1, %v465_v11, %v469_v12  ;;  %v481_v24 = vrot.slane %v479_v22, 1  ;;  %v484_v33 = vshrl.u32 %v2415_v25, 16  ;;  %v491_v35 = vshll.u32 %v2212_v29, 16  ;;  %v2478_v11 = vld [vmem:[%s2293_s20 + $0x78] sm:$0xff]  }
  0x24   : > { %v477_v23 = vor.u32 %v476_v21, %v472_v20  ;;  %v644_v32 = vsel %vm623_vm0, %v642_v27, %v643_v28  ;;  %v645_v39 = vrot.slane %v2415_v25, 1  ;;  %v646_v40 = vrot.slane %v2212_v29, 1 }
  0x25   : > { %v493_v37 = vrot.slane %v491_v35, 1  ;;  %v498_v44 = vshll.u32 %v2440_v41, 16  ;;  %v496_v45 = vshrl.u32 %v2440_v41, 16  ;;  %v503_v47 = vshll.u32 %v2214_v43, 16 }
  0x26   : > { %828 = vrot.lane.b32.xlu0 %v2296_v0, %s2251_s28  ;;  %v482_v26 = vsel %vm398_vm1, %v477_v23, %v481_v24  ;;  %v647_v42 = vsel %vm623_vm0, %v645_v39, %v646_v40  ;;  %v648_v53 = vrot.slane %v2440_v41, 1  ;;  %v649_v54 = vrot.slane %v2214_v43, 1  ;;  %v2225_v40 = vld [vmem:[%s2293_s20 + $0x8c] ss:$0 sps:$4 sm:$0x11]  }
  0x27   : > { %830 = vrot.lane.b32.xlu1 %v2325_v30, %s2251_s28  ;;  %v505_v49 = vrot.slane %v503_v47, 1  ;;  %v510_v56 = vshll.u32 %v2453_v51, 16  ;;  %v508_v58 = vshrl.u32 %v2453_v51, 16  ;;  %v515_v60 = vshll.u32 %v2216_v55, 16 }
  0x28   : > { %v650_v57 = vsel %vm623_vm0, %v648_v53, %v649_v54  ;;  %v651_v8 = vrot.slane %v2453_v51, 1  ;;  %v652_v9 = vrot.slane %v2216_v55, 1  ;;  %v520_v21 = vshrl.u32 %v2478_v11, 16 }
  0x29   : > { %v512_v59 = vrot.slane %v510_v56, 1  ;;  %v517_v4 = vrot.slane %v515_v60, 1  ;;  %v527_v23 = vshll.u32 %v2222_v15, 16  ;;  %v654_v35 = vrot.slane %v2478_v11, 1 }
  0x2a   : > { %875 = vrot.lane.b32.xlu0 %v434_v38, %s2252_s7  ;;  %v539_v54 = vshll.u32 %v2225_v40, 16 }
  0x2b   : > { %877 = vrot.lane.b32.xlu1 %v446_v46, %s2252_s7  ;;  %v513_v2 = vor.u32 %v512_v59, %v508_v58 }
  0x2d   : > { %v518_v6 = vsel %vm398_vm1, %v513_v2, %v517_v4 }
  0x2e   : > { %910 = vrot.lane.b32.xlu0 %v632_v34, %s2253_s10 }
  0x2f   : > { %595 = vrot.lane.b32.xlu1 %v434_v38, %s2249_s24 }
  0x32   : > { %912 = vrot.lane.b32.xlu0 %v635_v52, %s2253_s10 }
  0x33   : > { %597 = vrot.lane.b32.xlu1 %v446_v46, %s2249_s24 }
  0x36   : > { %676 = vrot.lane.b32.xlu0 %v632_v34, %s2248_s23  ;;  %v488_v34 = vrot.slane %v486_v31, 1  ;;  %v2496_v31 = vld [vmem:[%s2293_s20 + $0x84] sm:$0xff]  }
  0x37   : > { %678 = vrot.lane.b32.xlu1 %v635_v52, %s2248_s23 }
  0x38   : > { %v489_v36 = vor.u32 %v488_v34, %v484_v33 }
  0x3a   : > { %713 = vrot.lane.b32.xlu0 %v2325_v30, %s2246_s21  ;;  %v494_v38 = vsel %vm398_vm1, %v489_v36, %v493_v37  ;;  %v655_v36 = vrot.slane %v2222_v15, 1 }
  0x3b   : > { %715 = vrot.lane.b32.xlu1 %v2358_v50, %s2246_s21 }
  0x3c   : > { %v656_v47 = vsel %vm623_vm0, %v654_v35, %v655_v36 }
  0x3e   : > { %760 = vrot.lane.b32.xlu0 %v446_v46, %s2250_s25  ;;  %v500_v46 = vrot.slane %v498_v44, 1 }
  0x3f   : > { %762 = vrot.lane.b32.xlu1 %v458_v63, %s2250_s25 }
  0x40   : > { %v501_v48 = vor.u32 %v500_v46, %v496_v45 }
  0x42   : > { %795 = vrot.lane.b32.xlu0 %v635_v52, %s2247_s22  ;;  %v506_v52 = vsel %vm398_vm1, %v501_v48, %v505_v49 }
  0x43   : > { %797 = vrot.lane.b32.xlu1 %v638_v7, %s2247_s22 }
  0x46   : > { %832 = vrot.lane.b32.xlu0 %v2358_v50, %s2251_s28 }
  0x47   : > { %834 = vrot.lane.b32.xlu1 %v2377_v62, %s2251_s28 }
  0x4a   : > { %879 = vrot.lane.b32.xlu0 %v458_v63, %s2252_s7 }
  0x4b   : > { %881 = vrot.lane.b32.xlu1 %v470_v13, %s2252_s7 }
  0x4e   : > { %914 = vrot.lane.b32.xlu0 %v638_v7, %s2253_s10 }
  0x4f   : > { %599 = vrot.lane.b32.xlu1 %v458_v63, %s2249_s24 }
  0x52   : > { %916 = vrot.lane.b32.xlu0 %v641_v17, %s2253_s10 }
  0x53   : > { %601 = vrot.lane.b32.xlu1 %v470_v13, %s2249_s24 }
  0x56   : > { %680 = vrot.lane.b32.xlu0 %v638_v7, %s2248_s23 }
  0x57   : > { %682 = vrot.lane.b32.xlu1 %v641_v17, %s2248_s23 }
  0x5a   : > { %717 = vrot.lane.b32.xlu0 %v2377_v62, %s2246_s21 }
  0x5b   : > { %719 = vrot.lane.b32.xlu1 %v2402_v16, %s2246_s21 }
  0x5e   : > { %764 = vrot.lane.b32.xlu0 %v470_v13, %s2250_s25  ;;  %v653_v13 = vsel %vm623_vm0, %v651_v8, %v652_v9  ;;  %v657_v8 = vrot.slane %v2496_v31, 1  ;;  %v658_v9 = vrot.slane %v2225_v40, 1 }
  0x5f   : > { %766 = vrot.lane.b32.xlu1 %v482_v26, %s2250_s25 }
  0x62   : > { %799 = vrot.lane.b32.xlu0 %v641_v17, %s2247_s22  ;;  %v522_v17 = vshll.u32 %v2478_v11, 16 }
  0x63   : > { %801 = vrot.lane.b32.xlu1 %v644_v32, %s2247_s22 }
  0x64   : > { %v524_v22 = vrot.slane %v522_v17, 1  ;;  %v2227_v17 = vld [vmem:[%s2293_s20 + $0x98] ss:$0 sps:$4 sm:$0x11]  }
  0x66   : > { %836 = vrot.lane.b32.xlu0 %v2402_v16, %s2251_s28  ;;  %v525_v29 = vor.u32 %v524_v22, %v520_v21 }
  0x67   : > { %838 = vrot.lane.b32.xlu1 %v2415_v25, %s2251_s28 }
  0x6a   : > { %883 = vrot.lane.b32.xlu0 %v482_v26, %s2252_s7 }
  0x6b   : > { %885 = vrot.lane.b32.xlu1 %v494_v38, %s2252_s7 }
  0x6e   : > { %918 = vrot.lane.b32.xlu0 %v644_v32, %s2253_s10 }
  0x6f   : > { %603 = vrot.lane.b32.xlu1 %v482_v26, %s2249_s24 }
  0x72   : > { %920 = vrot.lane.b32.xlu0 %v647_v42, %s2253_s10 }
  0x73   : > { %605 = vrot.lane.b32.xlu1 %v494_v38, %s2249_s24 }
  0x76   : > { %684 = vrot.lane.b32.xlu0 %v644_v32, %s2248_s23 }
  0x77   : > { %686 = vrot.lane.b32.xlu1 %v647_v42, %s2248_s23 }
  0x7a   : > { %721 = vrot.lane.b32.xlu0 %v2415_v25, %s2246_s21 }
  0x7b   : > { %723 = vrot.lane.b32.xlu1 %v2440_v41, %s2246_s21 }
  0x7e   : > { %768 = vrot.lane.b32.xlu0 %v494_v38, %s2250_s25 }
  0x7f   : > { %770 = vrot.lane.b32.xlu1 %v506_v52, %s2250_s25 }
  0x82   : > { %803 = vrot.lane.b32.xlu0 %v647_v42, %s2247_s22  ;;  %v534_v42 = vshll.u32 %v2496_v31, 16 }
  0x83   : > { %805 = vrot.lane.b32.xlu1 %v650_v57, %s2247_s22 }
  0x84   : > { %v712_v61 = vpop.permute.xlu1 %711  ;;  %v710_v63 = vpop.permute.xlu0 %709  ;;  %v536_v53 = vrot.slane %v534_v42, 1 }
  0x86   : > { %840 = vrot.lane.b32.xlu0 %v2440_v41, %s2251_s28 }
  0x87   : > { %842 = vrot.lane.b32.xlu1 %v2453_v51, %s2251_s28 }
  0x88   : > { %v792_v5 = vpop.permute.xlu0 %791 }
  0x89   : > { %v673_v7 = vpop.permute.xlu1 %672 }
  0x8a   : > { %887 = vrot.lane.b32.xlu0 %v506_v52, %s2252_s7 }
  0x8b   : > { %889 = vrot.lane.b32.xlu1 %v518_v6, %s2252_s7 }
  0x8c   : > { %v592_v10 = vpop.permute.xlu0 %591 }
  0x8d   : > { %v675_v12 = vpop.permute.xlu1 %674  ;;  %v944_v19 = vsel %vm942_vm3, %v2305_v3, %v592_v10  ;;  %v529_v3 = vrot.slane %v527_v23, 1  ;;  %v551_v23 = vshll.u32 %v2227_v17, 16 }
  0x8e   : > { %922 = vrot.lane.b32.xlu0 %v650_v57, %s2253_s10  ;;  %v977_v27 = vsel %vm975_vm4, %v944_v19, %v673_v7 }
  0x8f   : > { %607 = vrot.lane.b32.xlu1 %v506_v52, %s2249_s24  ;;  %v1010_v34 = vsel %vm1008_vm5, %v977_v27, %v710_v63  ;;  %v530_v39 = vsel %vm398_vm1, %v525_v29, %v529_v3  ;;  %v532_v52 = vshrl.u32 %v2496_v31, 16  ;;  %v541_v63 = vrot.slane %v539_v54, 1  ;;  %v2549_v29 = vld [vmem:[%s2293_s20 + $0x9c] sm:$0xff]  }
  0x90   : > { %v594_v14 = vpop.permute.xlu0 %593 }
  0x91   : > { %v794_v18 = vpop.permute.xlu1 %793  ;;  %v946_v26 = vsel %vm942_vm3, %v2299_v1, %v594_v14  ;;  %v659_v14 = vsel %vm623_vm0, %v657_v8, %v658_v9  ;;  %v663_v8 = vrot.slane %v2549_v29, 1 }
  0x92   : > { %924 = vrot.lane.b32.xlu0 %v653_v13, %s2253_s10  ;;  %v979_v32 = vsel %vm975_vm4, %v946_v26, %v675_v12  ;;  %v2536_v12 = vld [vmem:[%s2293_s20 + $0x90] sm:$0xff]  }
  0x93   : > { %609 = vrot.lane.b32.xlu1 %v518_v6, %s2249_s24  ;;  %v1012_v37 = vsel %vm1008_vm5, %v979_v32, %v712_v61  ;;  %v537_v61 = vor.u32 %v536_v53, %v532_v52  ;;  %v544_v21 = vshrl.u32 %v2536_v12, 16 }
  0x94   : > { %v757_v20 = vpop.permute.xlu0 %756 }
  0x95   : > { %v759_v24 = vpop.permute.xlu1 %758  ;;  %v1043_v1 = vsel %vm1041_vm6, %v1010_v34, %v757_v20  ;;  %v660_v34 = vrot.slane %v2536_v12, 1 }
  0x96   : > { %688 = vrot.lane.b32.xlu0 %v650_v57, %s2248_s23  ;;  %v1076_v44 = vsel %vm1074_vm7, %v1043_v1, %v792_v5  ;;  %v1045_v45 = vsel %vm1041_vm6, %v1012_v37, %v759_v24  ;;  %v661_v1 = vrot.slane %v2227_v17, 1 }
  0x97   : > { %690 = vrot.lane.b32.xlu1 %v653_v13, %s2248_s23  ;;  %v1078_v57 = vsel %vm1074_vm7, %v1045_v45, %v794_v18  ;;  %v546_v18 = vshll.u32 %v2536_v12, 16 }
  0x98   : > { %v829_v28 = vpop.permute.xlu0 %828 }
  0x99   : > { %v831_v33 = vpop.permute.xlu1 %830  ;;  %v1109_v46 = vsel %vm1107_vm8, %v1076_v44, %v829_v28  ;;  %v548_v22 = vrot.slane %v546_v18, 1  ;;  %v553_v28 = vrot.slane %v551_v23, 1  ;;  %v2231_v18 = vld [vmem:[%s2293_s20 + $0xb0] ss:$0 sps:$4 sm:$0x11]  }
  0x9a   : > { %725 = vrot.lane.b32.xlu0 %v2453_v51, %s2246_s21  ;;  %v1111_v58 = vsel %vm1107_vm8, %v1078_v57, %v831_v33 }
  0x9b   : > { %727 = vrot.lane.b32.xlu1 %v2478_v11, %s2246_s21  ;;  %v549_v27 = vor.u32 %v548_v22, %v544_v21 }
  0x9c   : > { %v876_v38 = vpop.permute.xlu0 %875 }
  0x9d   : > { %v878_v43 = vpop.permute.xlu1 %877  ;;  %v1142_v48 = vsel %vm1140_vm9, %v1109_v46, %v876_v38  ;;  %v554_v37 = vsel %vm398_vm1, %v549_v27, %v553_v28  ;;  %v2229_v38 = vld [vmem:[%s2293_s20 + $0xa4] ss:$0 sps:$4 sm:$0x11]   ;;  %v662_v46 = vsel %vm623_vm0, %v660_v34, %v661_v1 }
  0x9e   : > { %772 = vrot.lane.b32.xlu0 %v518_v6, %s2250_s25  ;;  %v1144_v59 = vsel %vm1140_vm9, %v1111_v58, %v878_v43  ;;  %v542_v6 = vsel %vm398_vm1, %v537_v61, %v541_v63  ;;  %v563_v53 = vshll.u32 %v2229_v38, 16  ;;  %v664_v9 = vrot.slane %v2229_v38, 1 }
  0x9f   : > { %774 = vrot.lane.b32.xlu1 %v530_v39, %s2250_s25 }
  0xa0   : > { %v911_v49 = vpop.permute.xlu0 %910  ;;  %v565_v63 = vrot.slane %v563_v53, 1 }
  0xa1   : > { %v596_v55 = vpop.permute.xlu1 %595  ;;  %v1175_v56 = vsel %vm1173_vm10, %v1142_v48, %v911_v49 }
  0xa2   : > { %807 = vrot.lane.b32.xlu0 %v653_v13, %s2247_s22  ;;  %2136 = vmatprep.mubr.msk.bf16.mxu0 %vm1242_vm11, %v1175_v56  ;;  %v948_v32 = vsel %vm942_vm3, %v2296_v0, %v596_v55 }
  0xa3   : > { %809 = vrot.lane.b32.xlu1 %v656_v47, %s2247_s22 }
  0xa4   : > { %v913_v60 = vpop.permute.xlu0 %912 }
  0xa5   : > { %v598_v2 = vpop.permute.xlu1 %597  ;;  %v1177_v4 = vsel %vm1173_vm10, %v1144_v59, %v913_v60 }
  0xa6   : > { %844 = vrot.lane.b32.xlu0 %v2478_v11, %s2251_s28  ;;  %2137 = vmatmul.mubr.msk.bf16.vlgmr.msra.gmra.mrb[0].mxu0 %vm1242_vm11, %v1177_v4  ;;  %v950_v42 = vsel %vm942_vm3, %v2325_v30, %v598_v2 }
  0xa7   : > { %846 = vrot.lane.b32.xlu1 %v2496_v31, %s2251_s28 }
  0xa8   : > { %v677_v5 = vpop.permute.xlu0 %676 }
  0xa9   : > { %v679_v7 = vpop.permute.xlu1 %678  ;;  %v981_v33 = vsel %vm975_vm4, %v948_v32, %v677_v5  ;;  %v2607_v32 = vld [vmem:[%s2293_s20 + $0xb4] sm:$0xff]  }
  0xaa   : > { %891 = vrot.lane.b32.xlu0 %v530_v39, %s2252_s7  ;;  %v983_v44 = vsel %vm975_vm4, %v950_v42, %v679_v7 }
  0xab   : > { %893 = vrot.lane.b32.xlu1 %v542_v6, %s2252_s7 }
  0xac   : > { %v714_v10 = vpop.permute.xlu0 %713 }
  0xad   : > { %v716_v13 = vpop.permute.xlu1 %715  ;;  %v1014_v35 = vsel %vm1008_vm5, %v981_v33, %v714_v10 }
  0xae   : > { %926 = vrot.lane.b32.xlu0 %v656_v47, %s2253_s10  ;;  %v1016_v48 = vsel %vm1008_vm5, %v983_v44, %v716_v13  ;;  %v2594_v13 = vld [vmem:[%s2293_s20 + $0xa8] sm:$0xff]  }
  0xaf   : > { %611 = vrot.lane.b32.xlu1 %v530_v39, %s2249_s24  ;;  %v558_v39 = vshll.u32 %v2549_v29, 16  ;;  %v568_v22 = vshrl.u32 %v2594_v13, 16 }
  0xb0   : > { %v761_v15 = vpop.permute.xlu0 %760 }
  0xb1   : > { %v763_v19 = vpop.permute.xlu1 %762  ;;  %v1047_v0 = vsel %vm1041_vm6, %v1014_v35, %v761_v15  ;;  %v560_v30 = vrot.slane %v558_v39, 1  ;;  %v665_v15 = vsel %vm623_vm0, %v663_v8, %v664_v9  ;;  %v666_v35 = vrot.slane %v2594_v13, 1 }
  0xb2   : > { %928 = vrot.lane.b32.xlu0 %v659_v14, %s2253_s10  ;;  %v1049_v54 = vsel %vm1041_vm6, %v1016_v48, %v763_v19  ;;  %v570_v19 = vshll.u32 %v2594_v13, 16  ;;  %v580_v48 = vshrl.u32 %v2607_v32, 16  ;;  %v669_v8 = vrot.slane %v2607_v32, 1 }
  0xb3   : > { %613 = vrot.lane.b32.xlu1 %v542_v6, %s2249_s24 }
  0xb4   : > { %v796_v20 = vpop.permute.xlu0 %795  ;;  %v572_v23 = vrot.slane %v570_v19, 1  ;;  %v2235_v19 = vld [vmem:[%s2293_s20 + $0xc8] ss:$0 sps:$4 sm:$0x11]  }
  0xb5   : > { %v798_v24 = vpop.permute.xlu1 %797  ;;  %v1080_v43 = vsel %vm1074_vm7, %v1047_v0, %v796_v20  ;;  %v2233_v0 = vld [vmem:[%s2293_s20 + $0xbc] ss:$0 sps:$4 sm:$0x11]  }
  0xb6   : > { %692 = vrot.lane.b32.xlu0 %v656_v47, %s2248_s23  ;;  %v556_v47 = vshrl.u32 %v2549_v29, 16  ;;  %v1082_v57 = vsel %vm1074_vm7, %v1049_v54, %v798_v24  ;;  %v575_v24 = vshll.u32 %v2231_v18, 16  ;;  %v573_v28 = vor.u32 %v572_v23, %v568_v22 }
  0xb7   : > { %694 = vrot.lane.b32.xlu1 %v659_v14, %s2248_s23  ;;  %v587_v53 = vshll.u32 %v2233_v0, 16  ;;  %v670_v9 = vrot.slane %v2233_v0, 1 }
  0xb8   : > { %v833_v26 = vpop.permute.xlu0 %832  ;;  %v561_v61 = vor.u32 %v560_v30, %v556_v47 }
  0xb9   : > { %v835_v3 = vpop.permute.xlu1 %834  ;;  %v1113_v45 = vsel %vm1107_vm8, %v1080_v43, %v833_v26 }
  0xba   : > { %729 = vrot.lane.b32.xlu0 %v2496_v31, %s2246_s21  ;;  %v1115_v58 = vsel %vm1107_vm8, %v1082_v57, %v835_v3  ;;  %v577_v3 = vrot.slane %v575_v24, 1 }
  0xbb   : > { %731 = vrot.lane.b32.xlu1 %v2536_v12, %s2246_s21 }
  0xbc   : > { %v880_v36 = vpop.permute.xlu0 %879  ;;  %v578_v39 = vsel %vm398_vm1, %v573_v28, %v577_v3 }
  0xbd   : > { %v882_v40 = vpop.permute.xlu1 %881  ;;  %v1146_v49 = vsel %vm1140_vm9, %v1113_v45, %v880_v36  ;;  %v667_v36 = vrot.slane %v2231_v18, 1 }
  0xbe   : > { %776 = vrot.lane.b32.xlu0 %v542_v6, %s2250_s25  ;;  %v1148_v59 = vsel %vm1140_vm9, %v1115_v58, %v882_v40  ;;  %v566_v6 = vsel %vm398_vm1, %v561_v61, %v565_v63  ;;  %v582_v40 = vshll.u32 %v2607_v32, 16  ;;  %v589_v63 = vrot.slane %v587_v53, 1 }
  0xbf   : > { %778 = vrot.lane.b32.xlu1 %v554_v37, %s2250_s25  ;;  %v668_v47 = vsel %vm623_vm0, %v666_v35, %v667_v36 }
  0xc0   : > { %v915_v52 = vpop.permute.xlu0 %914 }
  0xc1   : > { %v600_v55 = vpop.permute.xlu1 %599  ;;  %v1179_v56 = vsel %vm1173_vm10, %v1146_v49, %v915_v52 }
  0xc2   : > { %811 = vrot.lane.b32.xlu0 %v659_v14, %s2247_s22  ;;  %2140 = vmatprep.mubr.msk.bf16.mxu0 %vm1242_vm11, %v1179_v56  ;;  %v952_v34 = vsel %vm942_vm3, %v2358_v50, %v600_v55 }
  0xc3   : > { %813 = vrot.lane.b32.xlu1 %v662_v46, %s2247_s22 }
  0xc4   : > { %v917_v60 = vpop.permute.xlu0 %916 }
  0xc5   : > { %v602_v2 = vpop.permute.xlu1 %601  ;;  %v1181_v4 = vsel %vm1173_vm10, %v1148_v59, %v917_v60 }
  0xc6   : > { %848 = vrot.lane.b32.xlu0 %v2536_v12, %s2251_s28  ;;  %2141 = vmatmul.mubr.msk.bf16.gmra.mrb[4].mxu0 %vm1242_vm11, %v1181_v4  ;;  %v954_v43 = vsel %vm942_vm3, %v2377_v62, %v602_v2  ;;  %v584_v62 = vrot.slane %v582_v40, 1 }
  0xc7   : > { %850 = vrot.lane.b32.xlu1 %v2549_v29, %s2251_s28 }
  0xc8   : > { %v681_v5 = vpop.permute.xlu0 %680  ;;  %v585_v61 = vor.u32 %v584_v62, %v580_v48 }
  0xc9   : > { %v683_v7 = vpop.permute.xlu1 %682  ;;  %v985_v1 = vsel %vm975_vm4, %v952_v34, %v681_v5  ;;  %v2236_v34 = vld [vmem:[%s2293_s20 + $0xcc] sm:$0xff]  }
  0xca   : > { %895 = vrot.lane.b32.xlu0 %v554_v37, %s2252_s7  ;;  %v987_v45 = vsel %vm975_vm4, %v954_v43, %v683_v7 }
  0xcb   : > { %897 = vrot.lane.b32.xlu1 %v566_v6, %s2252_s7 }
  0xcc   : > { %v718_v10 = vpop.permute.xlu0 %717 }
  0xcd   : > { %v720_v14 = vpop.permute.xlu1 %719 }
  0xce   : > { %930 = vrot.lane.b32.xlu0 %v662_v46, %s2253_s10  ;;  %v1020_v49 = vsel %vm1008_vm5, %v987_v45, %v720_v14  ;;  %v2652_v14 = vld [vmem:[%s2293_s20 + $0xc0] sm:$0xff]  }
  0xcf   : > { %615 = vrot.lane.b32.xlu1 %v554_v37, %s2249_s24  ;;  %v1018_v37 = vsel %vm1008_vm5, %v985_v1, %v718_v10  ;;  %v745_v23 = vshrl.u32 %v2652_v14, 16 }
  0xd0   : > { %v765_v17 = vpop.permute.xlu0 %764 }
  0xd1   : > { %v767_v20 = vpop.permute.xlu1 %766  ;;  %v1051_v50 = vsel %vm1041_vm6, %v1018_v37, %v765_v17  ;;  %v671_v17 = vsel %vm623_vm0, %v669_v8, %v670_v9  ;;  %v788_v37 = vrot.slane %v2652_v14, 1 }
  0xd2   : > { %932 = vrot.lane.b32.xlu0 %v665_v15, %s2253_s10  ;;  %v1053_v54 = vsel %vm1041_vm6, %v1020_v49, %v767_v20  ;;  %v747_v20 = vshll.u32 %v2652_v14, 16  ;;  %v864_v49 = vshrl.u32 %v2236_v34, 16 }
  0xd3   : > { %617 = vrot.lane.b32.xlu1 %v566_v6, %s2249_s24 }
  0xd4   : > { %v800_v21 = vpop.permute.xlu0 %799  ;;  %v749_v24 = vrot.slane %v747_v20, 1 }
  0xd5   : > { %v802_v26 = vpop.permute.xlu1 %801  ;;  %v1084_v44 = vsel %vm1074_vm7, %v1051_v50, %v800_v21  ;;  %v2237_v50 = vld [vmem:[%s2293_s20 + $0xd4] ss:$0 sps:$4 sm:$0x11]  }
  0xd6   : > { %696 = vrot.lane.b32.xlu0 %v662_v46, %s2248_s23  ;;  %v1086_v57 = vsel %vm1074_vm7, %v1053_v54, %v802_v26  ;;  %v752_v26 = vshll.u32 %v2235_v19, 16  ;;  %v750_v3 = vor.u32 %v749_v24, %v745_v23  ;;  %v908_v8 = vrot.slane %v2237_v50, 1 }
  0xd7   : > { %698 = vrot.lane.b32.xlu1 %v665_v15, %s2248_s23 }
  0xd8   : > { %v837_v27 = vpop.permute.xlu0 %836 }
  0xd9   : > { %v839_v33 = vpop.permute.xlu1 %838  ;;  %v1117_v46 = vsel %vm1107_vm8, %v1084_v44, %v837_v27 }
  0xda   : > { %733 = vrot.lane.b32.xlu0 %v2549_v29, %s2246_s21  ;;  %v1119_v58 = vsel %vm1107_vm8, %v1086_v57, %v839_v33  ;;  %v754_v33 = vrot.slane %v752_v26, 1 }
  0xdb   : > { %735 = vrot.lane.b32.xlu1 %v2594_v13, %s2246_s21 }
  0xdc   : > { %v884_v38 = vpop.permute.xlu0 %883  ;;  %v755_v40 = vsel %vm398_vm1, %v750_v3, %v754_v33 }
  0xdd   : > { %v886_v42 = vpop.permute.xlu1 %885  ;;  %v1150_v52 = vsel %vm1140_vm9, %v1117_v46, %v884_v38  ;;  %v789_v38 = vrot.slane %v2235_v19, 1 }
  0xde   : > { %780 = vrot.lane.b32.xlu0 %v566_v6, %s2250_s25  ;;  %v1152_v59 = vsel %vm1140_vm9, %v1119_v58, %v886_v42  ;;  %v590_v6 = vsel %vm398_vm1, %v585_v61, %v589_v63  ;;  %v866_v42 = vshll.u32 %v2236_v34, 16 }
  0xdf   : > { %782 = vrot.lane.b32.xlu1 %v578_v39, %s2250_s25  ;;  %v790_v48 = vsel %vm623_vm0, %v788_v37, %v789_v38 }
  0xe0   : > { %v919_v30 = vpop.permute.xlu0 %918  ;;  %v868_v53 = vrot.slane %v866_v42, 1 }
  0xe1   : > { %v604_v55 = vpop.permute.xlu1 %603  ;;  %v1183_v56 = vsel %vm1173_vm10, %v1150_v52, %v919_v30 }
  0xe2   : > { %815 = vrot.lane.b32.xlu0 %v665_v15, %s2247_s22  ;;  %2144 = vmatprep.mubr.msk.bf16.mxu0 %vm1242_vm11, %v1183_v56  ;;  %v956_v35 = vsel %vm942_vm3, %v2402_v16, %v604_v55  ;;  %v869_v61 = vor.u32 %v868_v53, %v864_v49 }
  0xe3   : > { %817 = vrot.lane.b32.xlu1 %v668_v47, %s2247_s22 }
  0xe4   : > { %v921_v60 = vpop.permute.xlu0 %920 }
  0xe5   : > { %v606_v2 = vpop.permute.xlu1 %605  ;;  %v1185_v4 = vsel %vm1173_vm10, %v1152_v59, %v921_v60 }
  0xe6   : > { %852 = vrot.lane.b32.xlu0 %v2594_v13, %s2251_s28  ;;  %2145 = vmatmul.mubr.msk.bf16.gmra.mrb[8].mxu0 %vm1242_vm11, %v1185_v4  ;;  %v958_v44 = vsel %vm942_vm3, %v2415_v25, %v606_v2  ;;  %v871_v25 = vshll.u32 %v2237_v50, 16 }
  0xe7   : > { %854 = vrot.lane.b32.xlu1 %v2607_v32, %s2251_s28 }
  0xe8   : > { %v685_v5 = vpop.permute.xlu0 %684  ;;  %v873_v63 = vrot.slane %v871_v25, 1 }
  0xe9   : > { %v687_v7 = vpop.permute.xlu1 %686  ;;  %v989_v36 = vsel %vm975_vm4, %v956_v35, %v685_v5 }
  0xea   : > { %899 = vrot.lane.b32.xlu0 %v578_v39, %s2252_s7  ;;  %v991_v46 = vsel %vm975_vm4, %v958_v44, %v687_v7  ;;  %v907_v7 = vrot.slane %v2236_v34, 1 }
  0xeb   : > { %901 = vrot.lane.b32.xlu1 %v590_v6, %s2252_s7 }
  0xec   : > { %v722_v10 = vpop.permute.xlu0 %721 }
  0xed   : > { %v724_v15 = vpop.permute.xlu1 %723 }
  0xee   : > { %934 = vrot.lane.b32.xlu0 %v668_v47, %s2253_s10  ;;  %v1024_v52 = vsel %vm1008_vm5, %v991_v46, %v724_v15  ;;  %v909_v15 = vsel %vm623_vm0, %v907_v7, %v908_v8 }
  0xef   : > { %619 = vrot.lane.b32.xlu1 %v578_v39, %s2249_s24  ;;  %v1022_v39 = vsel %vm1008_vm5, %v989_v36, %v722_v10 }
  0xf0   : > { %v769_v18 = vpop.permute.xlu0 %768 }
  0xf1   : > { %v771_v21 = vpop.permute.xlu1 %770  ;;  %v1055_v16 = vsel %vm1041_vm6, %v1022_v39, %v769_v18 }
  0xf2   : > { %936 = vrot.lane.b32.xlu0 %v671_v17, %s2253_s10  ;;  %v1057_v54 = vsel %vm1041_vm6, %v1024_v52, %v771_v21 }
  0xf3   : > { %621 = vrot.lane.b32.xlu1 %v590_v6, %s2249_s24  ;;  %s214_s24 = scalar_lea.vmem %s3046_s4, %s3048_s16 }
  0xf4   : > { %v804_v22 = vpop.permute.xlu0 %803 }
  0xf5   : > { %v806_v27 = vpop.permute.xlu1 %805  ;;  %v1088_v45 = vsel %vm1074_vm7, %v1055_v16, %v804_v22 }
  0xf6   : > { %700 = vrot.lane.b32.xlu0 %v668_v47, %s2248_s23  ;;  %v1090_v57 = vsel %vm1074_vm7, %v1057_v54, %v806_v27 }
  0xf7   : > { %702 = vrot.lane.b32.xlu1 %v671_v17, %s2248_s23 }
  0xf8   : > { %v841_v28 = vpop.permute.xlu0 %840 }
  0xf9   : > { %v843_v1 = vpop.permute.xlu1 %842  ;;  %v1121_v47 = vsel %vm1107_vm8, %v1088_v45, %v841_v28 }
  0xfa   : > { %737 = vrot.lane.b32.xlu0 %v2607_v32, %s2246_s21  ;;  %v1123_v58 = vsel %vm1107_vm8, %v1090_v57, %v843_v1 }
  0xfb   : > { %739 = vrot.lane.b32.xlu1 %v2652_v14, %s2246_s21  ;;  %s211_s21 = scalar_lea.vmem %s3045_s3, %s3048_s16 }
  0xfc   : > { %v888_v0 = vpop.permute.xlu0 %887 }
  0xfd   : > { %v890_v43 = vpop.permute.xlu1 %889  ;;  %v1154_v30 = vsel %vm1140_vm9, %v1121_v47, %v888_v0 }
  0xfe   : > { %784 = vrot.lane.b32.xlu0 %v590_v6, %s2250_s25  ;;  %v1156_v59 = vsel %vm1140_vm9, %v1123_v58, %v890_v43  ;;  %v874_v6 = vsel %vm398_vm1, %v869_v61, %v873_v63 }
  0xff   : > { %786 = vrot.lane.b32.xlu1 %v755_v40, %s2250_s25 }
 0x100   : > { %v923_v62 = vpop.permute.xlu0 %922 }
 0x101   : > { %v608_v55 = vpop.permute.xlu1 %607  ;;  %v1187_v56 = vsel %vm1173_vm10, %v1154_v30, %v923_v62 }
 0x102   : > { %819 = vrot.lane.b32.xlu0 %v671_v17, %s2247_s22  ;;  %2148 = vmatprep.mubr.msk.bf16.mxu0 %vm1242_vm11, %v1187_v56  ;;  %v960_v23 = vsel %vm942_vm3, %v2440_v41, %v608_v55 }
 0x103   : > { %821 = vrot.lane.b32.xlu1 %v790_v48, %s2247_s22 }
 0x104   : > { %v925_v60 = vpop.permute.xlu0 %924 }
 0x105   : > { %v610_v2 = vpop.permute.xlu1 %609  ;;  %v1189_v4 = vsel %vm1173_vm10, %v1156_v59, %v925_v60 }
 0x106   : > { %856 = vrot.lane.b32.xlu0 %v2652_v14, %s2251_s28  ;;  %2149 = vmatmul.mubr.msk.bf16.gmra.mrb[12].mxu0 %vm1242_vm11, %v1189_v4  ;;  %v962_v33 = vsel %vm942_vm3, %v2453_v51, %v610_v2 }
 0x107   : > { %858 = vrot.lane.b32.xlu1 %v2236_v34, %s2251_s28 }
 0x108   : > { %v689_v5 = vpop.permute.xlu0 %688 }
 0x109   : > { %v691_v9 = vpop.permute.xlu1 %690  ;;  %v993_v24 = vsel %vm975_vm4, %v960_v23, %v689_v5 }
 0x10a   : > { %903 = vrot.lane.b32.xlu0 %v755_v40, %s2252_s7  ;;  %v995_v1 = vsel %vm975_vm4, %v962_v33, %v691_v9 }
 0x10b   : > { %905 = vrot.lane.b32.xlu1 %v874_v6, %s2252_s7 }
 0x10c   : > { %v726_v10 = vpop.permute.xlu0 %725 }
 0x10d   : > { %v728_v17 = vpop.permute.xlu1 %727  ;;  %v1026_v26 = vsel %vm1008_vm5, %v993_v24, %v726_v10 }
 0x10e   : > { %938 = vrot.lane.b32.xlu0 %v790_v48, %s2253_s10  ;;  %v1028_v36 = vsel %vm1008_vm5, %v995_v1, %v728_v17 }
 0x10f   : > { %940 = vrot.lane.b32.xlu1 %v909_v15, %s2253_s10 }
 0x110   : > { %v773_v14 = vpop.permute.xlu0 %772 }
 0x111   : > { %v775_v18 = vpop.permute.xlu1 %774  ;;  %v1059_v28 = vsel %vm1041_vm6, %v1026_v26, %v773_v14 }
 0x112   : > { %v1061_v38 = vsel %vm1041_vm6, %v1028_v36, %v775_v18 }
 0x114   : > { %v808_v19 = vpop.permute.xlu0 %807 }
 0x115   : > { %v810_v20 = vpop.permute.xlu1 %809  ;;  %v1092_v34 = vsel %vm1074_vm7, %v1059_v28, %v808_v19 }
 0x116   : > { %v1094_v40 = vsel %vm1074_vm7, %v1061_v38, %v810_v20 }
 0x118   : > { %v845_v21 = vpop.permute.xlu0 %844 }
 0x119   : > { %v847_v22 = vpop.permute.xlu1 %846  ;;  %v1125_v35 = vsel %vm1107_vm8, %v1092_v34, %v845_v21 }
 0x11a   : > { %v1127_v51 = vsel %vm1107_vm8, %v1094_v40, %v847_v22 }
 0x11c   : > { %v892_v27 = vpop.permute.xlu0 %891 }
 0x11d   : > { %v894_v3 = vpop.permute.xlu1 %893  ;;  %v1158_v41 = vsel %vm1140_vm9, %v1125_v35, %v892_v27 }
 0x11e   : > { %v1160_v50 = vsel %vm1140_vm9, %v1127_v51, %v894_v3 }
 0x120   : > { %v927_v37 = vpop.permute.xlu0 %926 }
 0x121   : > { %v612_v39 = vpop.permute.xlu1 %611  ;;  %v1191_v0 = vsel %vm1173_vm10, %v1158_v41, %v927_v37 }
 0x122   : > { %2152 = vmatprep.mubr.msk.bf16.mxu1 %vm1242_vm11, %v1191_v0  ;;  %v964_v25 = vsel %vm942_vm3, %v2478_v11, %v612_v39 }
 0x124   : > { %v929_v42 = vpop.permute.xlu0 %928 }
 0x125   : > { %v614_v16 = vpop.permute.xlu1 %613  ;;  %v1193_v43 = vsel %vm1173_vm10, %v1160_v50, %v929_v42 }
 0x126   : > { %2153 = vmatmul.mubr.msk.bf16.vlgmr.msra.gmra.mrb[0].mxu1 %vm1242_vm11, %v1193_v43  ;;  %v966_v59 = vsel %vm942_vm3, %v2496_v31, %v614_v16 }
 0x128   : > { %v693_v44 = vpop.permute.xlu0 %692 }
 0x129   : > { %v695_v45 = vpop.permute.xlu1 %694  ;;  %v997_v54 = vsel %vm975_vm4, %v964_v25, %v693_v44 }
 0x12a   : > { %v999_v61 = vsel %vm975_vm4, %v966_v59, %v695_v45 }
 0x12c   : > { %v730_v46 = vpop.permute.xlu0 %729 }
 0x12d   : > { %v732_v47 = vpop.permute.xlu1 %731  ;;  %v1030_v55 = vsel %vm1008_vm5, %v997_v54, %v730_v46 }
 0x12e   : > { %v1032_v2 = vsel %vm1008_vm5, %v999_v61, %v732_v47 }
 0x130   : > { %v777_v48 = vpop.permute.xlu0 %776 }
 0x131   : > { %v779_v49 = vpop.permute.xlu1 %778  ;;  %v1063_v57 = vsel %vm1041_vm6, %v1030_v55, %v777_v48 }
 0x132   : > { %v1065_v5 = vsel %vm1041_vm6, %v1032_v2, %v779_v49 }
 0x134   : > { %v812_v52 = vpop.permute.xlu0 %811 }
 0x135   : > { %v814_v30 = vpop.permute.xlu1 %813  ;;  %v1096_v60 = vsel %vm1074_vm7, %v1063_v57, %v812_v52 }
 0x136   : > { %v1098_v8 = vsel %vm1074_vm7, %v1065_v5, %v814_v30 }
 0x138   : > { %v849_v62 = vpop.permute.xlu0 %848 }
 0x139   : > { %v851_v53 = vpop.permute.xlu1 %850  ;;  %v1129_v63 = vsel %vm1107_vm8, %v1096_v60, %v849_v62 }
 0x13a   : > { %v1131_v31 = vsel %vm1107_vm8, %v1098_v8, %v851_v53 }
 0x13c   : > { %v896_v56 = vpop.permute.xlu0 %895 }
 0x13d   : > { %v898_v58 = vpop.permute.xlu1 %897  ;;  %v1162_v11 = vsel %vm1140_vm9, %v1129_v63, %v896_v56 }
 0x13e   : > { %v1164_v9 = vsel %vm1140_vm9, %v1131_v31, %v898_v58 }
 0x140   : > { %v931_v4 = vpop.permute.xlu0 %930 }
 0x141   : > { %v616_v6 = vpop.permute.xlu1 %615  ;;  %v1195_v7 = vsel %vm1173_vm10, %v1162_v11, %v931_v4 }
 0x142   : > { %2156 = vmatprep.mubr.msk.bf16.mxu1 %vm1242_vm11, %v1195_v7  ;;  %v968_v28 = vsel %vm942_vm3, %v2536_v12, %v616_v6 }
 0x144   : > { %v933_v10 = vpop.permute.xlu0 %932 }
 0x145   : > { %v618_v15 = vpop.permute.xlu1 %617  ;;  %v1197_v17 = vsel %vm1173_vm10, %v1164_v9, %v933_v10 }
 0x146   : > { %2157 = vmatmul.mubr.msk.bf16.gmra.mrb[4].mxu1 %vm1242_vm11, %v1197_v17  ;;  %v970_v36 = vsel %vm942_vm3, %v2549_v29, %v618_v15 }
 0x148   : > { %v697_v14 = vpop.permute.xlu0 %696 }
 0x149   : > { %v699_v18 = vpop.permute.xlu1 %698  ;;  %v1001_v3 = vsel %vm975_vm4, %v968_v28, %v697_v14 }
 0x14a   : > { %v1003_v37 = vsel %vm975_vm4, %v970_v36, %v699_v18 }
 0x14c   : > { %v734_v19 = vpop.permute.xlu0 %733 }
 0x14d   : > { %v736_v20 = vpop.permute.xlu1 %735  ;;  %v1034_v33 = vsel %vm1008_vm5, %v1001_v3, %v734_v19 }
 0x14e   : > { %v1036_v39 = vsel %vm1008_vm5, %v1003_v37, %v736_v20 }
 0x150   : > { %v781_v21 = vpop.permute.xlu0 %780 }
 0x151   : > { %v783_v22 = vpop.permute.xlu1 %782  ;;  %v1067_v1 = vsel %vm1041_vm6, %v1034_v33, %v781_v21 }
 0x152   : > { %v1069_v40 = vsel %vm1041_vm6, %v1036_v39, %v783_v22 }
 0x154   : > { %v816_v23 = vpop.permute.xlu0 %815 }
 0x155   : > { %v818_v24 = vpop.permute.xlu1 %817  ;;  %v1100_v41 = vsel %vm1074_vm7, %v1067_v1, %v816_v23 }
 0x156   : > { %v1102_v42 = vsel %vm1074_vm7, %v1069_v40, %v818_v24 }
 0x158   : > { %v853_v26 = vpop.permute.xlu0 %852 }
 0x159   : > { %v855_v27 = vpop.permute.xlu1 %854  ;;  %v1133_v38 = vsel %vm1107_vm8, %v1100_v41, %v853_v26 }
 0x15a   : > { %v1135_v29 = vsel %vm1107_vm8, %v1102_v42, %v855_v27 }
 0x15c   : > { %v900_v34 = vpop.permute.xlu0 %899 }
 0x15d   : > { %v902_v35 = vpop.permute.xlu1 %901  ;;  %v1166_v12 = vsel %vm1140_vm9, %v1133_v38, %v900_v34 }
 0x15e   : > { %v1168_v16 = vsel %vm1140_vm9, %v1135_v29, %v902_v35 }
 0x160   : > { %v935_v0 = vpop.permute.xlu0 %934 }
 0x161   : > { %v620_v51 = vpop.permute.xlu1 %619  ;;  %v1199_v50 = vsel %vm1173_vm10, %v1166_v12, %v935_v0 }
 0x162   : > { %2160 = vmatprep.mubr.msk.bf16.mxu1 %vm1242_vm11, %v1199_v50  ;;  %v972_v56 = vsel %vm942_vm3, %v2594_v13, %v620_v51 }
 0x164   : > { %v937_v43 = vpop.permute.xlu0 %936 }
 0x165   : > { %v622_v44 = vpop.permute.xlu1 %621  ;;  %v1201_v45 = vsel %vm1173_vm10, %v1168_v16, %v937_v43 }
 0x166   : > { %2161 = vmatmul.mubr.msk.bf16.gmra.mrb[8].mxu1 %vm1242_vm11, %v1201_v45  ;;  %v974_v58 = vsel %vm942_vm3, %v2607_v32, %v622_v44 }
 0x168   : > { %v701_v46 = vpop.permute.xlu0 %700 }
 0x169   : > { %v703_v47 = vpop.permute.xlu1 %702  ;;  %v1005_v59 = vsel %vm975_vm4, %v972_v56, %v701_v46 }
 0x16a   : > { %v1007_v61 = vsel %vm975_vm4, %v974_v58, %v703_v47 }
 0x16c   : > { %v738_v48 = vpop.permute.xlu0 %737 }
 0x16d   : > { %v740_v49 = vpop.permute.xlu1 %739  ;;  %v1038_v63 = vsel %vm1008_vm5, %v1005_v59, %v738_v48 }
 0x16e   : > { %v1040_v32 = vsel %vm1008_vm5, %v1007_v61, %v740_v49 }
 0x170   : > { %v785_v52 = vpop.permute.xlu0 %784 }
 0x171   : > { %v787_v30 = vpop.permute.xlu1 %786  ;;  %v1071_v4 = vsel %vm1041_vm6, %v1038_v63, %v785_v52 }
 0x172   : > { %v1073_v7 = vsel %vm1041_vm6, %v1040_v32, %v787_v30 }
 0x174   : > { %v820_v62 = vpop.permute.xlu0 %819 }
 0x175   : > { %v822_v53 = vpop.permute.xlu1 %821  ;;  %v1104_v8 = vsel %vm1074_vm7, %v1071_v4, %v820_v62 }
 0x176   : > { %v1106_v31 = vsel %vm1074_vm7, %v1073_v7, %v822_v53 }
 0x178   : > { %v857_v25 = vpop.permute.xlu0 %856 }
 0x179   : > { %v859_v54 = vpop.permute.xlu1 %858  ;;  %v2138_v55 = vpop.f32.mrb[0].mxu0  ;;  %v1137_v9 = vsel %vm1107_vm8, %v1104_v8, %v857_v25 }
 0x17a   : > { %v1313_v57 = vpop.f32.mrb[1].mxu0  ;;  %v1139_v10 = vsel %vm1107_vm8, %v1106_v31, %v859_v54 }
 0x17b   : > { %v2139_v60 = vpop.f32.mrb[2].mxu0 }
 0x17c   : > { %v2779_v2 = vpack.c.bf16 %v2139_v60, %v2138_v55  ;;  %v1316_v13 = vpop.f32.mrb[3].mxu0  ;;  %v904_v11 = vpop.permute.xlu0 %903 }
 0x17d   : > { %v906_v5 = vpop.permute.xlu1 %905  ;;  %v2783_v6 = vpack.c.bf16 %v1316_v13, %v1313_v57  ;;  %v1170_v15 = vsel %vm1140_vm9, %v1137_v9, %v904_v11 }
 0x17e   : > { %2090 = vst [vmem:[%s2775_s18 + $0x8] sm:$0xff] %v2779_v2   ;;  %v1172_v14 = vsel %vm1140_vm9, %v1139_v10, %v906_v5  ;;  %v1602_v50 = vunpack.c.l.bf16 %v2779_v2  ;;  %v1603_v29 = vunpack.c.h.bf16 %v2779_v2 }
 0x17f   : > { %2014 = vst [vmem:[%s2775_s18] sm:$0xff] %v2783_v6   ;;  %v1600_v0 = vunpack.c.l.bf16 %v2783_v6  ;;  %v1601_v40 = vunpack.c.h.bf16 %v2783_v6 }
 0x180   : > { %v939_v17 = vpop.permute.xlu0 %938 }
 0x181   : > { %v941_v18 = vpop.permute.xlu1 %940  ;;  %v1203_v19 = vsel %vm1173_vm10, %v1170_v15, %v939_v17  ;;  %v1632_v51 = vadd.f32 %v1601_v40, %v1600_v0 }
 0x182   : > { %v1205_v20 = vsel %vm1173_vm10, %v1172_v14, %v941_v18  ;;  %2164 = vmatprep.mubr.msk.bf16.mxu1 %vm1242_vm11, %v1203_v19 }
 0x183   : > { %2165 = vmatmul.mubr.msk.bf16.gmra.mrb[12].mxu1 %vm1242_vm11, %v1205_v20  ;;  %v1633_v42 = vadd.f32 %v1632_v51, %v1602_v50 }
 0x185   : > { %v1634_v43 = vadd.f32 %v1633_v42, %v1603_v29 }
 0x199   : > { %v2142_v21 = vpop.f32.mrb[4].mxu0 }
 0x19a   : > { %v1329_v22 = vpop.f32.mrb[5].mxu0 }
 0x19b   : > { %v2143_v23 = vpop.f32.mrb[6].mxu0 }
 0x19c   : > { %v2800_v24 = vpack.c.bf16 %v2143_v23, %v2142_v21  ;;  %v1332_v26 = vpop.f32.mrb[7].mxu0 }
 0x19d   : > { %v2802_v27 = vpack.c.bf16 %v1332_v26, %v1329_v22 }
 0x19e   : > { %2092 = vst [vmem:[%s2775_s18 + $0x18] sm:$0xff] %v2800_v24   ;;  %v1606_v53 = vunpack.c.l.bf16 %v2800_v24  ;;  %v1607_v54 = vunpack.c.h.bf16 %v2800_v24 }
 0x19f   : > { %2091 = vst [vmem:[%s2775_s18 + $0x10] sm:$0xff] %v2802_v27   ;;  %v1604_v16 = vunpack.c.l.bf16 %v2802_v27  ;;  %v1605_v52 = vunpack.c.h.bf16 %v2802_v27 }
 0x1a1   : > { %v1635_v46 = vadd.f32 %v1634_v43, %v1604_v16 }
 0x1a3   : > { %v1636_v62 = vadd.f32 %v1635_v46, %v1605_v52 }
 0x1a5   : > { %v1637_v25 = vadd.f32 %v1636_v62, %v1606_v53 }
 0x1a7   : > { %v1638_v56 = vadd.f32 %v1637_v25, %v1607_v54 }
 0x1b9   : > { %v2146_v28 = vpop.f32.mrb[8].mxu0 }
 0x1ba   : > { %v1345_v3 = vpop.f32.mrb[9].mxu0 }
 0x1bb   : > { %v2147_v33 = vpop.f32.mrb[10].mxu0 }
 0x1bc   : > { %v2808_v34 = vpack.c.bf16 %v2147_v33, %v2146_v28  ;;  %v1348_v1 = vpop.f32.mrb[11].mxu0 }
 0x1bd   : > { %v2810_v35 = vpack.c.bf16 %v1348_v1, %v1345_v3 }
 0x1be   : > { %2094 = vst [vmem:[%s2775_s18 + $0x28] sm:$0xff] %v2808_v34   ;;  %v1610_v60 = vunpack.c.l.bf16 %v2808_v34  ;;  %v1611_v63 = vunpack.c.h.bf16 %v2808_v34 }
 0x1bf   : > { %2093 = vst [vmem:[%s2775_s18 + $0x20] sm:$0xff] %v2810_v35   ;;  %v1608_v55 = vunpack.c.l.bf16 %v2810_v35  ;;  %v1609_v58 = vunpack.c.h.bf16 %v2810_v35 }
 0x1c1   : > { %v1639_v57 = vadd.f32 %v1638_v56, %v1608_v55 }
 0x1c3   : > { %v1640_v59 = vadd.f32 %v1639_v57, %v1609_v58 }
 0x1c5   : > { %v1641_v61 = vadd.f32 %v1640_v59, %v1610_v60 }
 0x1c7   : > { %v1642_v11 = vadd.f32 %v1641_v61, %v1611_v63 }
 0x1d9   : > { %v2150_v36 = vpop.f32.mrb[12].mxu0 }
 0x1da   : > { %v1361_v41 = vpop.f32.mrb[13].mxu0 }
 0x1db   : > { %v2151_v37 = vpop.f32.mrb[14].mxu0 }
 0x1dc   : > { %v2816_v38 = vpack.c.bf16 %v2151_v37, %v2150_v36  ;;  %v1364_v39 = vpop.f32.mrb[15].mxu0 }
 0x1dd   : > { %v2818_v12 = vpack.c.bf16 %v1364_v39, %v1361_v41 }
 0x1de   : > { %2096 = vst [vmem:[%s2775_s18 + $0x38] sm:$0xff] %v2816_v38   ;;  %v1614_v15 = vunpack.c.l.bf16 %v2816_v38  ;;  %v1615_v18 = vunpack.c.h.bf16 %v2816_v38 }
 0x1df   : > { %2095 = vst [vmem:[%s2775_s18 + $0x30] sm:$0xff] %v2818_v12   ;;  %v1612_v13 = vunpack.c.l.bf16 %v2818_v12  ;;  %v1613_v4 = vunpack.c.h.bf16 %v2818_v12 }
 0x1e1   : > { %v1643_v32 = vadd.f32 %v1642_v11, %v1612_v13 }
 0x1e3   : > { %v1644_v8 = vadd.f32 %v1643_v32, %v1613_v4 }
 0x1e5   : > { %v1645_v14 = vadd.f32 %v1644_v8, %v1614_v15 }
 0x1e7   : > { %v1646_v20 = vadd.f32 %v1645_v14, %v1615_v18 }
 0x1f9   : > { %v2154_v44 = vpop.f32.mrb[0].mxu1 }
 0x1fa   : > { %v1377_v45 = vpop.f32.mrb[1].mxu1 }
 0x1fb   : > { %v2155_v47 = vpop.f32.mrb[2].mxu1 }
 0x1fc   : > { %v2839_v48 = vpack.c.bf16 %v2155_v47, %v2154_v44  ;;  %v1380_v49 = vpop.f32.mrb[3].mxu1 }
 0x1fd   : > { %v2842_v30 = vpack.c.bf16 %v1380_v49, %v1377_v45 }
 0x1fe   : > { %2098 = vst [vmem:[%s2775_s18 + $0x48] sm:$0xff] %v2839_v48   ;;  %v1618_v26 = vunpack.c.l.bf16 %v2839_v48  ;;  %v1619_v3 = vunpack.c.h.bf16 %v2839_v48 }
 0x1ff   : > { %2097 = vst [vmem:[%s2775_s18 + $0x40] sm:$0xff] %v2842_v30   ;;  %v1616_v19 = vunpack.c.l.bf16 %v2842_v30  ;;  %v1617_v22 = vunpack.c.h.bf16 %v2842_v30 }
 0x201   : > { %v1647_v21 = vadd.f32 %v1646_v20, %v1616_v19 }
 0x203   : > { %v1648_v23 = vadd.f32 %v1647_v21, %v1617_v22 }
 0x205   : > { %v1649_v28 = vadd.f32 %v1648_v23, %v1618_v26 }
 0x207   : > { %v1650_v1 = vadd.f32 %v1649_v28, %v1619_v3 }
 0x219   : > { %v2158_v5 = vpop.f32.mrb[4].mxu1 }
 0x21a   : > { %v1393_v7 = vpop.f32.mrb[5].mxu1 }
 0x21b   : > { %v2159_v31 = vpop.f32.mrb[6].mxu1 }
 0x21c   : > { %v2874_v9 = vpack.c.bf16 %v2159_v31, %v2158_v5  ;;  %v1396_v10 = vpop.f32.mrb[7].mxu1 }
 0x21d   : > { %v2877_v17 = vpack.c.bf16 %v1396_v10, %v1393_v7 }
 0x21e   : > { %2100 = vst [vmem:[%s2775_s18 + $0x58] sm:$0xff] %v2874_v9   ;;  %v1622_v39 = vunpack.c.l.bf16 %v2874_v9  ;;  %v1623_v47 = vunpack.c.h.bf16 %v2874_v9 }
 0x21f   : > { %2099 = vst [vmem:[%s2775_s18 + $0x50] sm:$0xff] %v2877_v17   ;;  %v1620_v33 = vunpack.c.l.bf16 %v2877_v17  ;;  %v1621_v41 = vunpack.c.h.bf16 %v2877_v17 }
 0x221   : > { %v1651_v36 = vadd.f32 %v1650_v1, %v1620_v33 }
 0x223   : > { %v1652_v37 = vadd.f32 %v1651_v36, %v1621_v41 }
 0x225   : > { %v1653_v43 = vadd.f32 %v1652_v37, %v1622_v39 }
 0x227   : > { %v1654_v25 = vadd.f32 %v1653_v43, %v1623_v47 }
 0x239   : > { %v2162_v51 = vpop.f32.mrb[8].mxu1 }
 0x23a   : > { %v1409_v42 = vpop.f32.mrb[9].mxu1 }
 0x23b   : > { %v2163_v44 = vpop.f32.mrb[10].mxu1 }
 0x23c   : > { %v1453_v45 = vpack.c.bf16 %v2163_v44, %v2162_v51  ;;  %v1412_v46 = vpop.f32.mrb[11].mxu1 }
 0x23d   : > { %v1452_v49 = vpack.c.bf16 %v1412_v46, %v1409_v42 }
 0x23e   : > { %2102 = vst [vmem:[%s2775_s18 + $0x68] sm:$0xff] %v1453_v45   ;;  %v1626_v59 = vunpack.c.l.bf16 %v1453_v45  ;;  %v1627_v11 = vunpack.c.h.bf16 %v1453_v45 }
 0x23f   : > { %2101 = vst [vmem:[%s2775_s18 + $0x60] sm:$0xff] %v1452_v49   ;;  %v1624_v62 = vunpack.c.l.bf16 %v1452_v49  ;;  %v1625_v56 = vunpack.c.h.bf16 %v1452_v49 }
 0x241   : > { %v1655_v57 = vadd.f32 %v1654_v25, %v1624_v62 }
 0x243   : > { %v1656_v61 = vadd.f32 %v1655_v57, %v1625_v56 }
 0x245   : > { %v1657_v32 = vadd.f32 %v1656_v61, %v1626_v59 }
 0x247   : > { %v1658_v5 = vadd.f32 %v1657_v32, %v1627_v11 }
 0x256   : > { %v2166_v7 = vpop.f32.mrb[12].mxu1 }
 0x257   : > { %v1425_v8 = vpop.f32.mrb[13].mxu1 }
 0x258   : > { %v2167_v31 = vpop.f32.mrb[14].mxu1 }
 0x259   : > { %v1455_v10 = vpack.c.bf16 %v2167_v31, %v2166_v7  ;;  %v1428_v14 = vpop.f32.mrb[15].mxu1 }
 0x25a   : > { %v1454_v20 = vpack.c.bf16 %v1428_v14, %v1425_v8 }
 0x25b   : > { %2104 = vst [vmem:[%s2775_s18 + $0x78] sm:$0xff] %v1455_v10   ;;  %v1630_v1 = vunpack.c.l.bf16 %v1455_v10  ;;  %v1631_v37 = vunpack.c.h.bf16 %v1455_v10 }
 0x25c   : > { %2103 = vst [vmem:[%s2775_s18 + $0x70] sm:$0xff] %v1454_v20   ;;  %v1628_v21 = vunpack.c.l.bf16 %v1454_v20  ;;  %v1629_v23 = vunpack.c.h.bf16 %v1454_v20 }
 0x25e   : > { %v1659_v28 = vadd.f32 %v1658_v5, %v1628_v21 }
 0x260   : > { %v1660_v36 = vadd.f32 %v1659_v28, %v1629_v23 }
 0x262   : > { %v1661_v51 = vadd.f32 %v1660_v36, %v1630_v1 }
 0x264   : > { %v1662_v42 = vadd.f32 %v1661_v51, %v1631_v37 }
 0x266   : > { %v1663_v43 = vrot.slane %v1662_v42, 4 }
 0x268   : > { %v1664_v44 = vadd.f32 %v1663_v43, %v1662_v42 }
 0x26a   : > { %v1665_v45 = vrot.slane %v1664_v44, 2 }
 0x26c   : > { %v1666_v46 = vadd.f32 %v1665_v45, %v1664_v44 }
 0x26e   : > { %v1667_v49 = vrot.slane %v1666_v46, 1 }
 0x270   : > { %v1668_v25 = vadd.f32 %v1667_v49, %v1666_v46 }
 0x272   : > { %v2920_v57 = vmul.f32 0.00390625, %v1668_v25 }
 0x274   : > { %1670 = vst [vmem:[%s211_s21] sm:$0x1] %v2920_v57  ;;  %v2924_v61 = vsub.f32 %v1624_v62, %v2920_v57  ;;  %v2927_v32 = vsub.f32 %v1625_v56, %v2920_v57  ;;  %v2930_v5 = vsub.f32 %v1626_v59, %v2920_v57  ;;  %v2933_v7 = vsub.f32 %v1627_v11, %v2920_v57 }
 0x275   : > { %v2936_v8 = vsub.f32 %v1628_v21, %v2920_v57  ;;  %v2939_v31 = vsub.f32 %v1629_v23, %v2920_v57  ;;  %v2942_v10 = vsub.f32 %v1630_v1, %v2920_v57  ;;  %v2945_v62 = vsub.f32 %v1631_v37, %v2920_v57 }
 0x276   : > { %v1671_v56 = vsub.f32 %v1600_v0, %v2920_v57  ;;  %v1672_v59 = vsub.f32 %v1601_v40, %v2920_v57  ;;  %v1673_v11 = vsub.f32 %v1602_v50, %v2920_v57  ;;  %v1674_v21 = vsub.f32 %v1603_v29, %v2920_v57 }
 0x277   : > { %v1675_v23 = vsub.f32 %v1604_v16, %v2920_v57  ;;  %v1676_v6 = vsub.f32 %v1605_v52, %v2920_v57  ;;  %v1677_v50 = vsub.f32 %v1606_v53, %v2920_v57  ;;  %v1678_v2 = vsub.f32 %v1607_v54, %v2920_v57 }
 0x278   : > { %v1703_v14 = vmul.f32 %v1671_v56, %v1671_v56  ;;  %v1704_v20 = vmul.f32 %v1672_v59, %v1672_v59  ;;  %v1705_v28 = vmul.f32 %v1673_v11, %v1673_v11  ;;  %v1706_v40 = vmul.f32 %v1674_v21, %v1674_v21 }
 0x279   : > { %v1707_v36 = vmul.f32 %v1675_v23, %v1675_v23  ;;  %v1708_v29 = vmul.f32 %v1676_v6, %v1676_v6  ;;  %v1679_v51 = vsub.f32 %v1608_v55, %v2920_v57  ;;  %v1709_v27 = vmul.f32 %v1677_v50, %v1677_v50 }
 0x27a   : > { %v1735_v0 = vadd.f32 %v1704_v20, %v1703_v14  ;;  %v1680_v42 = vsub.f32 %v1609_v58, %v2920_v57  ;;  %v1710_v43 = vmul.f32 %v1678_v2, %v1678_v2  ;;  %v1681_v44 = vsub.f32 %v1610_v60, %v2920_v57 }
 0x27b   : > { %v1711_v24 = vmul.f32 %v1679_v51, %v1679_v51  ;;  %v1682_v45 = vsub.f32 %v1611_v63, %v2920_v57  ;;  %v1683_v49 = vsub.f32 %v1612_v13, %v2920_v57  ;;  %v1684_v25 = vsub.f32 %v1613_v4, %v2920_v57 }
 0x27c   : > { %v1736_v1 = vadd.f32 %v1735_v0, %v1705_v28  ;;  %v1712_v46 = vmul.f32 %v1680_v42, %v1680_v42  ;;  %v1713_v35 = vmul.f32 %v1681_v44, %v1681_v44  ;;  %v1685_v59 = vsub.f32 %v1614_v15, %v2920_v57 }
 0x27d   : > { %v1714_v56 = vmul.f32 %v1682_v45, %v1682_v45  ;;  %v1715_v34 = vmul.f32 %v1683_v49, %v1683_v49  ;;  %v1686_v11 = vsub.f32 %v1615_v18, %v2920_v57  ;;  %v1716_v14 = vmul.f32 %v1684_v25, %v1684_v25 }
 0x27e   : > { %v1737_v37 = vadd.f32 %v1736_v1, %v1706_v40  ;;  %v1687_v20 = vsub.f32 %v1616_v19, %v2920_v57  ;;  %v1717_v12 = vmul.f32 %v1685_v59, %v1685_v59  ;;  %v1688_v21 = vsub.f32 %v1617_v22, %v2920_v57 }
 0x27f   : > { %v1718_v23 = vmul.f32 %v1686_v11, %v1686_v11  ;;  %v1689_v28 = vsub.f32 %v1618_v26, %v2920_v57  ;;  %v1690_v0 = vsub.f32 %v1619_v3, %v2920_v57  ;;  %v1691_v40 = vsub.f32 %v1620_v33, %v2920_v57 }
 0x280   : > { %v1738_v16 = vadd.f32 %v1737_v37, %v1707_v36  ;;  %v1719_v38 = vmul.f32 %v1687_v20, %v1687_v20  ;;  %v1720_v6 = vmul.f32 %v1688_v21, %v1688_v21  ;;  %v1692_v1 = vsub.f32 %v1621_v41, %v2920_v57 }
 0x281   : > { %v1721_v30 = vmul.f32 %v1689_v28, %v1689_v28  ;;  %v1722_v50 = vmul.f32 %v1690_v0, %v1690_v0  ;;  %v1693_v36 = vsub.f32 %v1622_v39, %v2920_v57  ;;  %v1723_v48 = vmul.f32 %v1691_v40, %v1691_v40 }
 0x282   : > { %v1739_v52 = vadd.f32 %v1738_v16, %v1708_v29  ;;  %v1694_v37 = vsub.f32 %v1623_v47, %v2920_v57  ;;  %v1724_v2 = vmul.f32 %v1692_v1, %v1692_v1  ;;  %v1727_v17 = vmul.f32 %v2924_v61, %v2924_v61 }
 0x283   : > { %v1725_v29 = vmul.f32 %v1693_v36, %v1693_v36  ;;  %v1729_v42 = vmul.f32 %v2930_v5, %v2930_v5  ;;  %v1730_v9 = vmul.f32 %v2933_v7, %v2933_v7  ;;  %v1731_v57 = vmul.f32 %v2936_v8, %v2936_v8 }
 0x284   : > { %v1740_v53 = vadd.f32 %v1739_v52, %v1709_v27  ;;  %v1726_v51 = vmul.f32 %v1694_v37, %v1694_v37  ;;  %v1728_v52 = vmul.f32 %v2927_v32, %v2927_v32  ;;  %v1732_v61 = vmul.f32 %v2939_v31, %v2939_v31 }
 0x285   : > { %v1733_v32 = vmul.f32 %v2942_v10, %v2942_v10  ;;  %v1734_v5 = vmul.f32 %v2945_v62, %v2945_v62 }
 0x286   : > { %v1741_v54 = vadd.f32 %v1740_v53, %v1710_v43 }
 0x288   : > { %v1742_v55 = vadd.f32 %v1741_v54, %v1711_v24 }
 0x28a   : > { %v1743_v58 = vadd.f32 %v1742_v55, %v1712_v46 }
 0x28c   : > { %v1744_v60 = vadd.f32 %v1743_v58, %v1713_v35 }
 0x28e   : > { %v1745_v63 = vadd.f32 %v1744_v60, %v1714_v56 }
 0x290   : > { %v1746_v13 = vadd.f32 %v1745_v63, %v1715_v34 }
 0x292   : > { %v1747_v4 = vadd.f32 %v1746_v13, %v1716_v14 }
 0x294   : > { %v1748_v15 = vadd.f32 %v1747_v4, %v1717_v12 }
 0x296   : > { %v1749_v18 = vadd.f32 %v1748_v15, %v1718_v23 }
 0x298   : > { %v1750_v19 = vadd.f32 %v1749_v18, %v1719_v38 }
 0x29a   : > { %v1751_v22 = vadd.f32 %v1750_v19, %v1720_v6 }
 0x29c   : > { %v1752_v26 = vadd.f32 %v1751_v22, %v1721_v30 }
 0x29e   : > { %v1753_v3 = vadd.f32 %v1752_v26, %v1722_v50 }
 0x2a0   : > { %v1754_v33 = vadd.f32 %v1753_v3, %v1723_v48 }
 0x2a2   : > { %v1755_v16 = vadd.f32 %v1754_v33, %v1724_v2 }
 0x2a4   : > { %v1756_v27 = vadd.f32 %v1755_v16, %v1725_v29 }
 0x2a6   : > { %v1757_v41 = vadd.f32 %v1756_v27, %v1726_v51 }
 0x2a8   : > { %v1758_v39 = vadd.f32 %v1757_v41, %v1727_v17 }
 0x2aa   : > { %v1759_v43 = vadd.f32 %v1758_v39, %v1728_v52 }
 0x2ac   : > { %v1760_v47 = vadd.f32 %v1759_v43, %v1729_v42 }
 0x2ae   : > { %v1761_v53 = vadd.f32 %v1760_v47, %v1730_v9 }
 0x2b0   : > { %v1762_v44 = vadd.f32 %v1761_v53, %v1731_v57 }
 0x2b2   : > { %v1763_v24 = vadd.f32 %v1762_v44, %v1732_v61 }
 0x2b4   : > { %v1764_v54 = vadd.f32 %v1763_v24, %v1733_v32 }
 0x2b6   : > { %v1765_v45 = vadd.f32 %v1764_v54, %v1734_v5 }
 0x2b8   : > { %v1766_v7 = vrot.slane %v1765_v45, 4 }
 0x2ba   : > { %v1767_v46 = vadd.f32 %v1766_v7, %v1765_v45 }
 0x2bc   : > { %v1768_v55 = vrot.slane %v1767_v46, 2 }
 0x2be   : > { %v1769_v49 = vadd.f32 %v1768_v55, %v1767_v46 }
 0x2c0   : > { %v1770_v35 = vrot.slane %v1769_v49, 1 }
 0x2c2   : > { %v1771_v8 = vadd.f32 %v1770_v35, %v1769_v49 }
 0x2c4   : > { %1772 = vst [vmem:[%s214_s24] sm:$0x1] %v1771_v8 }
 0x2c5 PF: > { %s15_s15 = sadd.s32 1, %s2244_s15  }
 0x2c6   : > { %p12_p4 = scmp.ge.s32.totalorder %s15_s15, 4  }
 0x2c8   :  { %14 = sbr.rel (!%p12_p4) target bundleno = 1 (0x1), region = 82 }

// kernel: residual_block2d_forward.3
= control target key start
LH: loop header
LB: loop body
LE: loop exit
PB: predicated region body
PF: predicated region fallthrough
CT: control target
= control target key end

     0   :  { %s4970_s27 = smov 0   ;;  %s6590_s0 = inlined_call_operand.vmem [shape: bf16[2,16,16,128], index: 0, kind: input, shape index: {}]   ;;  %s6591_s1 = inlined_call_operand.vmem [shape: bf16[2,16,16,8], index: 1, kind: input, shape index: {}]   ;;  %s6592_s2 = inlined_call_operand.vmem [shape: f32[2,1,128], index: 2, kind: input, shape index: {}]   ;;  %s6593_s3 = inlined_call_operand.vmem [shape: f32[2,1,128], index: 3, kind: input, shape index: {}]   ;;  %s6594_s4 = inlined_call_operand.vmem [shape: f32[1,128], index: 4, kind: input, shape index: {}]   ;;  %s6595_s5 = inlined_call_operand.vmem [shape: f32[1,128], index: 5, kind: input, shape index: {}]   ;;  %s6596_s6 = inlined_call_operand.vmem [shape: bf16[1160,128], index: 6, kind: input, shape index: {}]   ;;  %s6597_s7 = inlined_call_operand.vmem [shape: f32[1,128], index: 7, kind: input, shape index: {}]   ;;  %s6598_s8 = inlined_call_operand.vmem [shape: bf16[2,8,8,128], index: 8, kind: output, shape index: {}]  }
   0x1 LB: > { %s4019_s28 = sadd.s32 4294967295, %s4921_s27   ;;  %p4023_p0 = scmp.ge.s32.totalorder %s4921_s27, 1  ;;  %s4921_s27 = sphi %s4970_s27, %s18_s27  }
   0x2   : > { %p272_p1 = scmp.lt.s32.totalorder %s4921_s27, 3 }
   0x4   : > { %p273_p2 = pnand %p4023_p0, %p272_p1 }
   0x6   : > { %276 = sbr.rel (%p273_p2) target bundleno = 710 (0x2c6), region = 52 }
   0xd   : > { %v4822_v0 = vld [vmem:[%s6596_s6 + $0x40] sm:$0xff]   ;;  %v4824_v2 = vld [vmem:[%s6596_s6 + $0x48] sm:$0xff]   ;;  %v4826_v4 = vld [vmem:[%s6596_s6 + $0x50] sm:$0xff]   ;;  %v4923_v6 = vmov 0   ;;  %vm329_vm0 = vcmask 1040384   ;;  %vm835_vm3 = vcmask 1047552   ;;  %v421_v50 = vlaneseq }
   0xe   : > { %v4823_v1 = vld [vmem:[%s6596_s6] sm:$0xff]   ;;  %4796 = vmatprep.subr.bf16.mxu1 %v4822_v0  ;;  %4348 = vmatprep.subr.bf16.mxu0 %v4822_v0  ;;  %v4825_v3 = vld [vmem:[%s6596_s6 + $0x8] sm:$0xff]   ;;  %v4827_v5 = vld [vmem:[%s6596_s6 + $0x10] sm:$0xff]   ;;  %771 = vst [vmem:[#allocation2 + $0x8] sm:$0xff] %v4923_v6  ;;  %v611_v16 = vrot.slane %v4923_v6, 7  ;;  %v787_v27 = vrot.slane %v4923_v6, 1 }
   0xf   : > { %4804 = vmatpush3.bf16.msra.mxu1 %v4823_v1  ;;  %4349 = vmatpush3.bf16.msra.mxu0 %v4823_v1  ;;  %v4828_v7 = vld [vmem:[%s6596_s6 + $0x58] sm:$0xff]   ;;  %v4830_v9 = vld [vmem:[%s6596_s6 + $0x60] sm:$0xff]   ;;  %v4832_v11 = vld [vmem:[%s6596_s6 + $0x68] sm:$0xff]   ;;  %vm737_vm1 = vsmask.f32 256  ;;  %p5056_p3 = scmp.lt.s32.totalorder %s4019_s28, 1 }
  0x10   : > { %4797 = vmatprep.subr.bf16.mxu1 %v4824_v2  ;;  %4350 = vmatprep.subr.bf16.mxu0 %v4824_v2  ;;  %v4829_v8 = vld [vmem:[%s6596_s6 + $0x18] sm:$0xff]   ;;  %v4831_v10 = vld [vmem:[%s6596_s6 + $0x20] sm:$0xff]   ;;  %v4833_v17 = vld [vmem:[%s6596_s6 + $0x28] sm:$0xff]   ;;  %vm836_vm4 = vsmask.f32 7424  ;;  %v5110_v54 = vshrl.u32 %v421_v50, 7 }
  0x11   : > { %1955 = vmatprep.mubr.bf16.mxu0 %v4923_v6  ;;  %v327_v12 = vld [vmem:[%s6592_s2] sm:$0x1]  ;;  %v328_v13 = vld [vmem:[%s6592_s2 + $0x1] sm:$0x1]  ;;  %v4834_v18 = vld [vmem:[%s6596_s6 + $0x70] sm:$0xff]   ;;  %s6649_s28 = smov (!%p5056_p3, %s4019_s28), 1 }
  0x12   : > { %v330_v14 = vsel %vm329_vm0, %v327_v12, 0.0  ;;  %v331_v15 = vsel %vm329_vm0, %v328_v13, 0.0  ;;  %v334_v20 = vld [vmem:[%s6593_s3] sm:$0x1]  ;;  %v335_v21 = vld [vmem:[%s6593_s3 + $0x1] sm:$0x1]  ;;  %vm5037_vm2 = vmand %vm329_vm0, %vm737_vm1 }
  0x13   : > { %4805 = vmatpush3.bf16.msra.mxu1 %v4825_v3  ;;  %4351 = vmatpush3.bf16.msra.mxu0 %v4825_v3  ;;  %v332_v19 = vadd.f32 %v331_v15, %v330_v14  ;;  %v739_v24 = vsel %vm5037_vm2, 0, %v611_v16  ;;  %v4835_v28 = vld [vmem:[%s6596_s6 + $0x30] sm:$0xff]   ;;  %v4836_v29 = vld [vmem:[%s6596_s6 + $0x78] sm:$0xff]   ;;  %v336_v30 = vsel %vm329_vm0, %v334_v20, 0.0  ;;  %v337_v31 = vsel %vm329_vm0, %v335_v21, 0.0  ;;  %vm5063_vm5 = vmand %vm835_vm3, %vm836_vm4  ;;  %s4202_s16 = sshll.u32 %s6649_s28, 7 }
  0x14   : > { %4798 = vmatprep.subr.bf16.mxu1 %v4826_v4  ;;  %4352 = vmatprep.subr.bf16.mxu0 %v4826_v4  ;;  %946 = vst [vmem:[#allocation2 + $0x4e0] sm:$0xff] %v739_v24  ;;  %v4837_v37 = vld [vmem:[%s6596_s6 + $0x38] sm:$0xff]   ;;  %v338_v38 = vadd.f32 %v337_v31, %v336_v30  ;;  %v838_v40 = vsel %vm5063_vm5, %v787_v27, 0  ;;  %v4838_v41 = vld [vmem:[%s6596_s6 + $0xc0] sm:$0xff]   ;;  %v4844_v46 = vld [vmem:[%s6596_s6 + $0x148] sm:$0xff]   ;;  %s5099_s21 = scalar_lea.vmem %s6590_s0, %s4202_s16  ;;  %v423_v2 = vsub.s32 0, %v5110_v54  ;;  %s5512_s10 = scalar_lea.vmem %s6591_s1, %s4202_s16 }
  0x15   : > { %v5034_v22 = vmul.f32 0.5, %v332_v19  ;;  %v4840_v42 = vld [vmem:[%s6596_s6 + $0x140] sm:$0xff]   ;;  %854 = vst [vmem:[#allocation2 + $0x10] sm:$0xff] %v838_v40  ;;  %978 = vst [vmem:[#allocation2 + $0x4f0] sm:$0xff] %v838_v40  ;;  %v4845_v49 = vld [vmem:[%s6596_s6 + $0x108] sm:$0xff]   ;;  %s4204_s22 = sshll.u32 %s6649_s28, 5 }
  0x16   : > { %v4841_v45 = vld [vmem:[%s6596_s6 + $0x100] sm:$0xff]   ;;  %v4848_v51 = vld [vmem:[%s6596_s6 + $0x150] sm:$0xff]   ;;  %v5105_v52 = vld [vmem:[%s5099_s21 + $0x38] sm:$0xff]   ;;  %s6203_s24 = scalar_lea.vmem %s6598_s8, %s4204_s22 }
  0x17   : > { %4806 = vmatpush3.bf16.msra.mxu1 %v4827_v5  ;;  %4353 = vmatpush3.bf16.msra.mxu0 %v4827_v5  ;;  %v339_v25 = vsub.f32 %v327_v12, %v5034_v22  ;;  %v340_v26 = vsub.f32 %v328_v13, %v5034_v22  ;;  %v4849_v53 = vld [vmem:[%s6596_s6 + $0x110] sm:$0xff]   ;;  %v5113_v55 = vld [vmem:[%s5099_s21 + $0x40] sm:$0xff]   ;;  %v4852_v57 = vld [vmem:[%s6596_s6 + $0x158] sm:$0xff]   ;;  %v4299_v1 = vunpack.c.l.bf16 %v5105_v52  ;;  %v4300_v5 = vunpack.c.h.bf16 %v5105_v52 }
  0x18   : > { %4799 = vmatprep.subr.bf16.mxu1 %v4828_v7  ;;  %4354 = vmatprep.subr.bf16.mxu0 %v4828_v7  ;;  %v5116_v56 = vld [vmem:[%s5099_s21] sm:$0xff]   ;;  %v5122_v58 = vld [vmem:[%s5099_s21 + $0x48] sm:$0xff]   ;;  %v5128_v60 = vld [vmem:[%s5099_s21 + $0x50] sm:$0xff]   ;;  %v4303_v7 = vunpack.c.l.bf16 %v5113_v55 }
  0x19   : > { %v341_v32 = vmul.f32 %v339_v25, %v339_v25  ;;  %v342_v33 = vmul.f32 %v340_v26, %v340_v26  ;;  %v5125_v59 = vld [vmem:[%s5099_s21 + $0x8] sm:$0xff]   ;;  %v5131_v61 = vld [vmem:[%s5099_s21 + $0x10] sm:$0xff]   ;;  %v4853_v62 = vld [vmem:[%s6596_s6 + $0x118] sm:$0xff]   ;;  %v4272_v12 = vunpack.c.h.bf16 %v5116_v56  ;;  %v4307_v13 = vunpack.c.l.bf16 %v5122_v58 }
  0x1a   : > { %v349_v63 = vld [vmem:[%s6594_s4] sm:$0x1]  ;;  %v5140_v0 = vld [vmem:[%s5099_s21 + $0x58] sm:$0xff]   ;;  %v4308_v14 = vunpack.c.h.bf16 %v5122_v58  ;;  %v4275_v15 = vunpack.c.l.bf16 %v5125_v59  ;;  %v4311_v19 = vunpack.c.l.bf16 %v5128_v60  ;;  %v4312_v20 = vunpack.c.h.bf16 %v5128_v60 }
  0x1b   : > { %4807 = vmatpush3.bf16.msra.mxu1 %v4829_v8  ;;  %4355 = vmatpush3.bf16.msra.mxu0 %v4829_v8  ;;  %v343_v34 = vsel %vm329_vm0, %v341_v32, 0.0  ;;  %v344_v35 = vsel %vm329_vm0, %v342_v33, 0.0  ;;  %v5145_v3 = vld [vmem:[%s5099_s21 + $0x18] sm:$0xff]   ;;  %v4856_v4 = vld [vmem:[%s6596_s6 + $0x160] sm:$0xff]   ;;  %v4304_v8 = vunpack.c.h.bf16 %v5113_v55  ;;  %v4279_v21 = vunpack.c.l.bf16 %v5131_v61 }
  0x1c   : > { %4800 = vmatprep.subr.bf16.mxu1 %v4830_v9  ;;  %4356 = vmatprep.subr.bf16.mxu0 %v4830_v9  ;;  %v345_v39 = vadd.f32 %v344_v35, %v343_v34  ;;  %v4271_v9 = vunpack.c.l.bf16 %v5116_v56  ;;  %v5165_v16 = vld [vmem:[%s5099_s21 + $0x20] sm:$0xff]   ;;  %v4280_v26 = vunpack.c.h.bf16 %v5131_v61  ;;  %v4315_v27 = vunpack.c.l.bf16 %v5140_v0  ;;  %v5188_v35 = vld [vmem:[%s5099_s21 + $0x28] sm:$0xff]  }
  0x1d   : > { %v353_v30 = vld [vmem:[%s6595_s5] sm:$0x1]  ;;  %v4283_v31 = vunpack.c.l.bf16 %v5145_v3  ;;  %v4284_v32 = vunpack.c.h.bf16 %v5145_v3  ;;  %v4288_v40 = vunpack.c.h.bf16 %v5165_v16 }
  0x1e   : > { %v346_v43 = vmul.f32 256.0, %v345_v39  ;;  %v4287_v39 = vunpack.c.l.bf16 %v5165_v16  ;;  %v4862_v16 = vld [vmem:[%s6596_s6 + $0xf0] sm:$0xff]   ;;  %v4882_v23 = vld [vmem:[%s6596_s6 + $0x220] sm:$0xff]  }
  0x1f   : > { %4808 = vmatpush3.bf16.msra.mxu1 %v4831_v10  ;;  %4357 = vmatpush3.bf16.msra.mxu0 %v4831_v10  ;;  %v4857_v10 = vld [vmem:[%s6596_s6 + $0x120] sm:$0xff]  }
  0x20   : > { %4801 = vmatprep.subr.bf16.mxu1 %v4832_v11  ;;  %4358 = vmatprep.subr.bf16.mxu0 %v4832_v11  ;;  %v347_v44 = vadd.f32 %v346_v43, %v338_v38  ;;  %v5158_v11 = vld [vmem:[%s5099_s21 + $0x60] sm:$0xff]  }
  0x21   : > { %v4319_v33 = vunpack.c.l.bf16 %v5158_v11  ;;  %v4320_v34 = vunpack.c.h.bf16 %v5158_v11  ;;  %v4883_v36 = vld [vmem:[%s6596_s6 + $0x1e0] sm:$0xff]  }
  0x22   : > { %v348_v47 = vmul.f32 0.001953125, %v347_v44  ;;  %v4291_v44 = vunpack.c.l.bf16 %v5188_v35 }
  0x23   : > { %4809 = vmatpush3.bf16.msra.mxu1 %v4833_v17  ;;  %4359 = vmatpush3.bf16.msra.mxu0 %v4833_v17 }
  0x24   : > { %4802 = vmatprep.subr.bf16.mxu1 %v4834_v18  ;;  %4360 = vmatprep.subr.bf16.mxu0 %v4834_v18  ;;  %v350_v48 = vadd.f32 1e-05, %v348_v47  ;;  %v4276_v18 = vunpack.c.h.bf16 %v5125_v59 }
  0x26   : > { %4911 = vrsqrt.f32 %v350_v48 }
  0x27   : > { %4810 = vmatpush3.bf16.msra.mxu1 %v4835_v28  ;;  %4361 = vmatpush3.bf16.msra.mxu0 %v4835_v28  ;;  %v4316_v28 = vunpack.c.h.bf16 %v5140_v0 }
  0x28   : > { %4803 = vmatprep.subr.bf16.mxu1 %v4836_v29  ;;  %4362 = vmatprep.subr.bf16.mxu0 %v4836_v29  ;;  %v5178_v29 = vld [vmem:[%s5099_s21 + $0x68] sm:$0xff]  }
  0x29   : > { %v4324_v43 = vunpack.c.h.bf16 %v5178_v29 }
  0x2b   : > { %4811 = vmatpush3.bf16.msra.mxu1 %v4837_v37  ;;  %4363 = vmatpush3.bf16.msra.mxu0 %v4837_v37 }
  0x2c   : > { %4460 = vmatprep.subr.bf16.mxu1 %v4838_v41  ;;  %4572 = vmatprep.subr.bf16.mxu0 %v4840_v42  ;;  %v4861_v41 = vld [vmem:[%s6596_s6 + $0x128] sm:$0xff]   ;;  %v4323_v42 = vunpack.c.l.bf16 %v5178_v29 }
  0x2e   : > { %1956 = vmatmul.mubr.bf16.vlgmr.msra.gmra.mrb[0].mxu0 %v739_v24  ;;  %v4860_v24 = vld [vmem:[%s6596_s6 + $0x168] sm:$0xff]  }
  0x2f   : > { %4573 = vmatpush3.bf16.msra.mxu0 %v4841_v45  ;;  %v4292_v45 = vunpack.c.h.bf16 %v5188_v35 }
  0x30   : > { %4574 = vmatprep.subr.bf16.mxu0 %v4844_v46  ;;  %v4912_v17 = vpop.eup %4911 }
  0x31   : > { %v352_v25 = vmul.f32 %v4912_v17, %v349_v63  ;;  %v4865_v63 = vld [vmem:[%s6596_s6 + $0x130] sm:$0xff]  }
  0x33   : > { %4575 = vmatpush3.bf16.msra.mxu0 %v4845_v49  ;;  %v354_v37 = vmul.f32 %v352_v25, %v5034_v22  ;;  %v5191_v38 = vrot.slane %v352_v25, %v423_v2  ;;  %v4864_v49 = vld [vmem:[%s6596_s6 + $0x170] sm:$0xff]  }
  0x34   : > { %4576 = vmatprep.subr.bf16.mxu0 %v4848_v51 }
  0x35   : > { %v355_v22 = vsub.f32 %v353_v30, %v354_v37  ;;  %v440_v46 = vmul.f32 %v4299_v1, %v5191_v38  ;;  %v441_v47 = vmul.f32 %v4300_v5, %v5191_v38  ;;  %v442_v48 = vmul.f32 %v4303_v7, %v5191_v38  ;;  %v4868_v7 = vld [vmem:[%s6596_s6 + $0x178] sm:$0xff]  }
  0x36   : > { %v443_v50 = vmul.f32 %v4304_v8, %v5191_v38  ;;  %v426_v51 = vmul.f32 %v4271_v9, %v5191_v38  ;;  %v427_v52 = vmul.f32 %v4272_v12, %v5191_v38  ;;  %v445_v56 = vmul.f32 %v4308_v14, %v5191_v38 }
  0x37   : > { %4577 = vmatpush3.bf16.msra.mxu0 %v4849_v53  ;;  %v444_v53 = vmul.f32 %v4307_v13, %v5191_v38  ;;  %v5212_v55 = vrot.slane %v355_v22, %v423_v2  ;;  %v5217_v58 = vmul.f32 %v4276_v18, %v5191_v38  ;;  %v5220_v59 = vmul.f32 %v4311_v19, %v5191_v38  ;;  %v4869_v13 = vld [vmem:[%s6596_s6 + $0x138] sm:$0xff]  }
  0x38   : > { %4578 = vmatprep.subr.bf16.mxu0 %v4852_v57  ;;  %v428_v57 = vmul.f32 %v4275_v15, %v5191_v38  ;;  %v5223_v60 = vmul.f32 %v4312_v20, %v5191_v38  ;;  %v5226_v61 = vmul.f32 %v4279_v21, %v5191_v38 }
  0x39   : > { %v478_v1 = vadd.f32 %v5212_v55, %v440_v46  ;;  %v479_v2 = vadd.f32 %v5212_v55, %v441_v47  ;;  %v481_v5 = vadd.f32 %v5212_v55, %v443_v50  ;;  %v464_v8 = vadd.f32 %v5212_v55, %v426_v51 }
  0x3a   : > { %v465_v9 = vadd.f32 %v5212_v55, %v427_v52  ;;  %v483_v12 = vadd.f32 %v5212_v55, %v445_v56 }
  0x3b   : > { %4579 = vmatpush3.bf16.msra.mxu0 %v4853_v62  ;;  %v5229_v62 = vmul.f32 %v4280_v26, %v5191_v38  ;;  %vm510_vm6 = vcmp.ge.f32.partialorder %v478_v1, 0.0  ;;  %vm511_vm7 = vcmp.ge.f32.partialorder %v479_v2, 0.0  ;;  %v542_v14 = vmul.f32 0.3, %v478_v1 }
  0x3c   : > { %4580 = vmatprep.subr.bf16.mxu0 %v4856_v4  ;;  %v480_v4 = vadd.f32 %v5212_v55, %v442_v48  ;;  %v543_v15 = vmul.f32 0.3, %v479_v2  ;;  %vm513_vm9 = vcmp.ge.f32.partialorder %v481_v5, 0.0  ;;  %v545_v18 = vmul.f32 0.3, %v481_v5 }
  0x3d   : > { %v574_v19 = vsel %vm510_vm6, %v478_v1, %v542_v14  ;;  %vm496_vm10 = vcmp.ge.f32.partialorder %v464_v8, 0.0  ;;  %vm497_vm11 = vcmp.ge.f32.partialorder %v465_v9, 0.0  ;;  %v528_v26 = vmul.f32 0.3, %v464_v8 }
  0x3e   : > { %vm512_vm8 = vcmp.ge.f32.partialorder %v480_v4, 0.0  ;;  %v544_v17 = vmul.f32 0.3, %v480_v4  ;;  %v575_v20 = vsel %vm511_vm7, %v479_v2, %v543_v15  ;;  %v577_v25 = vsel %vm513_vm9, %v481_v5, %v545_v18  ;;  %v4842_v2 = vld [vmem:[%s6596_s6 + $0xc8] sm:$0xff]  }
  0x3f   : > { %4581 = vmatpush3.bf16.msra.mxu0 %v4857_v10  ;;  %v482_v10 = vadd.f32 %v5212_v55, %v444_v53  ;;  %v5248_v21 = vpack.c.bf16 %v575_v20, %v574_v19  ;;  %v529_v37 = vmul.f32 0.3, %v465_v9  ;;  %vm515_vm13 = vcmp.ge.f32.partialorder %v483_v12, 0.0  ;;  %v4839_v53 = vld [vmem:[%s6596_s6 + $0x80] sm:$0xff]   ;;  %v4843_v18 = vld [vmem:[%s6596_s6 + $0x88] sm:$0xff]  }
  0x40   : > { %4582 = vmatprep.subr.bf16.mxu0 %v4860_v24  ;;  %v576_v24 = vsel %vm512_vm8, %v480_v4, %v544_v17  ;;  %v560_v46 = vsel %vm496_vm10, %v464_v8, %v528_v26  ;;  %v547_v51 = vmul.f32 0.3, %v483_v12  ;;  %v466_v1 = vadd.f32 %v5212_v55, %v428_v57 }
  0x41   : > { %v5250_v30 = vpack.c.bf16 %v577_v25, %v576_v24  ;;  %vm514_vm12 = vcmp.ge.f32.partialorder %v482_v10, 0.0  ;;  %2019 = vmatprep.mubr.bf16.mxu1 %v5248_v21  ;;  %902 = vst [vmem:[#allocation2 + $0x250] sm:$0xff] %v5248_v21  ;;  %953 = vst [vmem:[#allocation2 + $0x218] sm:$0xff] %v5248_v21  ;;  %v668_v22 = vshll.u32 %v5248_v21, 16  ;;  %v546_v47 = vmul.f32 0.3, %v482_v10 }
  0x42   : > { %v561_v50 = vsel %vm497_vm11, %v465_v9, %v529_v37  ;;  %v579_v4 = vsel %vm515_vm13, %v483_v12, %v547_v51  ;;  %v467_v5 = vadd.f32 %v5212_v55, %v5217_v58  ;;  %vm498_vm14 = vcmp.ge.f32.partialorder %v466_v1, 0.0 }
  0x43   : > { %4583 = vmatpush3.bf16.msra.mxu0 %v4861_v41  ;;  %v665_v41 = vshrl.u32 %v5248_v21, 16  ;;  %903 = vst [vmem:[#allocation2 + $0x2a0] sm:$0xff] %v5250_v30  ;;  %954 = vst [vmem:[#allocation2 + $0x268] sm:$0xff] %v5250_v30  ;;  %v672_v48 = vshrl.u32 %v5250_v30, 16  ;;  %v5269_v56 = vpack.c.bf16 %v561_v50, %v560_v46  ;;  %v530_v58 = vmul.f32 0.3, %v466_v1 }
  0x44   : > { %4584 = vmatprep.subr.bf16.mxu0 %v4864_v49  ;;  %v675_v49 = vshll.u32 %v5250_v30, 16  ;;  %vm499_vm15 = vcmp.ge.f32.partialorder %v467_v5, 0.0  ;;  %v531_v19 = vmul.f32 0.3, %v467_v5  ;;  %v485_v24 = vadd.f32 %v5212_v55, %v5223_v60  ;;  %v4846_v46 = vld [vmem:[%s6596_s6 + $0xd0] sm:$0xff]  }
  0x45   : > { %v667_v52 = vrot.slane %v665_v41, 7  ;;  %1963 = vmatprep.mubr.bf16.mxu0 %v5269_v56  ;;  %v616_v57 = vshrl.u32 %v5269_v56, 16  ;;  %v619_v9 = vshll.u32 %v5269_v56, 16  ;;  %v562_v20 = vsel %vm498_vm14, %v466_v1, %v530_v58 }
  0x46   : > { %v563_v60 = vsel %vm499_vm15, %v467_v5, %v531_v19  ;;  %vm517_vm1 = vcmp.ge.f32.partialorder %v485_v24, 0.0  ;;  %v468_v50 = vadd.f32 %v5212_v55, %v5226_v61 }
  0x47   : > { %4585 = vmatpush3.bf16.msra.mxu0 %v4865_v63  ;;  %v578_v63 = vsel %vm514_vm12, %v482_v10, %v546_v47  ;;  %v670_v8 = vor.u32 %v668_v22, %v667_v52  ;;  %v549_v47 = vmul.f32 0.3, %v485_v24 }
  0x48   : > { %4586 = vmatprep.subr.bf16.mxu0 %v4868_v7  ;;  %v484_v7 = vadd.f32 %v5212_v55, %v5220_v59  ;;  %v5288_v10 = vpack.c.bf16 %v579_v4, %v578_v63  ;;  %vm500_vm3 = vcmp.ge.f32.partialorder %v468_v50, 0.0  ;;  %v4847_v4 = vld [vmem:[%s6596_s6 + $0x90] sm:$0xff]  }
  0x49   : > { %v747_v59 = vsel %vm5037_vm2, 0, %v670_v8  ;;  %v581_v1 = vsel %vm517_vm1, %v485_v24, %v549_v47  ;;  %v4850_v8 = vld [vmem:[%s6596_s6 + $0xd8] sm:$0xff]  }
  0x4a   : > { %904 = vst [vmem:[#allocation2 + $0x2f0] sm:$0xff] %v5288_v10  ;;  %955 = vst [vmem:[#allocation2 + $0x2b8] sm:$0xff] %v5288_v10  ;;  %v679_v14 = vshrl.u32 %v5288_v10, 16  ;;  %v682_v15 = vshll.u32 %v5288_v10, 16  ;;  %2020 = vmatmul.mubr.bf16.vlgmr.msra.gmra.mrb[0].mxu1 %v747_v59  ;;  %vm516_vm0 = vcmp.ge.f32.partialorder %v484_v7, 0.0 }
  0x4b   : > { %4587 = vmatpush3.bf16.msra.mxu0 %v4869_v13  ;;  %v618_v13 = vrot.slane %v616_v57, 7  ;;  %886 = vst [vmem:[#allocation2 + $0x248] sm:$0xff] %v747_v59  ;;  %937 = vst [vmem:[#allocation2 + $0x210] sm:$0xff] %v747_v59  ;;  %4461 = vmatpush3.bf16.msra.mxu1 %v4839_v53  ;;  %v548_v37 = vmul.f32 0.3, %v484_v7  ;;  %v5324_v53 = vpack.c.bf16 %v563_v60, %v562_v20 }
  0x4c   : > { %2567 = vmatprep.subr.bf16.mxu0 %v4923_v6  ;;  %v674_v6 = vrot.slane %v672_v48, 7  ;;  %2027 = vmatprep.mubr.bf16.mxu1 %v5250_v30  ;;  %v681_v26 = vrot.slane %v679_v14, 7  ;;  %v448_v59 = vmul.f32 %v4315_v27, %v5191_v38  ;;  %v449_v20 = vmul.f32 %v4316_v28, %v5191_v38  ;;  %v4851_v28 = vld [vmem:[%s6596_s6 + $0x98] sm:$0xff]  }
  0x4d   : > { %v621_v25 = vor.u32 %v619_v9, %v618_v13  ;;  %4462 = vmatprep.subr.bf16.mxu1 %v4842_v2  ;;  %v580_v63 = vsel %vm516_vm0, %v484_v7, %v548_v37  ;;  %v469_v2 = vadd.f32 %v5212_v55, %v5229_v62  ;;  %947 = vst [vmem:[#allocation2 + $0x38] sm:$0xff] %v5324_v53  ;;  %v623_v5 = vshrl.u32 %v5324_v53, 16 }
  0x4e   : > { %v677_v12 = vor.u32 %v675_v49, %v674_v6  ;;  %v684_v52 = vor.u32 %v682_v15, %v681_v26  ;;  %v532_v6 = vmul.f32 0.3, %v468_v50  ;;  %v626_v7 = vshll.u32 %v5324_v53, 16 }
  0x4f   : > { %v5320_v51 = vsel %vm5037_vm2, 0, %v621_v25  ;;  %4463 = vmatpush3.bf16.msra.mxu1 %v4843_v18  ;;  %v5340_v62 = vpack.c.bf16 %v581_v1, %v580_v63  ;;  %vm501_vm4 = vcmp.ge.f32.partialorder %v469_v2, 0.0  ;;  %v625_v13 = vrot.slane %v623_v5, 7 }
  0x50   : > { %v748_v17 = vsel %vm5037_vm2, 0, %v677_v12  ;;  %1964 = vmatmul.mubr.bf16.gmra.mrb[4].mxu0 %v5320_v51  ;;  %v5331_v61 = vsel %vm5037_vm2, 0, %v684_v52  ;;  %4464 = vmatprep.subr.bf16.mxu1 %v4846_v46  ;;  %v533_v12 = vmul.f32 0.3, %v469_v2  ;;  %v564_v58 = vsel %vm500_vm3, %v468_v50, %v532_v6 }
  0x51   : > { %887 = vst [vmem:[#allocation2 + $0x298] sm:$0xff] %v748_v17  ;;  %938 = vst [vmem:[#allocation2 + $0x260] sm:$0xff] %v748_v17  ;;  %1971 = vmatprep.mubr.bf16.mxu0 %v5324_v53  ;;  %v686_v18 = vshrl.u32 %v5340_v62, 16  ;;  %v689_v19 = vshll.u32 %v5340_v62, 16  ;;  %v486_v25 = vadd.f32 %v5212_v55, %v448_v59  ;;  %v432_v27 = vmul.f32 %v4283_v31, %v5191_v38 }
  0x52   : > { %888 = vst [vmem:[#allocation2 + $0x2e8] sm:$0xff] %v5331_v61  ;;  %939 = vst [vmem:[#allocation2 + $0x2b0] sm:$0xff] %v5331_v61  ;;  %2028 = vmatmul.mubr.bf16.gmra.mrb[4].mxu1 %v748_v17  ;;  %v565_v24 = vsel %vm501_vm4, %v469_v2, %v533_v12  ;;  %v433_v26 = vmul.f32 %v4284_v32, %v5191_v38  ;;  %v628_v37 = vor.u32 %v626_v7, %v625_v13  ;;  %v4854_v32 = vld [vmem:[%s6596_s6 + $0xe0] sm:$0xff]  }
  0x53   : > { %905 = vst [vmem:[#allocation2 + $0x340] sm:$0xff] %v5340_v62  ;;  %956 = vst [vmem:[#allocation2 + $0x308] sm:$0xff] %v5340_v62  ;;  %2035 = vmatprep.mubr.bf16.mxu1 %v5288_v10  ;;  %4465 = vmatpush3.bf16.msra.mxu1 %v4847_v4  ;;  %v688_v0 = vrot.slane %v686_v18, 7  ;;  %v5375_v17 = vpack.c.bf16 %v565_v24, %v564_v58  ;;  %v487_v31 = vadd.f32 %v5212_v55, %v449_v20  ;;  %v4858_v24 = vld [vmem:[%s6596_s6 + $0xe8] sm:$0xff]  }
  0x54   : > { %4466 = vmatprep.subr.bf16.mxu1 %v4850_v8  ;;  %vm518_vm6 = vcmp.ge.f32.partialorder %v486_v25, 0.0  ;;  %v550_v3 = vmul.f32 0.3, %v486_v25  ;;  %v470_v46 = vadd.f32 %v5212_v55, %v432_v27  ;;  %v471_v60 = vadd.f32 %v5212_v55, %v433_v26  ;;  %v4855_v8 = vld [vmem:[%s6596_s6 + $0xa0] sm:$0xff]  }
  0x55   : > { %v5385_v47 = vsel %vm5037_vm2, 0, %v628_v37  ;;  %v691_v50 = vor.u32 %v689_v19, %v688_v0  ;;  %948 = vst [vmem:[#allocation2 + $0x88] sm:$0xff] %v5375_v17  ;;  %v630_v52 = vshrl.u32 %v5375_v17, 16  ;;  %v633_v63 = vshll.u32 %v5375_v17, 16  ;;  %v4859_v0 = vld [vmem:[%s6596_s6 + $0xa8] sm:$0xff]  }
  0x56   : > { %931 = vst [vmem:[#allocation2 + $0x30] sm:$0xff] %v5385_v47  ;;  %vm519_vm7 = vcmp.ge.f32.partialorder %v487_v31, 0.0  ;;  %v551_v1 = vmul.f32 0.3, %v487_v31  ;;  %v582_v2 = vsel %vm518_vm6, %v486_v25, %v550_v3  ;;  %vm502_vm8 = vcmp.ge.f32.partialorder %v470_v46, 0.0 }
  0x57   : > { %v5396_v6 = vsel %vm5037_vm2, 0, %v691_v50  ;;  %4467 = vmatpush3.bf16.msra.mxu1 %v4851_v28  ;;  %v632_v4 = vrot.slane %v630_v52, 7  ;;  %vm503_vm9 = vcmp.ge.f32.partialorder %v471_v60, 0.0  ;;  %v534_v12 = vmul.f32 0.3, %v470_v46 }
  0x58   : > { %1972 = vmatmul.mubr.bf16.gmra.mrb[8].mxu0 %v5385_v47  ;;  %889 = vst [vmem:[#allocation2 + $0x338] sm:$0xff] %v5396_v6  ;;  %940 = vst [vmem:[#allocation2 + $0x300] sm:$0xff] %v5396_v6  ;;  %v583_v58 = vsel %vm519_vm7, %v487_v31, %v551_v1  ;;  %4468 = vmatprep.subr.bf16.mxu1 %v4854_v32  ;;  %v535_v59 = vmul.f32 0.3, %v471_v60  ;;  %v450_v13 = vmul.f32 %v4319_v33, %v5191_v38 }
  0x59   : > { %1979 = vmatprep.mubr.bf16.mxu0 %v5375_v17  ;;  %v451_v20 = vmul.f32 %v4320_v34, %v5191_v38  ;;  %v635_v25 = vor.u32 %v633_v63, %v632_v4  ;;  %v5417_v27 = vpack.c.bf16 %v583_v58, %v582_v2  ;;  %v566_v26 = vsel %vm502_vm8, %v470_v46, %v534_v12 }
  0x5a   : > { %v434_v37 = vmul.f32 %v4287_v39, %v5191_v38  ;;  %2036 = vmatmul.mubr.bf16.gmra.mrb[8].mxu1 %v5331_v61  ;;  %v567_v33 = vsel %vm503_vm9, %v471_v60, %v535_v59  ;;  %v488_v11 = vadd.f32 %v5212_v55, %v450_v13  ;;  %v435_v28 = vmul.f32 %v4288_v40, %v5191_v38 }
  0x5b   : > { %v489_v34 = vadd.f32 %v5212_v55, %v451_v20  ;;  %2043 = vmatprep.mubr.bf16.mxu1 %v5340_v62  ;;  %v5435_v39 = vsel %vm5037_vm2, 0, %v635_v25  ;;  %906 = vst [vmem:[#allocation2 + $0x390] sm:$0xff] %v5417_v27  ;;  %957 = vst [vmem:[#allocation2 + $0x358] sm:$0xff] %v5417_v27  ;;  %v693_v61 = vshrl.u32 %v5417_v27, 16  ;;  %v696_v31 = vshll.u32 %v5417_v27, 16  ;;  %4469 = vmatpush3.bf16.msra.mxu1 %v4855_v8  ;;  %v4863_v20 = vld [vmem:[%s6596_s6 + $0xb0] sm:$0xff]  }
  0x5c   : > { %v5441_v3 = vpack.c.bf16 %v567_v33, %v566_v26  ;;  %932 = vst [vmem:[#allocation2 + $0x80] sm:$0xff] %v5435_v39  ;;  %vm520_vm10 = vcmp.ge.f32.partialorder %v488_v11, 0.0  ;;  %v552_v40 = vmul.f32 0.3, %v488_v11  ;;  %4470 = vmatprep.subr.bf16.mxu1 %v4858_v24  ;;  %v472_v1 = vadd.f32 %v5212_v55, %v434_v37  ;;  %v4866_v26 = vld [vmem:[%s6596_s6 + $0xf8] sm:$0xff]  }
  0x5d   : > { %vm521_vm11 = vcmp.ge.f32.partialorder %v489_v34, 0.0  ;;  %v553_v32 = vmul.f32 0.3, %v489_v34  ;;  %v695_v46 = vrot.slane %v693_v61, 7  ;;  %v473_v8 = vadd.f32 %v5212_v55, %v435_v28 }
  0x5e   : > { %949 = vst [vmem:[#allocation2 + $0xd8] sm:$0xff] %v5441_v3  ;;  %v637_v60 = vshrl.u32 %v5441_v3, 16  ;;  %v640_v50 = vshll.u32 %v5441_v3, 16  ;;  %v584_v2 = vsel %vm520_vm10, %v488_v11, %v552_v40  ;;  %v452_v12 = vmul.f32 %v4323_v42, %v5191_v38 }
  0x5f   : > { %v585_v4 = vsel %vm521_vm11, %v489_v34, %v553_v32  ;;  %v698_v58 = vor.u32 %v696_v31, %v695_v46  ;;  %4471 = vmatpush3.bf16.msra.mxu1 %v4859_v0  ;;  %vm504_vm12 = vcmp.ge.f32.partialorder %v472_v1, 0.0  ;;  %vm505_vm13 = vcmp.ge.f32.partialorder %v473_v8, 0.0 }
  0x60   : > { %1980 = vmatmul.mubr.bf16.gmra.mrb[12].mxu0 %v5435_v39  ;;  %v639_v59 = vrot.slane %v637_v60, 7  ;;  %v5463_v13 = vpack.c.bf16 %v585_v4, %v584_v2  ;;  %v536_v24 = vmul.f32 0.3, %v472_v1  ;;  %v537_v42 = vmul.f32 0.3, %v473_v8  ;;  %4472 = vmatprep.subr.bf16.mxu1 %v4862_v16  ;;  %v4346_v16 = vld [vmem:[%s5099_s21 + $0x70] sm:$0xff]  }
  0x61   : > { %1987 = vmatprep.mubr.bf16.mxu0 %v5441_v3  ;;  %v453_v25 = vmul.f32 %v4324_v43, %v5191_v38  ;;  %v5476_v37 = vsel %vm5037_vm2, 0, %v698_v58  ;;  %v490_v0 = vadd.f32 %v5212_v55, %v452_v12  ;;  %v436_v46 = vmul.f32 %v4291_v44, %v5191_v38  ;;  %v4870_v2 = vld [vmem:[%s6596_s6 + $0x1c0] sm:$0xff]  }
  0x62   : > { %v642_v33 = vor.u32 %v640_v50, %v639_v59  ;;  %958 = vst [vmem:[#allocation2 + $0x3a8] sm:$0xff] %v5463_v13  ;;  %v6600_v11 = vshrl.u32 %v5463_v13, 16  ;;  %v703_v34 = vshll.u32 %v5463_v13, 16  ;;  %2044 = vmatmul.mubr.bf16.gmra.mrb[12].mxu1 %v5396_v6  ;;  %941 = vst [vmem:[#allocation2 + $0x350] sm:$0xff] %v5476_v37  ;;  %v568_v29 = vsel %vm504_vm12, %v472_v1, %v536_v24  ;;  %v4867_v1 = vld [vmem:[%s6596_s6 + $0xb8] sm:$0xff]  }
  0x63   : > { %v569_v43 = vsel %vm505_vm13, %v473_v8, %v537_v42  ;;  %v491_v28 = vadd.f32 %v5212_v55, %v453_v25  ;;  %2051 = vmatprep.mubr.bf16.mxu1 %v5417_v27  ;;  %4473 = vmatpush3.bf16.msra.mxu1 %v4863_v20  ;;  %vm522_vm14 = vcmp.ge.f32.partialorder %v490_v0, 0.0  ;;  %v554_v4 = vmul.f32 0.3, %v490_v0 }
  0x64   : > { %v5491_v40 = vsel %vm5037_vm2, 0, %v642_v33  ;;  %v702_v32 = vrot.slane %v6600_v11, 7  ;;  %v5495_v6 = vpack.c.bf16 %v569_v43, %v568_v29  ;;  %4474 = vmatprep.subr.bf16.mxu1 %v4866_v26  ;;  %v437_v59 = vmul.f32 %v4292_v45, %v5191_v38 }
  0x65   : > { %933 = vst [vmem:[#allocation2 + $0xd0] sm:$0xff] %v5491_v40  ;;  %vm523_vm15 = vcmp.ge.f32.partialorder %v491_v28, 0.0  ;;  %v555_v8 = vmul.f32 0.3, %v491_v28  ;;  %v586_v20 = vsel %vm522_vm14, %v490_v0, %v554_v4  ;;  %v474_v42 = vadd.f32 %v5212_v55, %v436_v46 }
  0x66   : > { %v705_v44 = vor.u32 %v703_v34, %v702_v32  ;;  %950 = vst [vmem:[#allocation2 + $0x128] sm:$0xff] %v5495_v6  ;;  %v644_v12 = vshrl.u32 %v5495_v6, 16  ;;  %v647_v58 = vshll.u32 %v5495_v6, 16  ;;  %v4327_v25 = vunpack.c.l.bf16 %v4346_v16 }
  0x67   : > { %v587_v24 = vsel %vm523_vm15, %v491_v28, %v555_v8  ;;  %v475_v35 = vadd.f32 %v5212_v55, %v437_v59  ;;  %4475 = vmatpush3.bf16.msra.mxu1 %v4867_v1  ;;  %vm506_vm0 = vcmp.ge.f32.partialorder %v474_v42, 0.0  ;;  %v538_v45 = vmul.f32 0.3, %v474_v42  ;;  %v4338_v28 = vld [vmem:[%s5099_s21 + $0x30] sm:$0xff]  }
  0x68   : > { %1988 = vmatmul.mubr.bf16.gmra.mrb[16].mxu0 %v5491_v40  ;;  %v5526_v26 = vsel %vm5037_vm2, 0, %v705_v44  ;;  %v646_v33 = vrot.slane %v644_v12, 7  ;;  %v5531_v29 = vpack.c.bf16 %v587_v24, %v586_v20  ;;  %v4328_v43 = vunpack.c.h.bf16 %v4346_v16  ;;  %4684 = vmatprep.subr.bf16.mxu1 %v4870_v2 }
  0x69   : > { %1995 = vmatprep.mubr.bf16.mxu0 %v5495_v6  ;;  %942 = vst [vmem:[#allocation2 + $0x3a0] sm:$0xff] %v5526_v26  ;;  %v454_v0 = vmul.f32 %v4327_v25, %v5191_v38  ;;  %vm507_vm1 = vcmp.ge.f32.partialorder %v475_v35, 0.0  ;;  %v539_v1 = vmul.f32 0.3, %v475_v35  ;;  %v570_v8 = vsel %vm506_vm0, %v474_v42, %v538_v45 }
  0x6a   : > { %v649_v32 = vor.u32 %v647_v58, %v646_v33  ;;  %959 = vst [vmem:[#allocation2 + $0x3f8] sm:$0xff] %v5531_v29  ;;  %v6599_v46 = vshrl.u32 %v5531_v29, 16  ;;  %v710_v4 = vshll.u32 %v5531_v29, 16  ;;  %2052 = vmatmul.mubr.bf16.gmra.mrb[16].mxu1 %v5476_v37  ;;  %v455_v16 = vmul.f32 %v4328_v43, %v5191_v38 }
  0x6b   : > { %v492_v44 = vadd.f32 %v5212_v55, %v454_v0  ;;  %2059 = vmatprep.mubr.bf16.mxu1 %v5463_v13  ;;  %v4295_v20 = vunpack.c.l.bf16 %v4338_v28  ;;  %v4296_v24 = vunpack.c.h.bf16 %v4338_v28  ;;  %v571_v25 = vsel %vm507_vm1, %v475_v35, %v539_v1 }
  0x6c   : > { %v5548_v2 = vsel %vm5037_vm2, 0, %v649_v32  ;;  %v709_v59 = vrot.slane %v6599_v46, 7  ;;  %v493_v42 = vadd.f32 %v5212_v55, %v455_v16  ;;  %v5556_v43 = vpack.c.bf16 %v571_v25, %v570_v8 }
  0x6d   : > { %934 = vst [vmem:[#allocation2 + $0x120] sm:$0xff] %v5548_v2  ;;  %vm524_vm3 = vcmp.ge.f32.partialorder %v492_v44, 0.0  ;;  %v556_v33 = vmul.f32 0.3, %v492_v44  ;;  %v438_v0 = vmul.f32 %v4295_v20, %v5191_v38  ;;  %v439_v32 = vmul.f32 %v4296_v24, %v5191_v38 }
  0x6e   : > { %v712_v45 = vor.u32 %v710_v4, %v709_v59  ;;  %vm525_vm4 = vcmp.ge.f32.partialorder %v493_v42, 0.0  ;;  %v557_v28 = vmul.f32 0.3, %v493_v42  ;;  %v789_v35 = vrot.slane %v619_v9, 1  ;;  %951 = vst [vmem:[#allocation2 + $0x178] sm:$0xff] %v5556_v43 }
  0x6f   : > { %v588_v46 = vsel %vm524_vm3, %v492_v44, %v556_v33  ;;  %v651_v8 = vshrl.u32 %v5556_v43, 16  ;;  %v654_v16 = vshll.u32 %v5556_v43, 16  ;;  %v476_v59 = vadd.f32 %v5212_v55, %v438_v0 }
  0x70   : > { %1996 = vmatmul.mubr.bf16.gmra.mrb[20].mxu0 %v5548_v2  ;;  %v5565_v1 = vsel %vm5037_vm2, 0, %v712_v45  ;;  %v589_v44 = vsel %vm525_vm4, %v493_v42, %v557_v28  ;;  %v477_v20 = vadd.f32 %v5212_v55, %v439_v32  ;;  %v790_v9 = vor.u32 %v789_v35, %v616_v57 }
  0x71   : > { %2003 = vmatprep.mubr.bf16.mxu0 %v5556_v43  ;;  %943 = vst [vmem:[#allocation2 + $0x3f0] sm:$0xff] %v5565_v1  ;;  %v791_v24 = vrot.slane %v626_v7, 1  ;;  %v653_v25 = vrot.slane %v651_v8, 7  ;;  %v5578_v33 = vpack.c.bf16 %v589_v44, %v588_v46  ;;  %vm508_vm6 = vcmp.ge.f32.partialorder %v476_v59, 0.0 }
  0x72   : > { %v540_v45 = vmul.f32 0.3, %v476_v59  ;;  %2060 = vmatmul.mubr.bf16.gmra.mrb[20].mxu1 %v5526_v26  ;;  %vm509_vm7 = vcmp.ge.f32.partialorder %v477_v20, 0.0  ;;  %v541_v0 = vmul.f32 0.3, %v477_v20  ;;  %v5583_v42 = vsel %vm5063_vm5, %v790_v9, 0 }
  0x73   : > { %v792_v32 = vor.u32 %v791_v24, %v623_v5  ;;  %2067 = vmatprep.mubr.bf16.mxu1 %v5531_v29  ;;  %v656_v57 = vor.u32 %v654_v16, %v653_v25  ;;  %960 = vst [vmem:[#allocation2 + $0x448] sm:$0xff] %v5578_v33  ;;  %v714_v7 = vshrl.u32 %v5578_v33, 16  ;;  %v717_v46 = vshll.u32 %v5578_v33, 16 }
  0x74   : > { %v572_v28 = vsel %vm508_vm6, %v476_v59, %v540_v45  ;;  %v573_v35 = vsel %vm509_vm7, %v477_v20, %v541_v0  ;;  %v793_v9 = vrot.slane %v633_v63, 1  ;;  %v795_v5 = vrot.slane %v640_v50, 1 }
  0x75   : > { %v5593_v44 = vsel %vm5063_vm5, %v792_v32, 0  ;;  %v5601_v24 = vsel %vm5037_vm2, 0, %v656_v57  ;;  %v716_v25 = vrot.slane %v714_v7, 7  ;;  %v5605_v11 = vpack.c.bf16 %v573_v35, %v572_v28 }
  0x76   : > { %v797_v59 = vrot.slane %v647_v58, 1  ;;  %935 = vst [vmem:[#allocation2 + $0x170] sm:$0xff] %v5601_v24  ;;  %v794_v63 = vor.u32 %v793_v9, %v630_v52  ;;  %v796_v50 = vor.u32 %v795_v5, %v637_v60  ;;  %v799_v20 = vrot.slane %v654_v16, 1 }
  0x77   : > { %v803_v45 = vrot.slane %v668_v22, 1  ;;  %v719_v0 = vor.u32 %v717_v46, %v716_v25  ;;  %v658_v32 = vshrl.u32 %v5605_v11, 16  ;;  %v661_v58 = vshll.u32 %v5605_v11, 16 }
  0x78   : > { %2004 = vmatmul.mubr.bf16.gmra.mrb[24].mxu0 %v5601_v24  ;;  %v798_v57 = vor.u32 %v797_v59, %v644_v12  ;;  %v5624_v52 = vsel %vm5063_vm5, %v794_v63, 0  ;;  %v5628_v60 = vsel %vm5063_vm5, %v796_v50, 0  ;;  %v800_v16 = vor.u32 %v799_v20, %v651_v8  ;;  %v4347_v20 = vld [vmem:[%s5099_s21 + $0x78] sm:$0xff]  }
  0x79   : > { %2011 = vmatprep.mubr.bf16.mxu0 %v5605_v11  ;;  %v804_v22 = vor.u32 %v803_v45, %v665_v41  ;;  %v5634_v28 = vsel %vm5037_vm2, 0, %v719_v0  ;;  %v660_v35 = vrot.slane %v658_v32, 7  ;;  %v801_v9 = vrot.slane %v661_v58, 1 }
  0x7a   : > { %v5638_v12 = vsel %vm5063_vm5, %v798_v57, 0  ;;  %2068 = vmatmul.mubr.bf16.gmra.mrb[24].mxu1 %v5565_v1  ;;  %944 = vst [vmem:[#allocation2 + $0x440] sm:$0xff] %v5634_v28  ;;  %v5644_v8 = vsel %vm5063_vm5, %v800_v16, 0  ;;  %v805_v41 = vrot.slane %v675_v49, 1  ;;  %v807_v5 = vrot.slane %v682_v15, 1 }
  0x7b   : > { %v5648_v21 = vsel %vm5063_vm5, %v804_v22, 0  ;;  %2075 = vmatprep.mubr.bf16.mxu1 %v5578_v33  ;;  %v663_v25 = vor.u32 %v661_v58, %v660_v35  ;;  %v802_v59 = vor.u32 %v801_v9, %v658_v32  ;;  %v809_v63 = vrot.slane %v689_v19, 1 }
  0x7c   : > { %v811_v50 = vrot.slane %v696_v31, 1  ;;  %v806_v45 = vor.u32 %v805_v41, %v672_v48  ;;  %v808_v49 = vor.u32 %v807_v5, %v679_v14  ;;  %v813_v15 = vrot.slane %v703_v34, 1  ;;  %v4895_v41 = vld [vmem:[%s5512_s10] sm:$0xff]  }
  0x7d   : > { %v815_v0 = vrot.slane %v710_v4, 1  ;;  %v5670_v32 = vsel %vm5037_vm2, 0, %v663_v25  ;;  %v5674_v19 = vsel %vm5063_vm5, %v802_v59, 0  ;;  %v810_v30 = vor.u32 %v809_v63, %v686_v18  ;;  %v4872_v5 = vld [vmem:[%s6596_s6 + $0x200] sm:$0xff]  }
  0x7e   : > { %v812_v48 = vor.u32 %v811_v50, %v693_v61  ;;  %v5683_v10 = vsel %vm5063_vm5, %v806_v45, 0  ;;  %v5687_v14 = vsel %vm5063_vm5, %v808_v49, 0  ;;  %v6606_v31 = vshrl.u32 %v5463_v13, 16  ;;  %v4871_v63 = vld [vmem:[%s6596_s6 + $0x180] sm:$0xff]  }
  0x7f   : > { %v6607_v62 = vshrl.u32 %v5531_v29, 16  ;;  %v5696_v27 = vsel %vm5063_vm5, %v810_v30, 0  ;;  %v817_v4 = vrot.slane %v717_v46, 1  ;;  %v4331_v58 = vunpack.c.l.bf16 %v4347_v20  ;;  %v4874_v30 = vld [vmem:[%s6596_s6 + $0x188] sm:$0xff]  }
  0x80   : > { %2012 = vmatmul.mubr.bf16.gmra.mrb[28].mxu0 %v5670_v32  ;;  %v814_v34 = vor.u32 %v813_v15, %v6606_v31  ;;  %v5700_v61 = vsel %vm5063_vm5, %v812_v48, 0  ;;  %v4332_v22 = vunpack.c.h.bf16 %v4347_v20  ;;  %vm1107_vm8 = vcmask 64512   ;;  %v4873_v20 = vld [vmem:[%s6596_s6 + $0x1c8] sm:$0xff]  }
  0x81   : > { %v816_v18 = vor.u32 %v815_v0, %v6607_v62  ;;  %2277 = vmatprep.mubr.bf16.mxu0 %v5583_v42  ;;  %v818_v35 = vor.u32 %v817_v4, %v714_v7  ;;  %v456_v9 = vmul.f32 %v4331_v58, %v5191_v38  ;;  %1108 = vst.msk [vmem:[#allocation2 + $0x48] sm:$0xff] %vm1107_vm8, %v4895_v41  ;;  %v4896_v15 = vld [vmem:[%s5512_s10 + $0x8] sm:$0xff]   ;;  %v4914_v0 = vld [vmem:[#allocation2 + $0x10] sm:$0xff]  ;;  %vm3865_vm11 = vcmask 1041409  }
  0x82   : > { %v5704_v57 = vsel %vm5063_vm5, %v814_v34, 0  ;;  %2076 = vmatmul.mubr.bf16.gmra.mrb[28].mxu1 %v5634_v28  ;;  %v457_v46 = vmul.f32 %v4332_v22, %v5191_v38  ;;  %1109 = vst.msk [vmem:[#allocation2 + $0x98] sm:$0xff] %vm1107_vm8, %v4896_v15  ;;  %v4876_v34 = vld [vmem:[%s6596_s6 + $0x1d0] sm:$0xff]   ;;  %vm3867_vm12 = vcmask 1042434   ;;  %vm3869_vm13 = vcmask 1043459  }
  0x83   : > { %v5708_v16 = vsel %vm5063_vm5, %v816_v18, 0  ;;  %2116 = vmatprep.mubr.bf16.mxu1 %v5320_v51  ;;  %v5722_v25 = vsel %vm5063_vm5, %v818_v35, 0  ;;  %v494_v7 = vadd.f32 %v5212_v55, %v456_v9  ;;  %v4877_v4 = vld [vmem:[%s6596_s6 + $0x190] sm:$0xff]   ;;  %v4879_v35 = vld [vmem:[%s6596_s6 + $0x1d8] sm:$0xff]   ;;  %vm3871_vm14 = vcmask 1044484  }
  0x84   : > { %v495_v59 = vadd.f32 %v5212_v55, %v457_v46  ;;  %v5735_v55 = vld [vmem:[#allocation2 + $0x8] sm:$0xff]  ;;  %v4881_v9 = vld [vmem:[%s6596_s6 + $0x218] sm:$0xff]   ;;  %v4897_v46 = vld [vmem:[%s5512_s10 + $0x10] sm:$0xff]   ;;  %vm3873_vm15 = vcmask 1045509   ;;  %vm3875_vm0 = vcmask 1046534   ;;  %vm3877_vm1 = vcmask 1047559  }
  0x85   : > { %vm526_vm9 = vcmp.ge.f32.partialorder %v494_v7, 0.0  ;;  %v558_v38 = vmul.f32 0.3, %v494_v7  ;;  %1110 = vst.msk [vmem:[#allocation2 + $0xe8] sm:$0xff] %vm1107_vm8, %v4897_v46  ;;  %v4901_v15 = vld [vmem:[%s5512_s10 + $0x30] sm:$0xff]  }
  0x86   : > { %vm527_vm10 = vcmp.ge.f32.partialorder %v495_v59, 0.0  ;;  %v559_v51 = vmul.f32 0.3, %v495_v59  ;;  %1114 = vst.msk [vmem:[#allocation2 + $0x228] sm:$0xff] %vm1107_vm8, %v4901_v15 }
  0x87   : > { %v590_v50 = vsel %vm526_vm9, %v494_v7, %v558_v38  ;;  %v4886_v7 = vld [vmem:[%s6596_s6 + $0x1e8] sm:$0xff]   ;;  %v4888_v38 = vld [vmem:[%s6596_s6 + $0x230] sm:$0xff]  }
  0x88   : > { %2278 = vmatmul.mubr.bf16.vlgmr.msra.gmra.mrb[32].mxu0 %v5269_v56  ;;  %v4875_v56 = vld [vmem:[%s6596_s6 + $0x208] sm:$0xff]   ;;  %v591_v45 = vsel %vm527_vm10, %v495_v59, %v559_v51  ;;  %v4889_v51 = vld [vmem:[%s6596_s6 + $0x1f0] sm:$0xff]  }
  0x89   : > { %2568 = vmatpush1.bf16.msra.mxu0 %v4872_v5  ;;  %2285 = vmatprep.mubr.bf16.mxu0 %v5593_v44  ;;  %v5741_v49 = vpack.c.bf16 %v591_v45, %v590_v50  ;;  %v4880_v5 = vld [vmem:[%s6596_s6 + $0x198] sm:$0xff]   ;;  %v4887_v59 = vld [vmem:[%s6596_s6 + $0x1a8] sm:$0xff]  }
  0x8a   : > { %2569 = vmatprep.subr.bf16.mxu0 %v5735_v55  ;;  %2117 = vmatmul.mubr.bf16.vlgmr.msra.gmra.mrb[32].mxu1 %v4914_v0  ;;  %v4892_v50 = vld [vmem:[%s6596_s6 + $0x1f8] sm:$0xff]  }
  0x8b   : > { %4685 = vmatpush3.bf16.msra.mxu1 %v4871_v63  ;;  %2124 = vmatprep.mubr.bf16.mxu1 %v5385_v47  ;;  %v871_v48 = vshrl.u32 %v5741_v49, 16  ;;  %v874_v31 = vshll.u32 %v5741_v49, 16  ;;  %v4878_v47 = vld [vmem:[%s6596_s6 + $0x210] sm:$0xff]   ;;  %v4891_v63 = vld [vmem:[%s6596_s6 + $0x238] sm:$0xff]  }
  0x8c   : > { %4686 = vmatprep.subr.bf16.mxu1 %v4873_v20  ;;  %v4899_v20 = vld [vmem:[%s5512_s10 + $0x20] sm:$0xff]   ;;  %v1207_v0 = vld [vmem:[#allocation2 + $0x298] sm:$0xff] }
  0x8d   : > { %2570 = vmatpush1.bf16.msra.mxu0 %v4875_v56  ;;  %v873_v62 = vrot.slane %v871_v48, 7  ;;  %v911_v18 = vrot.slane %v874_v31, 1  ;;  %v4893_v56 = vld [vmem:[%s6596_s6 + $0x1b8] sm:$0xff]   ;;  %1112 = vst.msk [vmem:[#allocation2 + $0x188] sm:$0xff] %vm1107_vm8, %v4899_v20  ;;  %v1160_v20 = vld [vmem:[#allocation2 + $0x120] sm:$0xff] }
  0x8e   : > { %2571 = vmatprep.subr.bf16.mxu0 %v5735_v55 }
  0x8f   : > { %4687 = vmatpush3.bf16.msra.mxu1 %v4874_v30  ;;  %v876_v58 = vor.u32 %v874_v31, %v873_v62  ;;  %v912_v22 = vor.u32 %v911_v18, %v871_v48  ;;  %v4903_v30 = vld [vmem:[%s5512_s10 + $0x40] sm:$0xff]   ;;  %v1217_v31 = vld [vmem:[#allocation2 + $0x2e8] sm:$0xff]  ;;  %v1227_v62 = vld [vmem:[#allocation2 + $0x338] sm:$0xff] }
  0x90   : > { %2286 = vmatmul.mubr.bf16.gmra.mrb[36].mxu0 %v5324_v53  ;;  %4688 = vmatprep.subr.bf16.mxu1 %v4876_v34  ;;  %v1208_v48 = vld [vmem:[#allocation2 + $0x2a0] sm:$0xff]  ;;  %1116 = vst.msk [vmem:[#allocation2 + $0x2c8] sm:$0xff] %vm1107_vm8, %v4903_v30  ;;  %v4904_v34 = vld [vmem:[%s5512_s10 + $0x48] sm:$0xff]   ;;  %v4905_v18 = vld [vmem:[%s5512_s10 + $0x50] sm:$0xff]  }
  0x91   : > { %2293 = vmatprep.mubr.bf16.mxu0 %v5624_v52  ;;  %2572 = vmatpush1.bf16.msra.mxu0 %v4878_v47  ;;  %v5772_v53 = vsel %vm5037_vm2, 0, %v876_v58  ;;  %v5776_v41 = vsel %vm5063_vm5, %v912_v22, 0  ;;  %vm1919_vm2 = vcmask 1043456   ;;  %v1218_v47 = vld [vmem:[#allocation2 + $0x2f0] sm:$0xff]  ;;  %1117 = vst.msk [vmem:[#allocation2 + $0x318] sm:$0xff] %vm1107_vm8, %v4904_v34  ;;  %1118 = vst.msk [vmem:[#allocation2 + $0x368] sm:$0xff] %vm1107_vm8, %v4905_v18 }
  0x92   : > { %2573 = vmatprep.subr.bf16.mxu0 %v5735_v55  ;;  %2125 = vmatmul.mubr.bf16.gmra.mrb[36].mxu1 %v5583_v42  ;;  %v4885_v42 = vld [vmem:[%s6596_s6 + $0x228] sm:$0xff]   ;;  %v4906_v58 = vld [vmem:[%s5512_s10 + $0x58] sm:$0xff]   ;;  %v1238_v22 = vld [vmem:[#allocation2 + $0x390] sm:$0xff]  ;;  %vm3096_vm5 = vcmask 1041408  }
  0x93   : > { %2132 = vmatprep.mubr.bf16.mxu1 %v5435_v39  ;;  %4689 = vmatpush3.bf16.msra.mxu1 %v4877_v4  ;;  %v4884_v39 = vld [vmem:[%s6596_s6 + $0x1a0] sm:$0xff]   ;;  %1119 = vst.msk [vmem:[#allocation2 + $0x3b8] sm:$0xff] %vm1107_vm8, %v4906_v58 }
  0x94   : > { %4690 = vmatprep.subr.bf16.mxu1 %v4879_v35  ;;  %v1228_v4 = vld [vmem:[#allocation2 + $0x340] sm:$0xff] }
  0x95   : > { %2574 = vmatpush1.bf16.msra.mxu0 %v4881_v9  ;;  %v4907_v35 = vld [vmem:[%s5512_s10 + $0x60] sm:$0xff]   ;;  %v4909_v9 = vld [vmem:[%s5512_s10 + $0x70] sm:$0xff]  }
  0x96   : > { %2575 = vmatprep.subr.bf16.mxu0 %v5735_v55  ;;  %1120 = vst.msk [vmem:[#allocation2 + $0x408] sm:$0xff] %vm1107_vm8, %v4907_v35  ;;  %1122 = vst.msk [vmem:[#allocation2 + $0x4a8] sm:$0xff] %vm1107_vm8, %v4909_v9  ;;  %v1193_v9 = vld [vmem:[#allocation2 + $0x228] sm:$0xff] }
  0x97   : > { %4691 = vmatpush3.bf16.msra.mxu1 %v4880_v5  ;;  %v1133_v5 = vld [vmem:[#allocation2 + $0x48] sm:$0xff] }
  0x98   : > { %2294 = vmatmul.mubr.bf16.gmra.mrb[40].mxu0 %v5375_v17  ;;  %4692 = vmatprep.subr.bf16.mxu1 %v4883_v36  ;;  %v4898_v17 = vld [vmem:[%s5512_s10 + $0x18] sm:$0xff]  }
  0x99   : > { %2301 = vmatprep.mubr.bf16.mxu0 %v5628_v60  ;;  %2576 = vmatpush1.bf16.msra.mxu0 %v4882_v23  ;;  %1111 = vst.msk [vmem:[#allocation2 + $0x138] sm:$0xff] %vm1107_vm8, %v4898_v17  ;;  %v1143_v36 = vld [vmem:[#allocation2 + $0x98] sm:$0xff]  ;;  %v1140_v17 = vld [vmem:[#allocation2 + $0x80] sm:$0xff] }
  0x9a   : > { %2577 = vmatprep.subr.bf16.mxu0 %v5735_v55  ;;  %2133 = vmatmul.mubr.bf16.gmra.mrb[40].mxu1 %v5593_v44 }
  0x9b   : > { %2140 = vmatprep.mubr.bf16.mxu1 %v5491_v40  ;;  %4693 = vmatpush3.bf16.msra.mxu1 %v4884_v39  ;;  %v4890_v40 = vld [vmem:[%s6596_s6 + $0x1b0] sm:$0xff]  }
  0x9c   : > { %4694 = vmatprep.subr.bf16.mxu1 %v4886_v7  ;;  %v1130_v39 = vld [vmem:[#allocation2 + $0x30] sm:$0xff]  ;;  %v1153_v7 = vld [vmem:[#allocation2 + $0xe8] sm:$0xff] }
  0x9d   : > { %2578 = vmatpush1.bf16.msra.mxu0 %v4885_v42  ;;  %v1141_v42 = vld [vmem:[#allocation2 + $0x88] sm:$0xff] }
  0x9e   : > { %2579 = vmatprep.subr.bf16.mxu0 %v5735_v55 }
  0x9f   : > { %4695 = vmatpush3.bf16.msra.mxu1 %v4887_v59  ;;  %v1151_v59 = vld [vmem:[#allocation2 + $0xd8] sm:$0xff] }
  0xa0   : > { %2302 = vmatmul.mubr.bf16.gmra.mrb[44].mxu0 %v5441_v3  ;;  %4696 = vmatprep.subr.bf16.mxu1 %v4889_v51  ;;  %v4894_v3 = vld [vmem:[%s6596_s6 + $0x240] ss:$0 sps:$4 sm:$0xff]   ;;  %v1150_v51 = vld [vmem:[#allocation2 + $0xd0] sm:$0xff] }
  0xa1   : > { %2309 = vmatprep.mubr.bf16.mxu0 %v5638_v12  ;;  %2580 = vmatpush1.bf16.msra.mxu0 %v4888_v38  ;;  %v1921_v45 = vsel %vm1919_vm2, %v4894_v3, 0  ;;  %v1163_v38 = vld [vmem:[#allocation2 + $0x138] sm:$0xff] }
  0xa2   : > { %2581 = vmatprep.subr.bf16.mxu0 %v5735_v55  ;;  %2141 = vmatmul.mubr.bf16.gmra.mrb[44].mxu1 %v5624_v52 }
  0xa3   : > { %2148 = vmatprep.mubr.bf16.mxu1 %v5548_v2  ;;  %4697 = vmatpush3.bf16.msra.mxu1 %v4890_v40  ;;  %v4900_v2 = vld [vmem:[%s5512_s10 + $0x28] sm:$0xff]  }
  0xa4   : > { %4698 = vmatprep.subr.bf16.mxu1 %v4892_v50  ;;  %1113 = vst.msk [vmem:[#allocation2 + $0x1d8] sm:$0xff] %vm1107_vm8, %v4900_v2  ;;  %v1173_v40 = vld [vmem:[#allocation2 + $0x188] sm:$0xff] }
  0xa5   : > { %2582 = vmatpush1.bf16.msra.mxu0 %v4891_v63 }
  0xa6   : > { %2583 = vmatprep.subr.bf16.mxu0 %v5735_v55 }
  0xa7   : > { %4699 = vmatpush3.bf16.msra.mxu1 %v4893_v56 }
  0xa8   : > { %2310 = vmatmul.mubr.bf16.gmra.mrb[48].mxu0 %v5495_v6  ;;  %v1197_v6 = vld [vmem:[#allocation2 + $0x248] sm:$0xff] }
  0xa9   : > { %2317 = vmatprep.mubr.bf16.mxu0 %v5644_v8  ;;  %2584 = vmatpush1.bf16.msra.mxu0 %v1921_v45  ;;  %v1171_v45 = vld [vmem:[#allocation2 + $0x178] sm:$0xff] }
  0xaa   : > { %2149 = vmatmul.mubr.bf16.gmra.mrb[48].mxu1 %v5628_v60 }
  0xab   : > { %2156 = vmatprep.mubr.bf16.mxu1 %v5601_v24  ;;  %v4902_v24 = vld [vmem:[%s5512_s10 + $0x38] sm:$0xff]  }
  0xac   : > { %1115 = vst.msk [vmem:[#allocation2 + $0x278] sm:$0xff] %vm1107_vm8, %v4902_v24 }
  0xb0   : > { %2318 = vmatmul.mubr.bf16.gmra.mrb[52].mxu0 %v5556_v43  ;;  %v1198_v43 = vld [vmem:[#allocation2 + $0x250] sm:$0xff] }
  0xb1   : > { %2325 = vmatprep.mubr.bf16.mxu0 %v5674_v19 }
  0xb2   : > { %2157 = vmatmul.mubr.bf16.gmra.mrb[52].mxu1 %v5638_v12 }
  0xb3   : > { %2164 = vmatprep.mubr.bf16.mxu1 %v5670_v32 }
  0xb8   : > { %2326 = vmatmul.mubr.bf16.gmra.mrb[56].mxu0 %v5605_v11 }
  0xb9   : > { %2333 = vmatprep.mubr.bf16.mxu0 %v5648_v21 }
  0xba   : > { %2165 = vmatmul.mubr.bf16.gmra.mrb[56].mxu1 %v5644_v8 }
  0xbb   : > { %2172 = vmatprep.mubr.bf16.mxu1 %v1197_v6 }
  0xc0   : > { %2334 = vmatmul.mubr.bf16.gmra.mrb[60].mxu0 %v1198_v43 }
  0xc1   : > { %2341 = vmatprep.mubr.bf16.mxu0 %v5683_v10 }
  0xc2   : > { %2173 = vmatmul.mubr.bf16.gmra.mrb[60].mxu1 %v5674_v19 }
  0xc3   : > { %2180 = vmatprep.mubr.bf16.mxu1 %v1207_v0  ;;  %v1183_v0 = vld [vmem:[#allocation2 + $0x1d8] sm:$0xff] }
  0xc8   : > { %2342 = vmatmul.mubr.bf16.gmra.mrb[64].mxu0 %v1208_v48 }
  0xc9   : > { %2349 = vmatprep.mubr.bf16.mxu0 %v5687_v14 }
  0xca   : > { %2181 = vmatmul.mubr.bf16.gmra.mrb[64].mxu1 %v5648_v21 }
  0xcb   : > { %2188 = vmatprep.mubr.bf16.mxu1 %v1217_v31 }
  0xd0   : > { %2350 = vmatmul.mubr.bf16.gmra.mrb[68].mxu0 %v1218_v47  ;;  %v1170_v47 = vld [vmem:[#allocation2 + $0x170] sm:$0xff] }
  0xd1   : > { %2357 = vmatprep.mubr.bf16.mxu0 %v5696_v27 }
  0xd2   : > { %2189 = vmatmul.mubr.bf16.gmra.mrb[68].mxu1 %v5683_v10 }
  0xd3   : > { %2196 = vmatprep.mubr.bf16.mxu1 %v1227_v62 }
  0xd8   : > { %2358 = vmatmul.mubr.bf16.gmra.mrb[72].mxu0 %v1228_v4 }
  0xd9   : > { %2365 = vmatprep.mubr.bf16.mxu0 %v5700_v61 }
  0xda   : > { %2197 = vmatmul.mubr.bf16.gmra.mrb[72].mxu1 %v5687_v14 }
  0xdb   : > { %2204 = vmatprep.mubr.bf16.mxu1 %v5476_v37  ;;  %v4908_v37 = vld [vmem:[%s5512_s10 + $0x68] sm:$0xff]  }
  0xdc   : > { %1121 = vst.msk [vmem:[#allocation2 + $0x458] sm:$0xff] %vm1107_vm8, %v4908_v37 }
  0xe0   : > { %2366 = vmatmul.mubr.bf16.gmra.mrb[76].mxu0 %v1238_v22 }
  0xe1   : > { %2373 = vmatprep.mubr.bf16.mxu0 %v5704_v57 }
  0xe2   : > { %2205 = vmatmul.mubr.bf16.gmra.mrb[76].mxu1 %v5696_v27 }
  0xe3   : > { %2212 = vmatprep.mubr.bf16.mxu1 %v5526_v26  ;;  %v4910_v26 = vld [vmem:[%s5512_s10 + $0x78] sm:$0xff]  }
  0xe4   : > { %1123 = vst.msk [vmem:[#allocation2 + $0x4f8] sm:$0xff] %vm1107_vm8, %v4910_v26 }
  0xe8   : > { %2374 = vmatmul.mubr.bf16.gmra.mrb[80].mxu0 %v5463_v13 }
  0xe9   : > { %2381 = vmatprep.mubr.bf16.mxu0 %v5708_v16 }
  0xea   : > { %2213 = vmatmul.mubr.bf16.gmra.mrb[80].mxu1 %v5700_v61 }
  0xeb   : > { %2220 = vmatprep.mubr.bf16.mxu1 %v5565_v1 }
  0xf0   : > { %2382 = vmatmul.mubr.bf16.gmra.mrb[84].mxu0 %v5531_v29 }
  0xf1   : > { %2389 = vmatprep.mubr.bf16.mxu0 %v5722_v25 }
  0xf2   : > { %2221 = vmatmul.mubr.bf16.gmra.mrb[84].mxu1 %v5704_v57 }
  0xf3   : > { %2228 = vmatprep.mubr.bf16.mxu1 %v5634_v28 }
  0xf8   : > { %2390 = vmatmul.mubr.bf16.gmra.mrb[88].mxu0 %v5578_v33  ;;  %v1131_v33 = vld [vmem:[#allocation2 + $0x38] sm:$0xff] }
  0xf9   : > { %2397 = vmatprep.mubr.bf16.mxu0 %v5776_v41 }
  0xfa   : > { %2229 = vmatmul.mubr.bf16.gmra.mrb[88].mxu1 %v5708_v16 }
  0xfb   : > { %2236 = vmatprep.mubr.bf16.mxu1 %v5772_v53 }
 0x100   : > { %2398 = vmatmul.mubr.bf16.gmra.mrb[92].mxu0 %v5741_v49 }
 0x101   : > { %v4364_v13 = vpop.f32.mrb[0].mxu0  ;;  %4120 = vmatprep.mubr.msk.bf16.mxu0 %vm1107_vm8, %v1133_v5 }
 0x102   : > { %v4365_v1 = vpop.f32.mrb[1].mxu0  ;;  %2237 = vmatmul.mubr.bf16.gmra.mrb[92].mxu1 %v5722_v25 }
 0x103   : > { %v5897_v29 = vadd.f32 %v4365_v1, %v4364_v13  ;;  %v4367_v46 = vpop.f32.mrb[2].mxu0  ;;  %2438 = vmatprep.mubr.bf16.mxu1 %v1131_v33 }
 0x104   : > { %v4368_v28 = vpop.f32.mrb[3].mxu0 }
 0x105   : > { %v5900_v23 = vadd.f32 %v4368_v28, %v4367_v46  ;;  %v1191_v28 = vld [vmem:[#allocation2 + $0x218] sm:$0xff] }
 0x108   : > { %2600 = vmatmul.mubr.bf16.vlgmr.msra.gmra.mrb[96].mxu0 %v5593_v44  ;;  %v1161_v44 = vld [vmem:[#allocation2 + $0x128] sm:$0xff] }
 0x109   : > { %4121 = vmatprep.mubr.msk.bf16.mxu0 %vm1107_vm8, %v1143_v36 }
 0x10a   : > { %2439 = vmatmul.mubr.bf16.vlgmr.msra.gmra.mrb[96].mxu1 %v1130_v39 }
 0x10b   : > { %2446 = vmatprep.mubr.bf16.mxu1 %v1141_v42 }
 0x110   : > { %2608 = vmatmul.mubr.bf16.gmra.mrb[100].mxu0 %v5624_v52 }
 0x111   : > { %4122 = vmatprep.mubr.msk.bf16.mxu0 %vm1107_vm8, %v1153_v7 }
 0x112   : > { %2447 = vmatmul.mubr.bf16.gmra.mrb[100].mxu1 %v1140_v17  ;;  %v1203_v17 = vld [vmem:[#allocation2 + $0x278] sm:$0xff] }
 0x113   : > { %2454 = vmatprep.mubr.bf16.mxu1 %v1151_v59 }
 0x118   : > { %2616 = vmatmul.mubr.bf16.gmra.mrb[104].mxu0 %v5628_v60 }
 0x119   : > { %4123 = vmatprep.mubr.msk.bf16.mxu0 %vm1107_vm8, %v1163_v38 }
 0x11a   : > { %2455 = vmatmul.mubr.bf16.gmra.mrb[104].mxu1 %v1150_v51 }
 0x11b   : > { %2462 = vmatprep.mubr.bf16.mxu1 %v1161_v44 }
 0x11d   : > { %v4412_v63 = vpop.f32.mrb[0].mxu1 }
 0x11e   : > { %v4413_v50 = vpop.f32.mrb[1].mxu1 }
 0x11f   : > { %v5912_v52 = vadd.f32 %v4413_v50, %v4412_v63  ;;  %v4415_v3 = vpop.f32.mrb[2].mxu1  ;;  %v1201_v63 = vld [vmem:[#allocation2 + $0x268] sm:$0xff] }
 0x120   : > { %2624 = vmatmul.mubr.bf16.gmra.mrb[108].mxu0 %v5638_v12  ;;  %v4416_v56 = vpop.f32.mrb[3].mxu1 }
 0x121   : > { %4124 = vmatprep.mubr.msk.bf16.mxu0 %vm1107_vm8, %v1173_v40  ;;  %v5915_v60 = vadd.f32 %v4416_v56, %v4415_v3  ;;  %v1190_v40 = vld [vmem:[#allocation2 + $0x210] sm:$0xff] }
 0x122   : > { %2463 = vmatmul.mubr.bf16.gmra.mrb[108].mxu1 %v1160_v20 }
 0x123   : > { %v4370_v2 = vpop.f32.mrb[4].mxu0  ;;  %2470 = vmatprep.mubr.bf16.mxu1 %v1171_v45 }
 0x124   : > { %v4371_v15 = vpop.f32.mrb[5].mxu0 }
 0x125   : > { %v5917_v6 = vadd.f32 %v4371_v15, %v4370_v2  ;;  %v4373_v24 = vpop.f32.mrb[6].mxu0  ;;  %v4418_v12 = vpop.f32.mrb[4].mxu1  ;;  %v1213_v15 = vld [vmem:[#allocation2 + $0x2c8] sm:$0xff] }
 0x126   : > { %v4374_v43 = vpop.f32.mrb[7].mxu0  ;;  %v4419_v48 = vpop.f32.mrb[5].mxu1 }
 0x127   : > { %v5919_v30 = vadd.f32 %v4374_v43, %v4373_v24  ;;  %v5922_v31 = vadd.f32 %v4419_v48, %v4418_v12  ;;  %v4421_v34 = vpop.f32.mrb[6].mxu1  ;;  %v1200_v48 = vld [vmem:[#allocation2 + $0x260] sm:$0xff] }
 0x128   : > { %2632 = vmatmul.mubr.bf16.gmra.mrb[112].mxu0 %v5644_v8  ;;  %v4422_v62 = vpop.f32.mrb[7].mxu1 }
 0x129   : > { %4125 = vmatprep.mubr.msk.bf16.mxu0 %vm1107_vm8, %v1183_v0  ;;  %v5925_v18 = vadd.f32 %v4422_v62, %v4421_v34 }
 0x12a   : > { %2471 = vmatmul.mubr.bf16.gmra.mrb[112].mxu1 %v1170_v47  ;;  %v1211_v47 = vld [vmem:[#allocation2 + $0x2b8] sm:$0xff] }
 0x12b   : > { %v4376_v4 = vpop.f32.mrb[8].mxu0  ;;  %2478 = vmatprep.mubr.bf16.mxu1 %v5605_v11 }
 0x12c   : > { %v4377_v58 = vpop.f32.mrb[9].mxu0 }
 0x12d   : > { %v5927_v22 = vadd.f32 %v4377_v58, %v4376_v4  ;;  %v4379_v35 = vpop.f32.mrb[10].mxu0  ;;  %v4424_v8 = vpop.f32.mrb[8].mxu1 }
 0x12e   : > { %v4380_v37 = vpop.f32.mrb[11].mxu0  ;;  %v4425_v26 = vpop.f32.mrb[9].mxu1 }
 0x12f   : > { %v5930_v13 = vadd.f32 %v4380_v37, %v4379_v35  ;;  %v5933_v1 = vadd.f32 %v4425_v26, %v4424_v8  ;;  %v4427_v46 = vpop.f32.mrb[10].mxu1  ;;  %v1223_v8 = vld [vmem:[#allocation2 + $0x318] sm:$0xff] }
 0x130   : > { %2640 = vmatmul.mubr.bf16.gmra.mrb[116].mxu0 %v5674_v19  ;;  %v4428_v5 = vpop.f32.mrb[11].mxu1 }
 0x131   : > { %4126 = vmatprep.mubr.msk.bf16.mxu0 %vm1107_vm8, %v1193_v9  ;;  %v5936_v33 = vadd.f32 %v4428_v5, %v4427_v46 }
 0x132   : > { %2479 = vmatmul.mubr.bf16.gmra.mrb[116].mxu1 %v5670_v32 }
 0x133   : > { %v4382_v36 = vpop.f32.mrb[12].mxu0  ;;  %2486 = vmatprep.mubr.bf16.mxu1 %v1191_v28 }
 0x134   : > { %v4383_v11 = vpop.f32.mrb[13].mxu0 }
 0x135   : > { %v5939_v39 = vadd.f32 %v4383_v11, %v4382_v36  ;;  %v4385_v42 = vpop.f32.mrb[14].mxu0  ;;  %v4430_v19 = vpop.f32.mrb[12].mxu1  ;;  %v1210_v36 = vld [vmem:[#allocation2 + $0x2b0] sm:$0xff] }
 0x136   : > { %v4386_v7 = vpop.f32.mrb[15].mxu0  ;;  %v4431_v38 = vpop.f32.mrb[13].mxu1 }
 0x137   : > { %v5941_v59 = vadd.f32 %v4386_v7, %v4385_v42  ;;  %v5944_v51 = vadd.f32 %v4431_v38, %v4430_v19  ;;  %v4433_v44 = vpop.f32.mrb[14].mxu1  ;;  %v1221_v42 = vld [vmem:[#allocation2 + $0x308] sm:$0xff] }
 0x138   : > { %2648 = vmatmul.mubr.bf16.gmra.mrb[120].mxu0 %v5648_v21  ;;  %v4434_v32 = vpop.f32.mrb[15].mxu1 }
 0x139   : > { %4127 = vmatprep.mubr.msk.bf16.mxu0 %vm1107_vm8, %v1203_v17  ;;  %v5947_v50 = vadd.f32 %v4434_v32, %v4433_v44  ;;  %v1233_v32 = vld [vmem:[#allocation2 + $0x368] sm:$0xff] }
 0x13a   : > { %2487 = vmatmul.mubr.bf16.gmra.mrb[120].mxu1 %v1190_v40 }
 0x13b   : > { %v4388_v3 = vpop.f32.mrb[16].mxu0  ;;  %2494 = vmatprep.mubr.bf16.mxu1 %v1201_v63 }
 0x13c   : > { %v4389_v20 = vpop.f32.mrb[17].mxu0 }
 0x13d   : > { %v5949_v56 = vadd.f32 %v4389_v20, %v4388_v3  ;;  %v4391_v45 = vpop.f32.mrb[18].mxu0  ;;  %v4436_v21 = vpop.f32.mrb[16].mxu1 }
 0x13e   : > { %v4392_v2 = vpop.f32.mrb[19].mxu0  ;;  %v4437_v43 = vpop.f32.mrb[17].mxu1 }
 0x13f   : > { %v5951_v24 = vadd.f32 %v4392_v2, %v4391_v45  ;;  %v5954_v0 = vadd.f32 %v4437_v43, %v4436_v21  ;;  %v4439_v12 = vpop.f32.mrb[18].mxu1  ;;  %v1220_v2 = vld [vmem:[#allocation2 + $0x300] sm:$0xff]  ;;  %v1231_v21 = vld [vmem:[#allocation2 + $0x358] sm:$0xff] }
 0x140   : > { %2656 = vmatmul.mubr.bf16.gmra.mrb[124].mxu0 %v5683_v10  ;;  %v4440_v34 = vpop.f32.mrb[19].mxu1 }
 0x141   : > { %4128 = vmatprep.mubr.msk.bf16.mxu0 %vm1107_vm8, %v1213_v15  ;;  %v5957_v62 = vadd.f32 %v4440_v34, %v4439_v12 }
 0x142   : > { %2495 = vmatmul.mubr.bf16.gmra.mrb[124].mxu1 %v1200_v48 }
 0x143   : > { %v4394_v4 = vpop.f32.mrb[20].mxu0  ;;  %2502 = vmatprep.mubr.bf16.mxu1 %v1211_v47 }
 0x144   : > { %v4395_v58 = vpop.f32.mrb[21].mxu0 }
 0x145   : > { %v5959_v35 = vadd.f32 %v4395_v58, %v4394_v4  ;;  %v4397_v37 = vpop.f32.mrb[22].mxu0  ;;  %v4442_v10 = vpop.f32.mrb[20].mxu1  ;;  %v1243_v58 = vld [vmem:[#allocation2 + $0x3b8] sm:$0xff] }
 0x146   : > { %v4398_v9 = vpop.f32.mrb[23].mxu0  ;;  %v4443_v46 = vpop.f32.mrb[21].mxu1 }
 0x147   : > { %v5961_v26 = vadd.f32 %v4398_v9, %v4397_v37  ;;  %v5964_v5 = vadd.f32 %v4443_v46, %v4442_v10  ;;  %v4445_v28 = vpop.f32.mrb[22].mxu1  ;;  %v1230_v46 = vld [vmem:[#allocation2 + $0x350] sm:$0xff] }
 0x148   : > { %2664 = vmatmul.mubr.bf16.gmra.mrb[128].mxu0 %v5687_v14  ;;  %v4446_v11 = vpop.f32.mrb[23].mxu1 }
 0x149   : > { %4129 = vmatprep.mubr.msk.bf16.mxu0 %vm1107_vm8, %v1223_v8  ;;  %v5967_v7 = vadd.f32 %v4446_v11, %v4445_v28 }
 0x14a   : > { %2503 = vmatmul.mubr.bf16.gmra.mrb[128].mxu1 %v1210_v36  ;;  %v1241_v36 = vld [vmem:[#allocation2 + $0x3a8] sm:$0xff] }
 0x14b   : > { %v4400_v17 = vpop.f32.mrb[24].mxu0  ;;  %2510 = vmatprep.mubr.bf16.mxu1 %v1221_v42 }
 0x14c   : > { %v4401_v19 = vpop.f32.mrb[25].mxu0 }
 0x14d   : > { %v5969_v38 = vadd.f32 %v4401_v19, %v4400_v17  ;;  %v4403_v44 = vpop.f32.mrb[26].mxu0  ;;  %v4448_v14 = vpop.f32.mrb[24].mxu1 }
 0x14e   : > { %v4404_v40 = vpop.f32.mrb[27].mxu0  ;;  %v4449_v3 = vpop.f32.mrb[25].mxu1 }
 0x14f   : > { %v5971_v63 = vadd.f32 %v4404_v40, %v4403_v44  ;;  %v5974_v20 = vadd.f32 %v4449_v3, %v4448_v14  ;;  %v4451_v45 = vpop.f32.mrb[26].mxu1  ;;  %v5992_v3 = vld [vmem:[%s6597_s7] ss:$0 sm:$0xff] }
 0x150   : > { %2672 = vmatmul.mubr.bf16.gmra.mrb[132].mxu0 %v5696_v27  ;;  %v4452_v15 = vpop.f32.mrb[27].mxu1 }
 0x151   : > { %4130 = vmatprep.mubr.msk.bf16.mxu0 %vm1107_vm8, %v1233_v32  ;;  %v5977_v43 = vadd.f32 %v4452_v15, %v4451_v45  ;;  %v1253_v32 = vld [vmem:[#allocation2 + $0x408] sm:$0xff] }
 0x152   : > { %2511 = vmatmul.mubr.bf16.gmra.mrb[132].mxu1 %v1220_v2  ;;  %v1958_v2 = vadd.f32 %v5897_v29, %v5992_v3 }
 0x153   : > { %v4406_v12 = vpop.f32.mrb[28].mxu0  ;;  %2518 = vmatprep.mubr.bf16.mxu1 %v1231_v21 }
 0x154   : > { %v4407_v48 = vpop.f32.mrb[29].mxu0 }
 0x155   : > { %v5979_v34 = vadd.f32 %v4407_v48, %v4406_v12  ;;  %v4409_v47 = vpop.f32.mrb[30].mxu0  ;;  %v4454_v27 = vpop.f32.mrb[28].mxu1  ;;  %v1240_v12 = vld [vmem:[#allocation2 + $0x3a0] sm:$0xff] }
 0x156   : > { %v4410_v4 = vpop.f32.mrb[31].mxu0  ;;  %v4455_v9 = vpop.f32.mrb[29].mxu1 }
 0x157   : > { %v5981_v37 = vadd.f32 %v4410_v4, %v4409_v47  ;;  %v5984_v8 = vadd.f32 %v4455_v9, %v4454_v27  ;;  %v4457_v10 = vpop.f32.mrb[30].mxu1  ;;  %v1251_v47 = vld [vmem:[#allocation2 + $0x3f8] sm:$0xff]  ;;  %v1961_v4 = vadd.f32 %v5900_v23, %v5992_v3  ;;  %v1966_v23 = vadd.f32 %v5917_v6, %v5992_v3 }
 0x158   : > { %2680 = vmatmul.mubr.bf16.gmra.mrb[136].mxu0 %v5700_v61  ;;  %v4458_v28 = vpop.f32.mrb[31].mxu1 }
 0x159   : > { %4131 = vmatprep.mubr.msk.bf16.mxu0 %vm1107_vm8, %v1243_v58  ;;  %v5987_v11 = vadd.f32 %v4458_v28, %v4457_v10 }
 0x15a   : > { %2519 = vmatmul.mubr.bf16.gmra.mrb[136].mxu1 %v1230_v46 }
 0x15b   : > { %v4588_v42 = vpop.f32.mrb[32].mxu0  ;;  %2526 = vmatprep.mubr.bf16.mxu1 %v1241_v36 }
 0x15c   : > { %v4589_v17 = vpop.f32.mrb[33].mxu0 }
 0x15d   : > { %v4590_v19 = vadd.f32 %v4589_v17, %v4588_v42  ;;  %v4591_v44 = vpop.f32.mrb[34].mxu0  ;;  %v4476_v14 = vpop.f32.mrb[32].mxu1  ;;  %v1263_v42 = vld [vmem:[#allocation2 + $0x458] sm:$0xff] }
 0x15e   : > { %v4592_v40 = vpop.f32.mrb[35].mxu0  ;;  %v4477_v45 = vpop.f32.mrb[33].mxu1 }
 0x15f   : > { %v4593_v61 = vadd.f32 %v4592_v40, %v4591_v44  ;;  %v4478_v15 = vadd.f32 %v4477_v45, %v4476_v14  ;;  %v4479_v21 = vpop.f32.mrb[34].mxu1 }
 0x160   : > { %2688 = vmatmul.mubr.bf16.gmra.mrb[140].mxu0 %v5704_v57  ;;  %v4480_v48 = vpop.f32.mrb[35].mxu1 }
 0x161   : > { %4132 = vmatprep.mubr.msk.bf16.mxu0 %vm1107_vm8, %v1253_v32  ;;  %v2119_v58 = vadd.f32 %v4478_v15, %v1958_v2  ;;  %v4481_v27 = vadd.f32 %v4480_v48, %v4479_v21  ;;  %v1250_v2 = vld [vmem:[#allocation2 + $0x3f0] sm:$0xff]  ;;  %v1261_v15 = vld [vmem:[#allocation2 + $0x448] sm:$0xff]  ;;  %v1969_v21 = vadd.f32 %v5919_v30, %v5992_v3  ;;  %v1974_v30 = vadd.f32 %v5927_v22, %v5992_v3 }
 0x162   : > { %2527 = vmatmul.mubr.bf16.gmra.mrb[140].mxu1 %v1240_v12 }
 0x163   : > { %v4594_v9 = vpop.f32.mrb[36].mxu0  ;;  %v2122_v46 = vadd.f32 %v4481_v27, %v1961_v4  ;;  %v6000_v57 = vadd.f32 %v4590_v19, %v2119_v58  ;;  %2534 = vmatprep.mubr.bf16.mxu1 %v1251_v47 }
 0x164   : > { %v4595_v10 = vpop.f32.mrb[37].mxu0 }
 0x165   : > { %v4596_v28 = vadd.f32 %v4595_v10, %v4594_v9  ;;  %v4597_v29 = vpop.f32.mrb[38].mxu0  ;;  %v6002_v17 = vadd.f32 %v4593_v61, %v2122_v46  ;;  %v4482_v44 = vpop.f32.mrb[36].mxu1  ;;  %v1273_v9 = vld [vmem:[#allocation2 + $0x4a8] sm:$0xff] }
 0x166   : > { %v4598_v36 = vpop.f32.mrb[39].mxu0  ;;  %v4483_v32 = vpop.f32.mrb[37].mxu1 }
 0x167   : > { %v4599_v40 = vadd.f32 %v4598_v36, %v4597_v29  ;;  %v4484_v14 = vadd.f32 %v4483_v32, %v4482_v44  ;;  %v4485_v45 = vpop.f32.mrb[38].mxu1  ;;  %v1260_v32 = vld [vmem:[#allocation2 + $0x440] sm:$0xff] }
 0x168   : > { %2696 = vmatmul.mubr.bf16.gmra.mrb[144].mxu0 %v5708_v16  ;;  %v4486_v19 = vpop.f32.mrb[39].mxu1 }
 0x169   : > { %4133 = vmatprep.mubr.msk.bf16.mxu0 %vm1107_vm8, %v1263_v42  ;;  %v2127_v61 = vadd.f32 %v4484_v14, %v1966_v23  ;;  %v4487_v12 = vadd.f32 %v4486_v19, %v4485_v45  ;;  %v1977_v23 = vadd.f32 %v5930_v13, %v5992_v3  ;;  %v1982_v13 = vadd.f32 %v5939_v39, %v5992_v3  ;;  %v1282_v39 = vld [vmem:[#allocation2 + $0x4f0] sm:$0xff] }
 0x16a   : > { %2535 = vmatmul.mubr.bf16.gmra.mrb[144].mxu1 %v1250_v2 }
 0x16b   : > { %v4600_v48 = vpop.f32.mrb[40].mxu0  ;;  %v2130_v4 = vadd.f32 %v4487_v12, %v1969_v21  ;;  %v6010_v16 = vadd.f32 %v4596_v28, %v2127_v61  ;;  %2542 = vmatprep.mubr.bf16.mxu1 %v1261_v15  ;;  %v1283_v61 = vld [vmem:[#allocation2 + $0x4f8] sm:$0xff] }
 0x16c   : > { %v4601_v47 = vpop.f32.mrb[41].mxu0 }
 0x16d   : > { %v4602_v58 = vadd.f32 %v4601_v47, %v4600_v48  ;;  %v4603_v6 = vpop.f32.mrb[42].mxu0  ;;  %v6012_v10 = vadd.f32 %v4599_v40, %v2130_v4  ;;  %v4488_v46 = vpop.f32.mrb[40].mxu1 }
 0x16e   : > { %v4604_v27 = vpop.f32.mrb[43].mxu0  ;;  %v4489_v36 = vpop.f32.mrb[41].mxu1 }
 0x16f   : > { %v4605_v29 = vadd.f32 %v4604_v27, %v4603_v6  ;;  %v4490_v42 = vadd.f32 %v4489_v36, %v4488_v46  ;;  %v4491_v44 = vpop.f32.mrb[42].mxu1 }
 0x170   : > { %2704 = vmatmul.mubr.bf16.gmra.mrb[148].mxu0 %v5722_v25  ;;  %v4492_v28 = vpop.f32.mrb[43].mxu1 }
 0x171   : > { %4134 = vmatprep.mubr.msk.bf16.mxu0 %vm1107_vm8, %v1273_v9  ;;  %v2135_v14 = vadd.f32 %v4490_v42, %v1974_v30  ;;  %v4493_v40 = vadd.f32 %v4492_v28, %v4491_v44 }
 0x172   : > { %2543 = vmatmul.mubr.bf16.gmra.mrb[148].mxu1 %v1260_v32 }
 0x173   : > { %v4606_v45 = vpop.f32.mrb[44].mxu0  ;;  %v2138_v19 = vadd.f32 %v4493_v40, %v1977_v23  ;;  %v6020_v15 = vadd.f32 %v4602_v58, %v2135_v14  ;;  %2550 = vmatprep.mubr.bf16.mxu1 %v5741_v49  ;;  %v1985_v49 = vadd.f32 %v5941_v59, %v5992_v3  ;;  %v1990_v40 = vadd.f32 %v5949_v56, %v5992_v3 }
 0x174   : > { %v4607_v2 = vpop.f32.mrb[45].mxu0 }
 0x175   : > { %v4608_v25 = vadd.f32 %v4607_v2, %v4606_v45  ;;  %v4609_v21 = vpop.f32.mrb[46].mxu0  ;;  %v6023_v12 = vadd.f32 %v4605_v29, %v2138_v19  ;;  %v4494_v48 = vpop.f32.mrb[44].mxu1  ;;  %v1280_v2 = vld [vmem:[#allocation2 + $0x4e0] sm:$0xff] }
 0x176   : > { %v4610_v22 = vpop.f32.mrb[47].mxu0  ;;  %v4495_v4 = vpop.f32.mrb[45].mxu1 }
 0x177   : > { %v4611_v47 = vadd.f32 %v4610_v22, %v4609_v21  ;;  %v4496_v6 = vadd.f32 %v4495_v4, %v4494_v48  ;;  %v4497_v27 = vpop.f32.mrb[46].mxu1 }
 0x178   : > { %2712 = vmatmul.mubr.bf16.gmra.mrb[152].mxu0 %v5776_v41  ;;  %v4498_v58 = vpop.f32.mrb[47].mxu1 }
 0x179   : > { %4135 = vmatprep.mubr.msk.bf16.mxu0 %vm1107_vm8, %v1283_v61  ;;  %v2143_v9 = vadd.f32 %v4496_v6, %v1982_v13  ;;  %v4499_v46 = vadd.f32 %v4498_v58, %v4497_v27 }
 0x17a   : > { %2551 = vmatmul.mubr.bf16.gmra.mrb[152].mxu1 %v5772_v53 }
 0x17b   : > { %v4612_v29 = vpop.f32.mrb[48].mxu0  ;;  %v2146_v30 = vadd.f32 %v4499_v46, %v1985_v49  ;;  %v6032_v42 = vadd.f32 %v4608_v25, %v2143_v9  ;;  %2558 = vmatprep.mubr.bf16.mxu1 %v5735_v55  ;;  %v1993_v25 = vadd.f32 %v5951_v24, %v5992_v3  ;;  %v1998_v9 = vadd.f32 %v5959_v35, %v5992_v3 }
 0x17c   : > { %v4613_v36 = vpop.f32.mrb[49].mxu0 }
 0x17d   : > { %v4614_v41 = vadd.f32 %v4613_v36, %v4612_v29  ;;  %v4615_v44 = vpop.f32.mrb[50].mxu0  ;;  %v6035_v28 = vadd.f32 %v4611_v47, %v2146_v30  ;;  %v4500_v23 = vpop.f32.mrb[48].mxu1  ;;  %v2001_v36 = vadd.f32 %v5961_v26, %v5992_v3 }
 0x17e   : > { %v4616_v32 = vpop.f32.mrb[51].mxu0  ;;  %v4501_v59 = vpop.f32.mrb[49].mxu1 }
 0x17f   : > { %v4617_v14 = vadd.f32 %v4616_v32, %v4615_v44  ;;  %v4502_v53 = vadd.f32 %v4501_v59, %v4500_v23  ;;  %v4503_v45 = vpop.f32.mrb[50].mxu1 }
 0x180   : > { %2720 = vmatmul.mubr.bf16.gmra.mrb[156].mxu0 %v1282_v39  ;;  %v4504_v19 = vpop.f32.mrb[51].mxu1 }
 0x181   : > { %v2151_v21 = vadd.f32 %v4502_v53, %v1990_v40  ;;  %v4505_v55 = vadd.f32 %v4504_v19, %v4503_v45  ;;  %v2006_v19 = vadd.f32 %v5969_v38, %v5992_v3 }
 0x182   : > { %2559 = vmatmul.mubr.bf16.gmra.mrb[156].mxu1 %v1280_v2 }
 0x183   : > { %v4618_v22 = vpop.f32.mrb[52].mxu0  ;;  %v2154_v48 = vadd.f32 %v4505_v55, %v1993_v25  ;;  %v6041_v47 = vadd.f32 %v4614_v41, %v2151_v21  ;;  %v2009_v55 = vadd.f32 %v5971_v63, %v5992_v3 }
 0x184   : > { %v4619_v61 = vpop.f32.mrb[53].mxu0 }
 0x185   : > { %v4620_v4 = vadd.f32 %v4619_v61, %v4618_v22  ;;  %v4621_v13 = vpop.f32.mrb[54].mxu0  ;;  %v6043_v27 = vadd.f32 %v4617_v14, %v2154_v48  ;;  %v4506_v56 = vpop.f32.mrb[52].mxu1 }
 0x186   : > { %v4622_v6 = vpop.f32.mrb[55].mxu0  ;;  %v4507_v49 = vpop.f32.mrb[53].mxu1 }
 0x187   : > { %v4623_v58 = vadd.f32 %v4622_v6, %v4621_v13  ;;  %v4508_v24 = vadd.f32 %v4507_v49, %v4506_v56  ;;  %v4509_v46 = vpop.f32.mrb[54].mxu1 }
 0x188   : > { %v4510_v29 = vpop.f32.mrb[55].mxu1 }
 0x189   : > { %v2159_v30 = vadd.f32 %v4508_v24, %v1998_v9  ;;  %v4511_v41 = vadd.f32 %v4510_v29, %v4509_v46  ;;  %v2014_v29 = vadd.f32 %v5979_v34, %v5992_v3 }
 0x18b   : > { %v4624_v44 = vpop.f32.mrb[56].mxu0  ;;  %v2162_v32 = vadd.f32 %v4511_v41, %v2001_v36  ;;  %v6049_v23 = vadd.f32 %v4620_v4, %v2159_v30  ;;  %v2017_v41 = vadd.f32 %v5981_v37, %v5992_v3 }
 0x18c   : > { %v4625_v39 = vpop.f32.mrb[57].mxu0 }
 0x18d   : > { %v4626_v14 = vadd.f32 %v4625_v39, %v4624_v44  ;;  %v4627_v59 = vpop.f32.mrb[58].mxu0  ;;  %v6051_v53 = vadd.f32 %v4623_v58, %v2162_v32  ;;  %v4512_v45 = vpop.f32.mrb[56].mxu1 }
 0x18e   : > { %v4628_v40 = vpop.f32.mrb[59].mxu0  ;;  %v4513_v2 = vpop.f32.mrb[57].mxu1 }
 0x18f   : > { %v4629_v35 = vadd.f32 %v4628_v40, %v4627_v59  ;;  %v4514_v25 = vadd.f32 %v4513_v2, %v4512_v45  ;;  %v4515_v26 = vpop.f32.mrb[58].mxu1 }
 0x190   : > { %v4516_v21 = vpop.f32.mrb[59].mxu1 }
 0x191   : > { %v2167_v22 = vadd.f32 %v4514_v25, %v2006_v19  ;;  %v4517_v61 = vadd.f32 %v4516_v21, %v4515_v26  ;;  %v2022_v21 = vadd.f32 %v5912_v52, %v5992_v3 }
 0x193   : > { %v4630_v48 = vpop.f32.mrb[60].mxu0  ;;  %v2170_v13 = vadd.f32 %v4517_v61, %v2009_v55  ;;  %v6057_v6 = vadd.f32 %v4626_v14, %v2167_v22  ;;  %v2025_v61 = vadd.f32 %v5915_v60, %v5992_v3 }
 0x194   : > { %v4631_v4 = vpop.f32.mrb[61].mxu0 }
 0x195   : > { %v4632_v56 = vadd.f32 %v4631_v4, %v4630_v48  ;;  %v4633_v58 = vpop.f32.mrb[62].mxu0  ;;  %v6059_v9 = vadd.f32 %v4629_v35, %v2170_v13  ;;  %v4518_v24 = vpop.f32.mrb[60].mxu1 }
 0x196   : > { %v4634_v49 = vpop.f32.mrb[63].mxu0  ;;  %v4519_v46 = vpop.f32.mrb[61].mxu1 }
 0x197   : > { %v4635_v38 = vadd.f32 %v4634_v49, %v4633_v58  ;;  %v4520_v36 = vadd.f32 %v4519_v46, %v4518_v24  ;;  %v4521_v63 = vpop.f32.mrb[62].mxu1 }
 0x198   : > { %v4522_v30 = vpop.f32.mrb[63].mxu1 }
 0x199   : > { %v2175_v44 = vadd.f32 %v4520_v36, %v2014_v29  ;;  %v4523_v39 = vadd.f32 %v4522_v30, %v4521_v63  ;;  %v2030_v30 = vadd.f32 %v5922_v31, %v5992_v3 }
 0x19b   : > { %v4636_v32 = vpop.f32.mrb[64].mxu0  ;;  %v2178_v59 = vadd.f32 %v4523_v39, %v2017_v41  ;;  %v6065_v40 = vadd.f32 %v4632_v56, %v2175_v44  ;;  %v2033_v39 = vadd.f32 %v5925_v18, %v5992_v3 }
 0x19c   : > { %v4637_v14 = vpop.f32.mrb[65].mxu0 }
 0x19d   : > { %v4638_v45 = vadd.f32 %v4637_v14, %v4636_v32  ;;  %v4639_v35 = vpop.f32.mrb[66].mxu0  ;;  %v6067_v19 = vadd.f32 %v4635_v38, %v2178_v59  ;;  %v4524_v25 = vpop.f32.mrb[64].mxu1 }
 0x19e   : > { %v4640_v2 = vpop.f32.mrb[67].mxu0  ;;  %v4525_v26 = vpop.f32.mrb[65].mxu1 }
 0x19f   : > { %v4641_v34 = vadd.f32 %v4640_v2, %v4639_v35  ;;  %v4526_v55 = vadd.f32 %v4525_v26, %v4524_v25  ;;  %v4527_v37 = vpop.f32.mrb[66].mxu1 }
 0x1a0   : > { %v4528_v22 = vpop.f32.mrb[67].mxu1 }
 0x1a1   : > { %v2183_v48 = vadd.f32 %v4526_v55, %v2022_v21  ;;  %v4529_v4 = vadd.f32 %v4528_v22, %v4527_v37  ;;  %v2038_v22 = vadd.f32 %v5933_v1, %v5992_v3 }
 0x1a3   : > { %v4642_v13 = vpop.f32.mrb[68].mxu0  ;;  %v2186_v58 = vadd.f32 %v4529_v4, %v2025_v61  ;;  %v6073_v49 = vadd.f32 %v4638_v45, %v2183_v48  ;;  %v2041_v4 = vadd.f32 %v5936_v33, %v5992_v3 }
 0x1a4   : > { %v4643_v56 = vpop.f32.mrb[69].mxu0 }
 0x1a5   : > { %v4644_v24 = vadd.f32 %v4643_v56, %v4642_v13  ;;  %v4645_v38 = vpop.f32.mrb[70].mxu0  ;;  %v6075_v29 = vadd.f32 %v4641_v34, %v2186_v58  ;;  %v4530_v36 = vpop.f32.mrb[68].mxu1 }
 0x1a6   : > { %v4646_v46 = vpop.f32.mrb[71].mxu0  ;;  %v4531_v63 = vpop.f32.mrb[69].mxu1 }
 0x1a7   : > { %v4647_v52 = vadd.f32 %v4646_v46, %v4645_v38  ;;  %v4532_v41 = vadd.f32 %v4531_v63, %v4530_v36  ;;  %v4533_v60 = vpop.f32.mrb[70].mxu1 }
 0x1a8   : > { %v4534_v44 = vpop.f32.mrb[71].mxu1 }
 0x1a9   : > { %v2191_v32 = vadd.f32 %v4532_v41, %v2030_v30  ;;  %v4535_v14 = vadd.f32 %v4534_v44, %v4533_v60  ;;  %v2046_v44 = vadd.f32 %v5944_v51, %v5992_v3 }
 0x1ab   : > { %v4648_v59 = vpop.f32.mrb[72].mxu0  ;;  %v2194_v35 = vadd.f32 %v4535_v14, %v2033_v39  ;;  %v6081_v2 = vadd.f32 %v4644_v24, %v2191_v32  ;;  %v2049_v14 = vadd.f32 %v5947_v50, %v5992_v3 }
 0x1ac   : > { %v4649_v45 = vpop.f32.mrb[73].mxu0 }
 0x1ad   : > { %v4650_v25 = vadd.f32 %v4649_v45, %v4648_v59  ;;  %v4651_v34 = vpop.f32.mrb[74].mxu0  ;;  %v6083_v21 = vadd.f32 %v4647_v52, %v2194_v35  ;;  %v4536_v55 = vpop.f32.mrb[72].mxu1 }
 0x1ae   : > { %v4652_v26 = vpop.f32.mrb[75].mxu0  ;;  %v4537_v37 = vpop.f32.mrb[73].mxu1 }
 0x1af   : > { %6608 = vst [vmem:[#allocation3_spill] sm:$0xff] %v6083_v21  ;;  %v4653_v31 = vadd.f32 %v4652_v26, %v4651_v34  ;;  %v4538_v61 = vadd.f32 %v4537_v37, %v4536_v55  ;;  %v4539_v18 = vpop.f32.mrb[74].mxu1 }
 0x1b0   : > { %v4540_v48 = vpop.f32.mrb[75].mxu1 }
 0x1b1   : > { %v2199_v13 = vadd.f32 %v4538_v61, %v2038_v22  ;;  %v4541_v56 = vadd.f32 %v4540_v48, %v4539_v18  ;;  %v2054_v48 = vadd.f32 %v5954_v0, %v5992_v3 }
 0x1b3   : > { %v4654_v58 = vpop.f32.mrb[76].mxu0  ;;  %v2202_v38 = vadd.f32 %v4541_v56, %v2041_v4  ;;  %v6089_v46 = vadd.f32 %v4650_v25, %v2199_v13  ;;  %v2057_v56 = vadd.f32 %v5957_v62, %v5992_v3 }
 0x1b4   : > { %v4655_v24 = vpop.f32.mrb[77].mxu0 }
 0x1b5   : > { %6609 = vst [vmem:[#allocation4_spill] sm:$0xff] %v6089_v46  ;;  %v4656_v36 = vadd.f32 %v4655_v24, %v4654_v58  ;;  %v4657_v52 = vpop.f32.mrb[78].mxu0  ;;  %v6091_v30 = vadd.f32 %v4653_v31, %v2202_v38  ;;  %v4542_v41 = vpop.f32.mrb[76].mxu1 }
 0x1b6   : > { %v4658_v63 = vpop.f32.mrb[79].mxu0  ;;  %v4543_v60 = vpop.f32.mrb[77].mxu1 }
 0x1b7   : > { %6610 = vst [vmem:[#allocation5_spill] sm:$0xff] %v6091_v30  ;;  %v4659_v1 = vadd.f32 %v4658_v63, %v4657_v52  ;;  %v4544_v39 = vadd.f32 %v4543_v60, %v4542_v41  ;;  %v4545_v33 = vpop.f32.mrb[78].mxu1 }
 0x1b8   : > { %v4546_v32 = vpop.f32.mrb[79].mxu1 }
 0x1b9   : > { %v2207_v59 = vadd.f32 %v4544_v39, %v2046_v44  ;;  %v4547_v45 = vadd.f32 %v4546_v32, %v4545_v33  ;;  %v2062_v32 = vadd.f32 %v5964_v5, %v5992_v3 }
 0x1bb   : > { %v4660_v35 = vpop.f32.mrb[80].mxu0  ;;  %v2210_v34 = vadd.f32 %v4547_v45, %v2049_v14  ;;  %v6097_v26 = vadd.f32 %v4656_v36, %v2207_v59  ;;  %v2065_v45 = vadd.f32 %v5967_v7, %v5992_v3 }
 0x1bc   : > { %v4661_v25 = vpop.f32.mrb[81].mxu0 }
 0x1bd   : > { %6611 = vst [vmem:[#allocation6_spill] sm:$0xff] %v6097_v26  ;;  %v4662_v55 = vadd.f32 %v4661_v25, %v4660_v35  ;;  %v4663_v31 = vpop.f32.mrb[82].mxu0  ;;  %v6099_v22 = vadd.f32 %v4659_v1, %v2210_v34  ;;  %v4548_v61 = vpop.f32.mrb[80].mxu1 }
 0x1be   : > { %v4664_v37 = vpop.f32.mrb[83].mxu0  ;;  %v4549_v18 = vpop.f32.mrb[81].mxu1 }
 0x1bf   : > { %6612 = vst [vmem:[#allocation7_spill] sm:$0xff] %v6099_v22  ;;  %v4665_v51 = vadd.f32 %v4664_v37, %v4663_v31  ;;  %v4550_v4 = vadd.f32 %v4549_v18, %v4548_v61  ;;  %v4551_v50 = vpop.f32.mrb[82].mxu1 }
 0x1c0   : > { %v4552_v13 = vpop.f32.mrb[83].mxu1 }
 0x1c1   : > { %v2215_v58 = vadd.f32 %v4550_v4, %v2054_v48  ;;  %v4553_v24 = vadd.f32 %v4552_v13, %v4551_v50  ;;  %v2070_v13 = vadd.f32 %v5974_v20, %v5992_v3 }
 0x1c3   : > { %v4666_v38 = vpop.f32.mrb[84].mxu0  ;;  %v2218_v52 = vadd.f32 %v4553_v24, %v2057_v56  ;;  %v6105_v63 = vadd.f32 %v4662_v55, %v2215_v58  ;;  %v2073_v24 = vadd.f32 %v5977_v43, %v5992_v3 }
 0x1c4   : > { %v4667_v36 = vpop.f32.mrb[85].mxu0 }
 0x1c5   : > { %6613 = vst [vmem:[#allocation8_spill] sm:$0xff] %v6105_v63  ;;  %v4668_v41 = vadd.f32 %v4667_v36, %v4666_v38  ;;  %v4669_v1 = vpop.f32.mrb[86].mxu0  ;;  %v6107_v44 = vadd.f32 %v4665_v51, %v2218_v52  ;;  %v4554_v39 = vpop.f32.mrb[84].mxu1 }
 0x1c6   : > { %v4670_v60 = vpop.f32.mrb[87].mxu0  ;;  %v4555_v33 = vpop.f32.mrb[85].mxu1 }
 0x1c7   : > { %6614 = vst [vmem:[#allocation9_spill] sm:$0xff] %v6107_v44  ;;  %v4671_v0 = vadd.f32 %v4670_v60, %v4669_v1  ;;  %v4556_v14 = vadd.f32 %v4555_v33, %v4554_v39  ;;  %v4557_v62 = vpop.f32.mrb[86].mxu1 }
 0x1c8   : > { %v4558_v59 = vpop.f32.mrb[87].mxu1 }
 0x1c9   : > { %v2223_v35 = vadd.f32 %v4556_v14, %v2062_v32  ;;  %v4559_v25 = vadd.f32 %v4558_v59, %v4557_v62  ;;  %v2078_v59 = vadd.f32 %v5984_v8, %v5992_v3 }
 0x1cb   : > { %v4672_v34 = vpop.f32.mrb[88].mxu0  ;;  %v2226_v31 = vadd.f32 %v4559_v25, %v2065_v45  ;;  %v6113_v37 = vadd.f32 %v4668_v41, %v2223_v35  ;;  %v2081_v25 = vadd.f32 %v5987_v11, %v5992_v3 }
 0x1cc   : > { %v4673_v55 = vpop.f32.mrb[89].mxu0 }
 0x1cd   : > { %6615 = vst [vmem:[#allocation10_spill] sm:$0xff] %v6113_v37  ;;  %v4674_v61 = vadd.f32 %v4673_v55, %v4672_v34  ;;  %v4675_v51 = vpop.f32.mrb[90].mxu0  ;;  %v6115_v48 = vadd.f32 %v4671_v0, %v2226_v31  ;;  %v4560_v4 = vpop.f32.mrb[88].mxu1 }
 0x1ce   : > { %v4676_v18 = vpop.f32.mrb[91].mxu0  ;;  %v4561_v50 = vpop.f32.mrb[89].mxu1 }
 0x1cf   : > { %6616 = vst [vmem:[#allocation11_spill] sm:$0xff] %v6115_v48  ;;  %v4677_v5 = vadd.f32 %v4676_v18, %v4675_v51  ;;  %v4562_v56 = vadd.f32 %v4561_v50, %v4560_v4  ;;  %v4563_v7 = vpop.f32.mrb[90].mxu1 }
 0x1d0   : > { %v4564_v58 = vpop.f32.mrb[91].mxu1 }
 0x1d1   : > { %v2231_v38 = vadd.f32 %v4562_v56, %v2070_v13  ;;  %v4565_v36 = vadd.f32 %v4564_v58, %v4563_v7 }
 0x1d3   : > { %v4678_v52 = vpop.f32.mrb[92].mxu0  ;;  %v2234_v1 = vadd.f32 %v4565_v36, %v2073_v24  ;;  %v6121_v60 = vadd.f32 %v4674_v61, %v2231_v38 }
 0x1d4   : > { %v4679_v41 = vpop.f32.mrb[93].mxu0 }
 0x1d5   : > { %6617 = vst [vmem:[#allocation12_spill] sm:$0xff] %v6121_v60  ;;  %v4680_v39 = vadd.f32 %v4679_v41, %v4678_v52  ;;  %v4681_v0 = vpop.f32.mrb[94].mxu0  ;;  %v6123_v32 = vadd.f32 %v4677_v5, %v2234_v1  ;;  %v4566_v14 = vpop.f32.mrb[92].mxu1  ;;  %v4924_v41 = vmov 1983009808  }
 0x1d6   : > { %v4682_v33 = vpop.f32.mrb[95].mxu0  ;;  %v4567_v62 = vpop.f32.mrb[93].mxu1  ;;  %v2762_v1 = vunpack.c.l.s4 %v4924_v41 }
 0x1d7   : > { %6618 = vst [vmem:[#allocation13_spill] sm:$0xff] %v6123_v32  ;;  %v4683_v20 = vadd.f32 %v4682_v33, %v4681_v0  ;;  %v4568_v45 = vadd.f32 %v4567_v62, %v4566_v14  ;;  %v4569_v43 = vpop.f32.mrb[94].mxu1 }
 0x1d8   : > { %v4570_v35 = vpop.f32.mrb[95].mxu1 }
 0x1d9   : > { %v2239_v34 = vadd.f32 %v4568_v45, %v2078_v59  ;;  %v4571_v55 = vadd.f32 %v4570_v35, %v4569_v43  ;;  %v2763_v45 = vunpack.c.0.s8 %v2762_v1 }
 0x1db   : > { %v2601_v31 = vpop.f32.mrb[96].mxu0  ;;  %v2242_v51 = vadd.f32 %v4571_v55, %v2081_v25  ;;  %v6129_v18 = vadd.f32 %v4680_v39, %v2239_v34 }
 0x1dc   : > { %v2603_v61 = vpop.f32.mrb[97].mxu0 }
 0x1dd   : > { %6619 = vst [vmem:[#allocation14_spill] sm:$0xff] %v6129_v18  ;;  %v2604_v4 = vpop.f32.mrb[98].mxu0  ;;  %v6131_v50 = vadd.f32 %v4683_v20, %v2242_v51  ;;  %v4700_v13 = vpop.f32.mrb[96].mxu1 }
 0x1de   : > { %v2606_v5 = vpop.f32.mrb[99].mxu0  ;;  %v4701_v56 = vpop.f32.mrb[97].mxu1 }
 0x1df   : > { %6620 = vst [vmem:[#allocation15_spill] sm:$0xff] %v6131_v50  ;;  %v4702_v8 = vadd.f32 %v4701_v56, %v4700_v13  ;;  %v4703_v7 = vpop.f32.mrb[98].mxu1 }
 0x1e0   : > { %v4704_v58 = vpop.f32.mrb[99].mxu1 }
 0x1e1   : > { %v2441_v24 = vadd.f32 %v4702_v8, %v6000_v57  ;;  %v4705_v38 = vadd.f32 %v4704_v58, %v4703_v7 }
 0x1e3   : > { %v2609_v11 = vpop.f32.mrb[100].mxu0  ;;  %v2602_v36 = vadd.f32 %v2601_v31, %v2441_v24  ;;  %v2444_v52 = vadd.f32 %v4705_v38, %v6002_v17  ;;  %v6139_v17 = vsub.s32 %v2763_v45, %v5110_v54 }
 0x1e4   : > { %v2611_v3 = vpop.f32.mrb[101].mxu0 }
 0x1e5   : > { %v2612_v39 = vpop.f32.mrb[102].mxu0  ;;  %v2605_v33 = vadd.f32 %v2604_v4, %v2444_v52  ;;  %v4706_v14 = vpop.f32.mrb[100].mxu1 }
 0x1e6   : > { %v2614_v0 = vpop.f32.mrb[103].mxu0  ;;  %v4707_v20 = vpop.f32.mrb[101].mxu1 }
 0x1e7   : > { %v4708_v62 = vadd.f32 %v4707_v20, %v4706_v14  ;;  %v4709_v59 = vpop.f32.mrb[102].mxu1 }
 0x1e8   : > { %v4710_v43 = vpop.f32.mrb[103].mxu1 }
 0x1e9   : > { %v2449_v35 = vadd.f32 %v4708_v62, %v6010_v16  ;;  %v4711_v57 = vadd.f32 %v4710_v43, %v4709_v59 }
 0x1eb   : > { %v6136_v25 = vpop.f32.mrb[104].mxu0  ;;  %v2610_v55 = vadd.f32 %v2609_v11, %v2449_v35  ;;  %v2452_v31 = vadd.f32 %v4711_v57, %v6012_v10 }
 0x1ec   : > { %v2619_v34 = vpop.f32.mrb[105].mxu0 }
 0x1ed   : > { %v6142_v61 = vpop.f32.mrb[106].mxu0  ;;  %v2728_v4 = vmax.f32 %v2602_v36, %v2610_v55  ;;  %v2613_v5 = vadd.f32 %v2612_v39, %v2452_v31  ;;  %v4712_v13 = vpop.f32.mrb[104].mxu1 }
 0x1ee   : > { %v2622_v51 = vpop.f32.mrb[107].mxu0  ;;  %v4713_v56 = vpop.f32.mrb[105].mxu1 }
 0x1ef   : > { %v2760_v8 = vcombine.high %v2728_v4, %v2728_v4  ;;  %v2767_v16 = vrot.slane %v2728_v4, %v6139_v17  ;;  %v2729_v7 = vmax.f32 %v2605_v33, %v2613_v5  ;;  %v4714_v58 = vadd.f32 %v4713_v56, %v4712_v13  ;;  %v4715_v24 = vpop.f32.mrb[106].mxu1 }
 0x1f0   : > { %v4716_v38 = vpop.f32.mrb[107].mxu1 }
 0x1f1   : > { %v2774_v54 = vrot.slane %v2760_v8, %v6139_v17  ;;  %v2775_v11 = vcombine.high %v2767_v16, %v2767_v16  ;;  %v3097_v10 = vsel %vm3096_vm5, %v2767_v16, -inf  ;;  %v2777_v3 = vcombine.high %v2729_v7, %v2729_v7 }
 0x1f2   : > { %v3098_v36 = vrot.slane %v3097_v10, 4  ;;  %v2784_v41 = vrot.slane %v2729_v7, %v6139_v17  ;;  %v6151_v1 = vadd.f32 %v4714_v58, %v6020_v15  ;;  %v6153_v39 = vadd.f32 %v4716_v38, %v4715_v24 }
 0x1f3   : > { %v6147_v52 = vpop.f32.mrb[108].mxu0  ;;  %v2776_v33 = vcombine.high %v2774_v54, %v2774_v54  ;;  %v3104_v14 = vsel %vm3096_vm5, %v2775_v11, -inf  ;;  %v3111_v20 = vsel %vm3096_vm5, %v2774_v54, -inf  ;;  %v2791_v62 = vrot.slane %v2777_v3, %v6139_v17 }
 0x1f4   : > { %v2627_v0 = vpop.f32.mrb[109].mxu0  ;;  %v3099_v45 = vmax.f32 %v3097_v10, %v3098_v36  ;;  %v3105_v43 = vrot.slane %v3104_v14, 4  ;;  %v3112_v35 = vrot.slane %v3111_v20, 4  ;;  %v2792_v57 = vcombine.high %v2784_v41, %v2784_v41 }
 0x1f5   : > { %v6158_v59 = vpop.f32.mrb[110].mxu0  ;;  %v3118_v15 = vsel %vm3096_vm5, %v2776_v33, -inf  ;;  %v2793_v55 = vcombine.high %v2791_v62, %v2791_v62  ;;  %v3125_v31 = vsel %vm3096_vm5, %v2784_v41, -inf  ;;  %v3139_v51 = vsel %vm3096_vm5, %v2791_v62, -inf  ;;  %v6163_v4 = vpop.f32.mrb[108].mxu1 }
 0x1f6   : > { %v2630_v34 = vpop.f32.mrb[111].mxu0  ;;  %v3100_v5 = vrot.slane %v3099_v45, 2  ;;  %v3106_v13 = vmax.f32 %v3104_v14, %v3105_v43  ;;  %v3113_v56 = vmax.f32 %v3111_v20, %v3112_v35  ;;  %v3119_v8 = vrot.slane %v3118_v15, 4  ;;  %v6165_v16 = vpop.f32.mrb[109].mxu1 }
 0x1f7   : > { %v3126_v7 = vrot.slane %v3125_v31, 4  ;;  %v3132_v58 = vsel %vm3096_vm5, %v2792_v57, -inf  ;;  %v3140_v24 = vrot.slane %v3139_v51, 4  ;;  %v3146_v38 = vsel %vm3096_vm5, %v2793_v55, -inf  ;;  %v6169_v54 = vpop.f32.mrb[110].mxu1 }
 0x1f8   : > { %v3101_v11 = vmax.f32 %v3099_v45, %v3100_v5  ;;  %v3107_v10 = vrot.slane %v3106_v13, 2  ;;  %v3114_v3 = vrot.slane %v3113_v56, 2  ;;  %v3120_v36 = vmax.f32 %v3118_v15, %v3119_v8  ;;  %v6171_v41 = vpop.f32.mrb[111].mxu1 }
 0x1f9   : > { %v3127_v0 = vmax.f32 %v3125_v31, %v3126_v7  ;;  %v3133_v33 = vrot.slane %v3132_v58, 4  ;;  %v3141_v14 = vmax.f32 %v3139_v51, %v3140_v24  ;;  %v3147_v20 = vrot.slane %v3146_v38, 4 }
 0x1fa   : > { %v3102_v43 = vrot.slane %v3101_v11, 1  ;;  %v3108_v35 = vmax.f32 %v3106_v13, %v3107_v10  ;;  %v3115_v57 = vmax.f32 %v3113_v56, %v3114_v3  ;;  %v3121_v34 = vrot.slane %v3120_v36, 2 }
 0x1fb   : > { %v6173_v62 = vpop.f32.mrb[112].mxu0  ;;  %v3128_v50 = vrot.slane %v3127_v0, 2  ;;  %v3134_v45 = vmax.f32 %v3132_v58, %v3133_v33  ;;  %v3142_v5 = vrot.slane %v3141_v14, 2  ;;  %v3148_v18 = vmax.f32 %v3146_v38, %v3147_v20 }
 0x1fc   : > { %v2635_v55 = vpop.f32.mrb[113].mxu0  ;;  %v3103_v8 = vmax.f32 %v3101_v11, %v3102_v43  ;;  %v3109_v31 = vrot.slane %v3108_v35, 1  ;;  %v3116_v7 = vrot.slane %v3115_v57, 1  ;;  %v3122_v51 = vmax.f32 %v3120_v36, %v3121_v34 }
 0x1fd   : > { %v6175_v15 = vpop.f32.mrb[114].mxu0  ;;  %v3129_v32 = vmax.f32 %v3127_v0, %v3128_v50  ;;  %v3135_v60 = vrot.slane %v3134_v45, 2  ;;  %v3143_v13 = vmax.f32 %v3141_v14, %v3142_v5  ;;  %v3149_v56 = vrot.slane %v3148_v18, 2  ;;  %v4724_v10 = vpop.f32.mrb[112].mxu1 }
 0x1fe   : > { %v2638_v24 = vpop.f32.mrb[115].mxu0  ;;  %v3110_v3 = vmax.f32 %v3108_v35, %v3109_v31  ;;  %v3117_v55 = vmax.f32 %v3115_v57, %v3116_v7  ;;  %v3123_v48 = vrot.slane %v3122_v51, 1  ;;  %v4205_v58 = vpack.c.bf16 %v3103_v8, %v3103_v8  ;;  %v4725_v38 = vpop.f32.mrb[113].mxu1 }
 0x1ff   : > { %v3130_v33 = vrot.slane %v3129_v32, 1  ;;  %v3136_v20 = vmax.f32 %v3134_v45, %v3135_v60  ;;  %v3144_v37 = vrot.slane %v3143_v13, 1  ;;  %v3150_v11 = vmax.f32 %v3148_v18, %v3149_v56  ;;  %v4727_v43 = vpop.f32.mrb[114].mxu1 }
 0x200   : > { %v3124_v36 = vmax.f32 %v3122_v51, %v3123_v48  ;;  %v4206_v34 = vpack.c.bf16 %v3110_v3, %v3110_v3  ;;  %v4207_v24 = vpack.c.bf16 %v3117_v55, %v3117_v55  ;;  %v3801_v50 = vunpack.c.l.b16 %v4205_v58  ;;  %v4728_v0 = vpop.f32.mrb[115].mxu1 }
 0x201   : > { %v3131_v14 = vmax.f32 %v3129_v32, %v3130_v33  ;;  %v3137_v5 = vrot.slane %v3136_v20, 1  ;;  %v3145_v44 = vmax.f32 %v3143_v13, %v3144_v37  ;;  %v3151_v35 = vrot.slane %v3150_v11, 1 }
 0x202   : > { %v4208_v31 = vpack.c.bf16 %v3124_v36, %v3124_v36  ;;  %v3802_v8 = vunpack.c.l.b16 %v4206_v34  ;;  %v3803_v7 = vunpack.c.l.b16 %v4207_v24  ;;  %v2618_v60 = vadd.f32 %v6136_v25, %v6151_v1 }
 0x203   : > { %v2641_v57 = vpop.f32.mrb[116].mxu0  ;;  %v3138_v18 = vmax.f32 %v3136_v20, %v3137_v5  ;;  %v3152_v56 = vmax.f32 %v3150_v11, %v3151_v35  ;;  %v4209_v63 = vpack.c.bf16 %v3131_v14, %v3131_v14  ;;  %v4211_v48 = vpack.c.bf16 %v3145_v44, %v3145_v44 }
 0x204   : > { %v2643_v45 = vpop.f32.mrb[117].mxu0  ;;  %v3804_v3 = vunpack.c.l.b16 %v4208_v31  ;;  %v3866_v55 = vsel %vm3865_vm11, %v3802_v8, %v3801_v50  ;;  %v2460_v37 = vadd.f32 %v6153_v39, %v6023_v12  ;;  %v4720_v32 = vadd.f32 %v6165_v16, %v6163_v4 }
 0x205   : > { %v2644_v51 = vpop.f32.mrb[118].mxu0  ;;  %v3868_v58 = vsel %vm3867_vm12, %v3803_v7, %v3866_v55  ;;  %v4210_v25 = vpack.c.bf16 %v3138_v18, %v3138_v18  ;;  %v4212_v1 = vpack.c.bf16 %v3152_v56, %v3152_v56  ;;  %v3805_v33 = vunpack.c.l.b16 %v4209_v63  ;;  %v4730_v20 = vpop.f32.mrb[116].mxu1 }
 0x206   : > { %v2646_v13 = vpop.f32.mrb[119].mxu0  ;;  %v3870_v44 = vsel %vm3869_vm13, %v3804_v3, %v3868_v58  ;;  %v2621_v11 = vadd.f32 %v6142_v61, %v2460_v37  ;;  %v2465_v36 = vadd.f32 %v4720_v32, %v6032_v42  ;;  %v4731_v34 = vpop.f32.mrb[117].mxu1  ;;  %v3807_v39 = vunpack.c.l.b16 %v4211_v48 }
 0x207   : > { %v3806_v12 = vunpack.c.l.b16 %v4210_v25  ;;  %v3872_v4 = vsel %vm3871_vm14, %v3805_v33, %v3870_v44  ;;  %v4723_v16 = vadd.f32 %v6171_v41, %v6169_v54  ;;  %v4733_v24 = vpop.f32.mrb[118].mxu1  ;;  %v4726_v50 = vadd.f32 %v4725_v38, %v4724_v10 }
 0x208   : > { %v2626_v63 = vadd.f32 %v6147_v52, %v2465_v36  ;;  %v4729_v14 = vadd.f32 %v4728_v0, %v4727_v43  ;;  %v4732_v5 = vadd.f32 %v4731_v34, %v4730_v20  ;;  %v4734_v35 = vpop.f32.mrb[119].mxu1  ;;  %v3808_v31 = vunpack.c.l.b16 %v4212_v1 }
 0x209   : > { %v3874_v61 = vsel %vm3873_vm15, %v3806_v12, %v3872_v4  ;;  %v2468_v42 = vadd.f32 %v4723_v16, %v6035_v28  ;;  %v4735_v8 = vadd.f32 %v4734_v35, %v4733_v24  ;;  %v2473_v54 = vadd.f32 %v4726_v50, %v6041_v47 }
 0x20a   : > { %v3876_v45 = vsel %vm3875_vm0, %v3807_v39, %v3874_v61  ;;  %v2730_v18 = vmax.f32 %v2618_v60, %v2626_v63  ;;  %v2476_v41 = vadd.f32 %v4729_v14, %v6043_v27  ;;  %v2481_v38 = vadd.f32 %v4732_v5, %v6049_v23 }
 0x20b   : > { %v6195_v7 = vpop.f32.mrb[120].mxu0  ;;  %v3878_v10 = vsel %vm3877_vm1, %v3808_v31, %v3876_v45  ;;  %v2629_v28 = vadd.f32 %v6158_v59, %v2468_v42  ;;  %v2484_v43 = vadd.f32 %v4735_v8, %v6051_v53  ;;  %v2634_v56 = vadd.f32 %v6173_v62, %v2473_v54 }
 0x20c   : > { %v2651_v52 = vpop.f32.mrb[121].mxu0  ;;  %v3928_v47 = vpack.c.b16 %v3878_v10, %v3878_v10  ;;  %v2794_v60 = vcombine.high %v2730_v18, %v2730_v18  ;;  %v2801_v27 = vrot.slane %v2730_v18, %v6139_v17  ;;  %v2637_v55 = vadd.f32 %v6175_v15, %v2476_v41 }
 0x20d   : > { %v6209_v0 = vpop.f32.mrb[122].mxu0  ;;  %v2731_v3 = vmax.f32 %v2621_v11, %v2629_v28  ;;  %v2642_v37 = vadd.f32 %v2641_v57, %v2481_v38  ;;  %v2645_v32 = vadd.f32 %v2644_v51, %v2484_v43  ;;  %v6214_v13 = vpop.f32.mrb[120].mxu1 }
 0x20e   : > { %v2654_v48 = vpop.f32.mrb[123].mxu0  ;;  %3944 = vst [vmem:[%s6203_s24] sm:$0xf] %v3928_v47  ;;  %v2808_v23 = vrot.slane %v2794_v60, %v6139_v17  ;;  %v2809_v53 = vcombine.high %v2801_v27, %v2801_v27  ;;  %v3153_v59 = vsel %vm3096_vm5, %v2801_v27, -inf  ;;  %v6219_v58 = vpop.f32.mrb[121].mxu1 }
 0x20f   : > { %v3154_v25 = vrot.slane %v3153_v59, 4  ;;  %v2811_v1 = vcombine.high %v2731_v3, %v2731_v3  ;;  %v2818_v62 = vrot.slane %v2731_v3, %v6139_v17  ;;  %v6222_v33 = vmax.f32 %v2634_v56, %v2642_v37  ;;  %v6224_v20 = vpop.f32.mrb[122].mxu1 }
 0x210   : > { %v2810_v15 = vcombine.high %v2808_v23, %v2808_v23  ;;  %v3160_v57 = vsel %vm3096_vm5, %v2809_v53, -inf  ;;  %v3167_v51 = vsel %vm3096_vm5, %v2808_v23, -inf  ;;  %v6228_v44 = vmax.f32 %v2637_v55, %v2645_v32  ;;  %v6230_v11 = vpop.f32.mrb[123].mxu1 }
 0x211   : > { %v3155_v36 = vmax.f32 %v3153_v59, %v3154_v25  ;;  %v3161_v34 = vrot.slane %v3160_v57, 4  ;;  %v3168_v12 = vrot.slane %v3167_v51, 4  ;;  %v2825_v39 = vrot.slane %v2811_v1, %v6139_v17 }
 0x212   : > { %v3174_v16 = vsel %vm3096_vm5, %v2810_v15, -inf  ;;  %v2826_v24 = vcombine.high %v2818_v62, %v2818_v62  ;;  %v3181_v63 = vsel %vm3096_vm5, %v2818_v62, -inf  ;;  %v2828_v50 = vcombine.high %v6222_v33, %v6222_v33 }
 0x213   : > { %v6233_v4 = vpop.f32.mrb[124].mxu0  ;;  %v3156_v5 = vrot.slane %v3155_v36, 2  ;;  %v3162_v35 = vmax.f32 %v3160_v57, %v3161_v34  ;;  %v3169_v31 = vmax.f32 %v3167_v51, %v3168_v12  ;;  %v3175_v61 = vrot.slane %v3174_v16, 4 }
 0x214   : > { %v2659_v14 = vpop.f32.mrb[125].mxu0  ;;  %v2827_v8 = vcombine.high %v2825_v39, %v2825_v39  ;;  %v3182_v45 = vrot.slane %v3181_v63, 4  ;;  %v3188_v18 = vsel %vm3096_vm5, %v2826_v24, -inf  ;;  %v3195_v54 = vsel %vm3096_vm5, %v2825_v39, -inf }
 0x215   : > { %v6239_v42 = vpop.f32.mrb[126].mxu0  ;;  %v3157_v52 = vmax.f32 %v3155_v36, %v3156_v5  ;;  %v3163_v10 = vrot.slane %v3162_v35, 2  ;;  %v3170_v28 = vrot.slane %v3169_v31, 2  ;;  %v3176_v38 = vmax.f32 %v3174_v16, %v3175_v61  ;;  %v6243_v43 = vpop.f32.mrb[124].mxu1 }
 0x216   : > { %v2662_v41 = vpop.f32.mrb[127].mxu0  ;;  %v3183_v47 = vmax.f32 %v3181_v63, %v3182_v45  ;;  %v3189_v60 = vrot.slane %v3188_v18, 4  ;;  %v3196_v27 = vrot.slane %v3195_v54, 4  ;;  %v3202_v56 = vsel %vm3096_vm5, %v2827_v8, -inf  ;;  %v6246_v48 = vpop.f32.mrb[125].mxu1 }
 0x217   : > { %v3158_v3 = vrot.slane %v3157_v52, 1  ;;  %v3164_v55 = vmax.f32 %v3162_v35, %v3163_v10  ;;  %v3171_v37 = vmax.f32 %v3169_v31, %v3170_v28  ;;  %v3177_v32 = vrot.slane %v3176_v38, 2  ;;  %v6248_v23 = vpop.f32.mrb[126].mxu1 }
 0x218   : > { %v3184_v53 = vrot.slane %v3183_v47, 2  ;;  %v3190_v59 = vmax.f32 %v3188_v18, %v3189_v60  ;;  %v3197_v25 = vmax.f32 %v3195_v54, %v3196_v27  ;;  %v3203_v1 = vrot.slane %v3202_v56, 4  ;;  %v6250_v62 = vpop.f32.mrb[127].mxu1 }
 0x219   : > { %v3159_v15 = vmax.f32 %v3157_v52, %v3158_v3  ;;  %v3165_v57 = vrot.slane %v3164_v55, 1  ;;  %v3172_v51 = vrot.slane %v3171_v37, 1  ;;  %v3178_v36 = vmax.f32 %v3176_v38, %v3177_v32 }
 0x21a   : > { %v3185_v12 = vmax.f32 %v3183_v47, %v3184_v53  ;;  %v3191_v39 = vrot.slane %v3190_v59, 2  ;;  %v3198_v16 = vrot.slane %v3197_v25, 2  ;;  %v3204_v24 = vmax.f32 %v3202_v56, %v3203_v1 }
 0x21b   : > { %v6252_v34 = vpop.f32.mrb[128].mxu0  ;;  %v3166_v14 = vmax.f32 %v3164_v55, %v3165_v57  ;;  %v3173_v5 = vmax.f32 %v3171_v37, %v3172_v51  ;;  %v3179_v35 = vrot.slane %v3178_v36, 1  ;;  %v4213_v31 = vpack.c.bf16 %v3159_v15, %v3159_v15 }
 0x21c   : > { %v2667_v63 = vpop.f32.mrb[129].mxu0  ;;  %v3186_v8 = vrot.slane %v3185_v12, 1  ;;  %v3192_v45 = vmax.f32 %v3190_v59, %v3191_v39  ;;  %v3199_v18 = vmax.f32 %v3197_v25, %v3198_v16  ;;  %v3205_v54 = vrot.slane %v3204_v24, 2 }
 0x21d   : > { %v6254_v61 = vpop.f32.mrb[130].mxu0  ;;  %v3180_v52 = vmax.f32 %v3178_v36, %v3179_v35  ;;  %v4214_v10 = vpack.c.bf16 %v3166_v14, %v3166_v14  ;;  %v4215_v28 = vpack.c.bf16 %v3173_v5, %v3173_v5  ;;  %v3809_v38 = vunpack.c.l.b16 %v4213_v31  ;;  %v6256_v47 = vpop.f32.mrb[128].mxu1 }
 0x21e   : > { %v2670_v41 = vpop.f32.mrb[131].mxu0  ;;  %v3187_v60 = vmax.f32 %v3185_v12, %v3186_v8  ;;  %v3193_v27 = vrot.slane %v3192_v45, 1  ;;  %v3200_v56 = vrot.slane %v3199_v18, 1  ;;  %v3206_v3 = vmax.f32 %v3204_v24, %v3205_v54  ;;  %v6258_v55 = vpop.f32.mrb[129].mxu1 }
 0x21f   : > { %v4216_v37 = vpack.c.bf16 %v3180_v52, %v3180_v52  ;;  %v3810_v32 = vunpack.c.l.b16 %v4214_v10  ;;  %v3811_v53 = vunpack.c.l.b16 %v4215_v28  ;;  %v2835_v59 = vrot.slane %v6222_v33, %v6139_v17  ;;  %v6262_v25 = vpop.f32.mrb[130].mxu1 }
 0x220   : > { %v3194_v1 = vmax.f32 %v3192_v45, %v3193_v27  ;;  %v3201_v15 = vmax.f32 %v3199_v18, %v3200_v56  ;;  %v3207_v57 = vrot.slane %v3206_v3, 1  ;;  %v4217_v51 = vpack.c.bf16 %v3187_v60, %v3187_v60  ;;  %v6264_v36 = vpop.f32.mrb[131].mxu1 }
 0x221   : > { %v3812_v12 = vunpack.c.l.b16 %v4216_v37  ;;  %v3879_v39 = vsel %vm3865_vm11, %v3810_v32, %v3809_v38  ;;  %v2842_v16 = vrot.slane %v2828_v50, %v6139_v17  ;;  %v2843_v24 = vcombine.high %v2835_v59, %v2835_v59 }
 0x222   : > { %v3880_v14 = vsel %vm3867_vm12, %v3811_v53, %v3879_v39  ;;  %v3208_v5 = vmax.f32 %v3206_v3, %v3207_v57  ;;  %v4218_v35 = vpack.c.bf16 %v3194_v1, %v3194_v1  ;;  %v4219_v31 = vpack.c.bf16 %v3201_v15, %v3201_v15 }
 0x223   : > { %v6271_v63 = vpop.f32.mrb[132].mxu0  ;;  %v3813_v45 = vunpack.c.l.b16 %v4217_v51  ;;  %v3881_v18 = vsel %vm3869_vm13, %v3812_v12, %v3880_v14  ;;  %v2844_v54 = vcombine.high %v2842_v16, %v2842_v16  ;;  %v3209_v41 = vsel %vm3096_vm5, %v2835_v59, -inf }
 0x224   : > { %6621 = vst [vmem:[#allocation16_spill] sm:$0xff] %v6271_v63  ;;  %v2675_v8 = vpop.f32.mrb[133].mxu0  ;;  %v4220_v10 = vpack.c.bf16 %v3208_v5, %v3208_v5  ;;  %v3814_v33 = vunpack.c.l.b16 %v4218_v35  ;;  %v3815_v50 = vunpack.c.l.b16 %v4219_v31  ;;  %v3210_v28 = vrot.slane %v3209_v41, 4 }
 0x225   : > { %v6276_v52 = vpop.f32.mrb[134].mxu0  ;;  %v3882_v60 = vsel %vm3871_vm14, %v3813_v45, %v3881_v18  ;;  %v3216_v27 = vsel %vm3096_vm5, %v2843_v24, -inf  ;;  %v3223_v56 = vsel %vm3096_vm5, %v2842_v16, -inf  ;;  %v3230_v3 = vsel %vm3096_vm5, %v2844_v54, -inf  ;;  %v6282_v37 = vpop.f32.mrb[132].mxu1 }
 0x226   : > { %6622 = vst [vmem:[#allocation17_spill] sm:$0xff] %v6276_v52  ;;  %v2678_v38 = vpop.f32.mrb[135].mxu0  ;;  %v3816_v32 = vunpack.c.l.b16 %v4220_v10  ;;  %v3883_v53 = vsel %vm3873_vm15, %v3814_v33, %v3882_v60  ;;  %v3211_v59 = vmax.f32 %v3209_v41, %v3210_v28  ;;  %v3217_v1 = vrot.slane %v3216_v27, 4  ;;  %v6285_v15 = vpop.f32.mrb[133].mxu1 }
 0x227   : > { %v3884_v57 = vsel %vm3875_vm0, %v3815_v50, %v3883_v53  ;;  %v3224_v51 = vrot.slane %v3223_v56, 4  ;;  %v3231_v12 = vrot.slane %v3230_v3, 4  ;;  %v2845_v39 = vcombine.high %v6228_v44, %v6228_v44  ;;  %v6290_v24 = vpop.f32.mrb[134].mxu1 }
 0x228   : > { %v3885_v16 = vsel %vm3877_vm1, %v3816_v32, %v3884_v57  ;;  %v3212_v14 = vrot.slane %v3211_v59, 2  ;;  %v3218_v5 = vmax.f32 %v3216_v27, %v3217_v1  ;;  %v2852_v35 = vrot.slane %v6228_v44, %v6139_v17  ;;  %v6295_v31 = vpop.f32.mrb[135].mxu1 }
 0x229   : > { %v3929_v8 = vpack.c.b16 %v3885_v16, %v3885_v16  ;;  %v3225_v45 = vmax.f32 %v3223_v56, %v3224_v51  ;;  %v3232_v18 = vmax.f32 %v3230_v3, %v3231_v12  ;;  %v2859_v54 = vrot.slane %v2845_v39, %v6139_v17 }
 0x22a   : > { %v3213_v10 = vmax.f32 %v3211_v59, %v3212_v14  ;;  %v3219_v33 = vrot.slane %v3218_v5, 2  ;;  %v2860_v50 = vcombine.high %v2852_v35, %v2852_v35  ;;  %v3237_v28 = vsel %vm3096_vm5, %v2852_v35, -inf }
 0x22b   : > { %v6298_v41 = vpop.f32.mrb[136].mxu0  ;;  %3945 = vst [vmem:[%s6203_s24 + $0x4] sm:$0xf] %v3929_v8  ;;  %v3226_v60 = vrot.slane %v3225_v45, 2  ;;  %v3233_v27 = vrot.slane %v3232_v18, 2  ;;  %v2861_v32 = vcombine.high %v2859_v54, %v2859_v54  ;;  %v3238_v44 = vrot.slane %v3237_v28, 4 }
 0x22c   : > { %6623 = vst [vmem:[#allocation18_spill] sm:$0xff] %v6298_v41  ;;  %v2683_v38 = vpop.f32.mrb[137].mxu0  ;;  %v3214_v1 = vrot.slane %v3213_v10, 1  ;;  %v3220_v56 = vmax.f32 %v3218_v5, %v3219_v33  ;;  %v3244_v3 = vsel %vm3096_vm5, %v2860_v50, -inf  ;;  %v3251_v57 = vsel %vm3096_vm5, %v2859_v54, -inf }
 0x22d   : > { %v6302_v53 = vpop.f32.mrb[138].mxu0  ;;  %v3227_v59 = vmax.f32 %v3225_v45, %v3226_v60  ;;  %v3234_v12 = vmax.f32 %v3232_v18, %v3233_v27  ;;  %v3239_v39 = vmax.f32 %v3237_v28, %v3238_v44  ;;  %v3245_v16 = vrot.slane %v3244_v3, 4  ;;  %v6306_v14 = vpop.f32.mrb[136].mxu1 }
 0x22e   : > { %6624 = vst [vmem:[#allocation19_spill] sm:$0xff] %v6302_v53  ;;  %v2686_v51 = vpop.f32.mrb[139].mxu0  ;;  %v3215_v35 = vmax.f32 %v3213_v10, %v3214_v1  ;;  %v3221_v8 = vrot.slane %v3220_v56, 1  ;;  %v3252_v38 = vrot.slane %v3251_v57, 4  ;;  %v3258_v22 = vsel %vm3096_vm5, %v2861_v32, -inf  ;;  %v6309_v26 = vpop.f32.mrb[137].mxu1 }
 0x22f   : > { %v3228_v53 = vrot.slane %v3227_v59, 1  ;;  %v3235_v5 = vrot.slane %v3234_v12, 1  ;;  %v3240_v33 = vrot.slane %v3239_v39, 2  ;;  %v3246_v50 = vmax.f32 %v3244_v3, %v3245_v16  ;;  %v6311_v30 = vpop.f32.mrb[138].mxu1 }
 0x230   : > { %v3222_v54 = vmax.f32 %v3220_v56, %v3221_v8  ;;  %v4221_v45 = vpack.c.bf16 %v3215_v35, %v3215_v35  ;;  %v3253_v18 = vmax.f32 %v3251_v57, %v3252_v38  ;;  %v3259_v28 = vrot.slane %v3258_v22, 4  ;;  %v6313_v60 = vpop.f32.mrb[139].mxu1 }
 0x231   : > { %v3229_v27 = vmax.f32 %v3227_v59, %v3228_v53  ;;  %v3236_v10 = vmax.f32 %v3234_v12, %v3235_v5  ;;  %v3241_v44 = vmax.f32 %v3239_v39, %v3240_v33  ;;  %v3247_v1 = vrot.slane %v3246_v50, 2 }
 0x232   : > { %v4222_v32 = vpack.c.bf16 %v3222_v54, %v3222_v54  ;;  %v3817_v41 = vunpack.c.l.b16 %v4221_v45  ;;  %v3254_v52 = vrot.slane %v3253_v18, 2  ;;  %v3260_v46 = vmax.f32 %v3258_v22, %v3259_v28 }
 0x233   : > { %v6315_v51 = vpop.f32.mrb[140].mxu0  ;;  %v4223_v3 = vpack.c.bf16 %v3229_v27, %v3229_v27  ;;  %v4224_v16 = vpack.c.bf16 %v3236_v10, %v3236_v10  ;;  %v3242_v63 = vrot.slane %v3241_v44, 1  ;;  %v3248_v56 = vmax.f32 %v3246_v50, %v3247_v1 }
 0x234   : > { %v2691_v21 = vpop.f32.mrb[141].mxu0  ;;  %v3818_v57 = vunpack.c.l.b16 %v4222_v32  ;;  %v3255_v8 = vmax.f32 %v3253_v18, %v3254_v52  ;;  %v3261_v38 = vrot.slane %v3260_v46, 2  ;;  %v4738_v53 = vadd.f32 %v6219_v58, %v6214_v13 }
 0x235   : > { %v6317_v35 = vpop.f32.mrb[142].mxu0  ;;  %v3819_v12 = vunpack.c.l.b16 %v4223_v3  ;;  %v3820_v39 = vunpack.c.l.b16 %v4224_v16  ;;  %v3243_v5 = vmax.f32 %v3241_v44, %v3242_v63  ;;  %v3249_v33 = vrot.slane %v3248_v56, 1  ;;  %v6321_v54 = vpop.f32.mrb[140].mxu1 }
 0x236   : > { %v2694_v59 = vpop.f32.mrb[143].mxu0  ;;  %v3886_v21 = vsel %vm3865_vm11, %v3818_v57, %v3817_v41  ;;  %v3256_v22 = vrot.slane %v3255_v8, 1  ;;  %v3262_v45 = vmax.f32 %v3260_v46, %v3261_v38  ;;  %v2489_v50 = vadd.f32 %v4738_v53, %v6057_v6  ;;  %v6325_v28 = vpop.f32.mrb[141].mxu1 }
 0x237   : > { %v3887_v52 = vsel %vm3867_vm12, %v3819_v12, %v3886_v21  ;;  %v3250_v18 = vmax.f32 %v3248_v56, %v3249_v33  ;;  %v4225_v27 = vpack.c.bf16 %v3243_v5, %v3243_v5  ;;  %v4741_v13 = vadd.f32 %v6230_v11, %v6224_v20  ;;  %v6330_v58 = vpop.f32.mrb[142].mxu1 }
 0x238   : > { %v3257_v63 = vmax.f32 %v3255_v8, %v3256_v22  ;;  %v3263_v10 = vrot.slane %v3262_v45, 1  ;;  %v3888_v44 = vsel %vm3869_vm13, %v3820_v39, %v3887_v52  ;;  %v2650_v41 = vadd.f32 %v6195_v7, %v2489_v50  ;;  %v6334_v46 = vpop.f32.mrb[143].mxu1 }
 0x239   : > { %v4226_v6 = vpack.c.bf16 %v3250_v18, %v3250_v18  ;;  %v3821_v1 = vunpack.c.l.b16 %v4225_v27  ;;  %v2492_v32 = vadd.f32 %v4741_v13, %v6059_v9  ;;  %v4744_v3 = vadd.f32 %v6246_v48, %v6243_v43  ;;  %v6625_v13 = vld [vmem:[#allocation16_spill] sm:$0xff] }
 0x23a   : > { %v3264_v20 = vmax.f32 %v3262_v45, %v3263_v10  ;;  %v4227_v11 = vpack.c.bf16 %v3257_v63, %v3257_v63  ;;  %v4747_v56 = vadd.f32 %v6250_v62, %v6248_v23  ;;  %v4750_v57 = vadd.f32 %v6258_v55, %v6256_v47 }
 0x23b   : > { %v6339_v16 = vpop.f32.mrb[144].mxu0  ;;  %v3822_v8 = vunpack.c.l.b16 %v4226_v6  ;;  %v3889_v38 = vsel %vm3871_vm14, %v3821_v1, %v3888_v44  ;;  %v2653_v53 = vadd.f32 %v6209_v0, %v2492_v32  ;;  %v2497_v9 = vadd.f32 %v4744_v3, %v6065_v40 }
 0x23c   : > { %v2699_v7 = vpop.f32.mrb[145].mxu0  ;;  %v4228_v43 = vpack.c.bf16 %v3264_v20, %v3264_v20  ;;  %v3823_v48 = vunpack.c.l.b16 %v4227_v11  ;;  %v2500_v12 = vadd.f32 %v4747_v56, %v6067_v19  ;;  %v2505_v39 = vadd.f32 %v4750_v57, %v6073_v49 }
 0x23d   : > { %v6348_v59 = vpop.f32.mrb[146].mxu0  ;;  %v3890_v62 = vsel %vm3873_vm15, %v3822_v8, %v3889_v38  ;;  %v2658_v47 = vadd.f32 %v6233_v4, %v2497_v9  ;;  %v4753_v55 = vadd.f32 %v6264_v36, %v6262_v25  ;;  %v4756_v0 = vadd.f32 %v6285_v15, %v6282_v37  ;;  %v6358_v40 = vpop.f32.mrb[144].mxu1 }
 0x23e   : > { %v2702_v23 = vpop.f32.mrb[147].mxu0  ;;  %v3824_v5 = vunpack.c.l.b16 %v4228_v43  ;;  %v3891_v33 = vsel %vm3875_vm0, %v3823_v48, %v3890_v62  ;;  %v2661_v19 = vadd.f32 %v6239_v42, %v2500_v12  ;;  %v6363_v49 = vadd.f32 %v6252_v34, %v2505_v39  ;;  %v6365_v21 = vpop.f32.mrb[145].mxu1 }
 0x23f   : > { %v2734_v22 = vmax.f32 %v2650_v41, %v2658_v47  ;;  %v2508_v4 = vadd.f32 %v4753_v55, %v6075_v29  ;;  %v2513_v25 = vadd.f32 %v4756_v0, %v6081_v2  ;;  %v4759_v36 = vadd.f32 %v6295_v31, %v6290_v24  ;;  %v6371_v37 = vpop.f32.mrb[146].mxu1 }
 0x240   : > { %v3892_v15 = vsel %vm3877_vm1, %v3824_v5, %v3891_v33  ;;  %v2735_v45 = vmax.f32 %v2653_v53, %v2661_v19  ;;  %v4762_v42 = vadd.f32 %v6309_v26, %v6306_v14  ;;  %v6378_v34 = vadd.f32 %v6313_v60, %v6311_v30  ;;  %v6380_v50 = vpop.f32.mrb[147].mxu1  ;;  %v6626_v14 = vld [vmem:[#allocation3_spill] sm:$0xff] }
 0x241   : > { %v3930_v29 = vpack.c.b16 %v3892_v15, %v3892_v15  ;;  %v2862_v2 = vcombine.high %v2734_v22, %v2734_v22  ;;  %v2869_v52 = vrot.slane %v2734_v22, %v6139_v17  ;;  %v6384_v24 = vadd.f32 %v6254_v61, %v2508_v4  ;;  %v6627_v61 = vld [vmem:[#allocation4_spill] sm:$0xff] }
 0x242   : > { %v2879_v18 = vcombine.high %v2735_v45, %v2735_v45  ;;  %v2886_v27 = vrot.slane %v2735_v45, %v6139_v17  ;;  %v6390_v26 = vadd.f32 %v6625_v13, %v2513_v25  ;;  %v6393_v30 = vadd.f32 %v4759_v36, %v6626_v14 }
 0x243   : > { %v6386_v31 = vpop.f32.mrb[148].mxu0  ;;  %3946 = vst [vmem:[%s6203_s24 + $0x8] sm:$0xf] %v3930_v29  ;;  %v2876_v63 = vrot.slane %v2862_v2, %v6139_v17  ;;  %v2877_v10 = vcombine.high %v2869_v52, %v2869_v52  ;;  %v3265_v44 = vsel %vm3096_vm5, %v2869_v52, -inf  ;;  %v6399_v41 = vadd.f32 %v4762_v42, %v6627_v61 }
 0x244   : > { %v2707_v60 = vpop.f32.mrb[149].mxu0  ;;  %v3266_v1 = vrot.slane %v3265_v44, 4  ;;  %v2893_v32 = vrot.slane %v2879_v18, %v6139_v17  ;;  %v2894_v3 = vcombine.high %v2886_v27, %v2886_v27  ;;  %v3293_v20 = vsel %vm3096_vm5, %v2886_v27, -inf }
 0x245   : > { %v6401_v6 = vpop.f32.mrb[150].mxu0  ;;  %v2878_v56 = vcombine.high %v2876_v63, %v2876_v63  ;;  %v3272_v57 = vsel %vm3096_vm5, %v2877_v10, -inf  ;;  %v3279_v7 = vsel %vm3096_vm5, %v2876_v63, -inf  ;;  %v3294_v8 = vrot.slane %v3293_v20, 4  ;;  %v6407_v38 = vpop.f32.mrb[148].mxu1 }
 0x246   : > { %v2710_v11 = vpop.f32.mrb[151].mxu0  ;;  %v3267_v53 = vmax.f32 %v3265_v44, %v3266_v1  ;;  %v3273_v9 = vrot.slane %v3272_v57, 4  ;;  %v3280_v43 = vrot.slane %v3279_v7, 4  ;;  %v2895_v48 = vcombine.high %v2893_v32, %v2893_v32  ;;  %v6409_v12 = vpop.f32.mrb[149].mxu1 }
 0x247   : > { %v3286_v39 = vsel %vm3096_vm5, %v2878_v56, -inf  ;;  %v3295_v23 = vmax.f32 %v3293_v20, %v3294_v8  ;;  %v3300_v62 = vsel %vm3096_vm5, %v2894_v3, -inf  ;;  %v3307_v47 = vsel %vm3096_vm5, %v2893_v32, -inf  ;;  %v6414_v55 = vpop.f32.mrb[150].mxu1 }
 0x248   : > { %v3268_v0 = vrot.slane %v3267_v53, 2  ;;  %v3274_v5 = vmax.f32 %v3272_v57, %v3273_v9  ;;  %v3281_v33 = vmax.f32 %v3279_v7, %v3280_v43  ;;  %v3287_v19 = vrot.slane %v3286_v39, 4  ;;  %v6416_v22 = vpop.f32.mrb[151].mxu1 }
 0x249   : > { %v3296_v4 = vrot.slane %v3295_v23, 2  ;;  %v3301_v25 = vrot.slane %v3300_v62, 4  ;;  %v3308_v36 = vrot.slane %v3307_v47, 4  ;;  %v3314_v15 = vsel %vm3096_vm5, %v2895_v48, -inf }
 0x24a   : > { %v3269_v42 = vmax.f32 %v3267_v53, %v3268_v0  ;;  %v3275_v29 = vrot.slane %v3274_v5, 2  ;;  %v3282_v2 = vrot.slane %v3281_v33, 2  ;;  %v3288_v52 = vmax.f32 %v3286_v39, %v3287_v19 }
 0x24b   : > { %v6419_v45 = vpop.f32.mrb[152].mxu0  ;;  %v3297_v27 = vmax.f32 %v3295_v23, %v3296_v4  ;;  %v3302_v13 = vmax.f32 %v3300_v62, %v3301_v25  ;;  %v3309_v14 = vmax.f32 %v3307_v47, %v3308_v36  ;;  %v3315_v60 = vrot.slane %v3314_v15, 4 }
 0x24c   : > { %v2715_v18 = vpop.f32.mrb[153].mxu0  ;;  %v3270_v10 = vrot.slane %v3269_v42, 1  ;;  %v3276_v44 = vmax.f32 %v3274_v5, %v3275_v29  ;;  %v3283_v61 = vmax.f32 %v3281_v33, %v3282_v2  ;;  %v3289_v1 = vrot.slane %v3288_v52, 2 }
 0x24d   : > { %v6421_v63 = vpop.f32.mrb[154].mxu0  ;;  %v3298_v3 = vrot.slane %v3297_v27, 1  ;;  %v3303_v20 = vrot.slane %v3302_v13, 2  ;;  %v3310_v11 = vrot.slane %v3309_v14, 2  ;;  %v3316_v56 = vmax.f32 %v3314_v15, %v3315_v60  ;;  %v6423_v57 = vpop.f32.mrb[152].mxu1 }
 0x24e   : > { %v2718_v32 = vpop.f32.mrb[155].mxu0  ;;  %v3271_v7 = vmax.f32 %v3269_v42, %v3270_v10  ;;  %v3277_v8 = vrot.slane %v3276_v44, 1  ;;  %v3284_v53 = vrot.slane %v3283_v61, 1  ;;  %v3290_v9 = vmax.f32 %v3288_v52, %v3289_v1  ;;  %v6425_v43 = vpop.f32.mrb[153].mxu1 }
 0x24f   : > { %v3299_v48 = vmax.f32 %v3297_v27, %v3298_v3  ;;  %v3304_v39 = vmax.f32 %v3302_v13, %v3303_v20  ;;  %v3311_v23 = vmax.f32 %v3309_v14, %v3310_v11  ;;  %v3317_v62 = vrot.slane %v3316_v56, 2  ;;  %v6427_v47 = vpop.f32.mrb[154].mxu1 }
 0x250   : > { %v3278_v0 = vmax.f32 %v3276_v44, %v3277_v8  ;;  %v3285_v5 = vmax.f32 %v3283_v61, %v3284_v53  ;;  %v3291_v33 = vrot.slane %v3290_v9, 1  ;;  %v4229_v19 = vpack.c.bf16 %v3271_v7, %v3271_v7  ;;  %v6429_v4 = vpop.f32.mrb[155].mxu1  ;;  %v6630_v53 = vld [vmem:[#allocation17_spill] sm:$0xff] }
 0x251   : > { %v3305_v25 = vrot.slane %v3304_v39, 1  ;;  %v3312_v36 = vrot.slane %v3311_v23, 1  ;;  %v3318_v15 = vmax.f32 %v3316_v56, %v3317_v62  ;;  %v4233_v42 = vpack.c.bf16 %v3299_v48, %v3299_v48 }
 0x252   : > { %v3292_v2 = vmax.f32 %v3290_v9, %v3291_v33  ;;  %v4230_v52 = vpack.c.bf16 %v3278_v0, %v3278_v0  ;;  %v4231_v18 = vpack.c.bf16 %v3285_v5, %v3285_v5  ;;  %v3825_v27 = vunpack.c.l.b16 %v4229_v19 }
 0x253   : > { %v6431_v29 = vpop.f32.mrb[156].mxu0  ;;  %v3306_v14 = vmax.f32 %v3304_v39, %v3305_v25  ;;  %v3313_v60 = vmax.f32 %v3311_v23, %v3312_v36  ;;  %v3319_v10 = vrot.slane %v3318_v15, 1  ;;  %v3829_v44 = vunpack.c.l.b16 %v4233_v42 }
 0x254   : > { %6628 = vst [vmem:[#allocation16_spill] sm:$0xff] %v6431_v29  ;;  %v2723_v13 = vpop.f32.mrb[157].mxu0  ;;  %v4232_v1 = vpack.c.bf16 %v3292_v2, %v3292_v2  ;;  %v3826_v32 = vunpack.c.l.b16 %v4230_v52  ;;  %v3827_v3 = vunpack.c.l.b16 %v4231_v18  ;;  %v2736_v20 = vmax.f32 %v6363_v49, %v6390_v26 }
 0x255   : > { %v6433_v61 = vpop.f32.mrb[158].mxu0  ;;  %v3320_v56 = vmax.f32 %v3318_v15, %v3319_v10  ;;  %v4234_v7 = vpack.c.bf16 %v3306_v14, %v3306_v14  ;;  %v4235_v8 = vpack.c.bf16 %v3313_v60, %v3313_v60  ;;  %v2677_v9 = vadd.f32 %v6630_v53, %v6393_v30  ;;  %v6439_v48 = vpop.f32.mrb[156].mxu1 }
 0x256   : > { %6629 = vst [vmem:[#allocation3_spill] sm:$0xff] %v6433_v61  ;;  %v2726_v11 = vpop.f32.mrb[159].mxu0  ;;  %v3828_v39 = vunpack.c.l.b16 %v4232_v1  ;;  %v3893_v23 = vsel %vm3865_vm11, %v3826_v32, %v3825_v27  ;;  %v2896_v62 = vcombine.high %v2736_v20, %v2736_v20  ;;  %v2903_v0 = vrot.slane %v2736_v20, %v6139_v17  ;;  %v6443_v5 = vpop.f32.mrb[157].mxu1 }
 0x257   : > { %v3894_v33 = vsel %vm3867_vm12, %v3827_v3, %v3893_v23  ;;  %v4236_v49 = vpack.c.bf16 %v3320_v56, %v3320_v56  ;;  %v3830_v26 = vunpack.c.l.b16 %v4234_v7  ;;  %v3831_v19 = vunpack.c.l.b16 %v4235_v8  ;;  %v6446_v25 = vpop.f32.mrb[158].mxu1 }
 0x258   : > { %v3895_v36 = vsel %vm3869_vm13, %v3828_v39, %v3894_v33  ;;  %v2910_v30 = vrot.slane %v2896_v62, %v6139_v17  ;;  %v2911_v15 = vcombine.high %v2903_v0, %v2903_v0  ;;  %v3321_v42 = vsel %vm3096_vm5, %v2903_v0, -inf  ;;  %v6451_v2 = vpop.f32.mrb[159].mxu1 }
 0x259   : > { %6631 = vst [vmem:[#allocation4_spill] sm:$0xff] %v6451_v2  ;;  %v3832_v52 = vunpack.c.l.b16 %v4236_v49  ;;  %v3896_v18 = vsel %vm3871_vm14, %v3829_v44, %v3895_v36  ;;  %v3322_v27 = vrot.slane %v3321_v42, 4  ;;  %v2737_v13 = vmax.f32 %v6384_v24, %v2677_v9 }
 0x25a   : > { %v3897_v14 = vsel %vm3873_vm15, %v3830_v26, %v3896_v18  ;;  %v2912_v60 = vcombine.high %v2910_v30, %v2910_v30  ;;  %v3328_v10 = vsel %vm3096_vm5, %v2911_v15, -inf  ;;  %v3335_v1 = vsel %vm3096_vm5, %v2910_v30, -inf }
 0x25b   : > { %v3898_v32 = vsel %vm3875_vm0, %v3831_v19, %v3897_v14  ;;  %v3323_v3 = vmax.f32 %v3321_v42, %v3322_v27  ;;  %v3329_v20 = vrot.slane %v3328_v10, 4  ;;  %v3336_v11 = vrot.slane %v3335_v1, 4 }
 0x25c   : > { %v3899_v56 = vsel %vm3877_vm1, %v3832_v52, %v3898_v32  ;;  %v3342_v44 = vsel %vm3096_vm5, %v2912_v60, -inf  ;;  %v2913_v7 = vcombine.high %v2737_v13, %v2737_v13  ;;  %v2920_v24 = vrot.slane %v2737_v13, %v6139_v17 }
 0x25d   : > { %v3931_v8 = vpack.c.b16 %v3899_v56, %v3899_v56  ;;  %v3324_v53 = vrot.slane %v3323_v3, 2  ;;  %v3330_v9 = vmax.f32 %v3328_v10, %v3329_v20  ;;  %v3337_v39 = vmax.f32 %v3335_v1, %v3336_v11 }
 0x25e   : > { %v3343_v23 = vrot.slane %v3342_v44, 4  ;;  %v2927_v62 = vrot.slane %v2913_v7, %v6139_v17  ;;  %v2928_v0 = vcombine.high %v2920_v24, %v2920_v24  ;;  %v3349_v33 = vsel %vm3096_vm5, %v2920_v24, -inf }
 0x25f   : > { %3947 = vst [vmem:[%s6203_s24 + $0xc] sm:$0xf] %v3931_v8  ;;  %v3325_v49 = vmax.f32 %v3323_v3, %v3324_v53  ;;  %v3331_v26 = vrot.slane %v3330_v9, 2  ;;  %v3338_v19 = vrot.slane %v3337_v39, 2  ;;  %v3350_v36 = vrot.slane %v3349_v33, 4 }
 0x260   : > { %v3344_v30 = vmax.f32 %v3342_v44, %v3343_v23  ;;  %v2929_v15 = vcombine.high %v2927_v62, %v2927_v62  ;;  %v3356_v42 = vsel %vm3096_vm5, %v2928_v0, -inf  ;;  %v3363_v52 = vsel %vm3096_vm5, %v2927_v62, -inf }
 0x261   : > { %v3326_v18 = vrot.slane %v3325_v49, 1  ;;  %v3332_v27 = vmax.f32 %v3330_v9, %v3331_v26  ;;  %v3339_v13 = vmax.f32 %v3337_v39, %v3338_v19  ;;  %v3351_v14 = vmax.f32 %v3349_v33, %v3350_v36 }
 0x262   : > { %v3345_v60 = vrot.slane %v3344_v30, 2  ;;  %v3357_v10 = vrot.slane %v3356_v42, 4  ;;  %v3364_v1 = vrot.slane %v3363_v52, 4  ;;  %v3370_v32 = vsel %vm3096_vm5, %v2929_v15, -inf }
 0x263   : > { %v3327_v20 = vmax.f32 %v3325_v49, %v3326_v18  ;;  %v3333_v3 = vrot.slane %v3332_v27, 1  ;;  %v3340_v11 = vrot.slane %v3339_v13, 1  ;;  %v3352_v56 = vrot.slane %v3351_v14, 2 }
 0x264   : > { %v3346_v7 = vmax.f32 %v3344_v30, %v3345_v60  ;;  %v3358_v44 = vmax.f32 %v3356_v42, %v3357_v10  ;;  %v3365_v24 = vmax.f32 %v3363_v52, %v3364_v1  ;;  %v3371_v8 = vrot.slane %v3370_v32, 4 }
 0x265   : > { %v3334_v53 = vmax.f32 %v3332_v27, %v3333_v3  ;;  %v3341_v23 = vmax.f32 %v3339_v13, %v3340_v11  ;;  %v4237_v62 = vpack.c.bf16 %v3327_v20, %v3327_v20  ;;  %v3353_v0 = vmax.f32 %v3351_v14, %v3352_v56  ;;  %v6632_v27 = vld [vmem:[#allocation18_spill] sm:$0xff]  ;;  %v6633_v3 = vld [vmem:[#allocation5_spill] sm:$0xff] }
 0x266   : > { %v3347_v9 = vrot.slane %v3346_v7, 1  ;;  %v3359_v39 = vrot.slane %v3358_v44, 2  ;;  %v3366_v33 = vrot.slane %v3365_v24, 2  ;;  %v3372_v26 = vmax.f32 %v3370_v32, %v3371_v8 }
 0x267   : > { %v4238_v19 = vpack.c.bf16 %v3334_v53, %v3334_v53  ;;  %v4239_v36 = vpack.c.bf16 %v3341_v23, %v3341_v23  ;;  %v3833_v61 = vunpack.c.l.b16 %v4237_v62  ;;  %v3354_v15 = vrot.slane %v3353_v0, 1  ;;  %v6634_v23 = vld [vmem:[#allocation19_spill] sm:$0xff] }
 0x268   : > { %v3348_v49 = vmax.f32 %v3346_v7, %v3347_v9  ;;  %v3360_v18 = vmax.f32 %v3358_v44, %v3359_v39  ;;  %v3367_v29 = vmax.f32 %v3365_v24, %v3366_v33  ;;  %v3373_v2 = vrot.slane %v3372_v26, 2 }
 0x269   : > { %v3834_v30 = vunpack.c.l.b16 %v4238_v19  ;;  %v3835_v42 = vunpack.c.l.b16 %v4239_v36  ;;  %v3355_v52 = vmax.f32 %v3353_v0, %v3354_v15  ;;  %v2682_v13 = vadd.f32 %v6632_v27, %v6399_v41  ;;  %v6635_v0 = vld [vmem:[#allocation6_spill] sm:$0xff]  ;;  %v6636_v36 = vld [vmem:[#allocation7_spill] sm:$0xff]  ;;  %v6638_v27 = vld [vmem:[#allocation9_spill] sm:$0xff] }
 0x26a   : > { %v4240_v60 = vpack.c.bf16 %v3348_v49, %v3348_v49  ;;  %v3361_v14 = vrot.slane %v3360_v18, 1  ;;  %v3368_v10 = vrot.slane %v3367_v29, 1  ;;  %v3374_v1 = vmax.f32 %v3372_v26, %v3373_v2 }
 0x26b   : > { %v3900_v32 = vsel %vm3865_vm11, %v3834_v30, %v3833_v61  ;;  %v4241_v20 = vpack.c.bf16 %v3355_v52, %v3355_v52  ;;  %v2524_v11 = vadd.f32 %v6378_v34, %v6633_v3  ;;  %v4768_v56 = vadd.f32 %v6325_v28, %v6321_v54 }
 0x26c   : > { %v3836_v7 = vunpack.c.l.b16 %v4240_v60  ;;  %v3901_v44 = vsel %vm3867_vm12, %v3835_v42, %v3900_v32  ;;  %v3362_v24 = vmax.f32 %v3360_v18, %v3361_v14  ;;  %v3369_v8 = vmax.f32 %v3367_v29, %v3368_v10  ;;  %v6637_v42 = vld [vmem:[#allocation8_spill] sm:$0xff] }
 0x26d   : > { %v3375_v53 = vrot.slane %v3374_v1, 1  ;;  %v3837_v41 = vunpack.c.l.b16 %v4241_v20  ;;  %v2685_v62 = vadd.f32 %v6634_v23, %v2524_v11  ;;  %v2529_v2 = vadd.f32 %v4768_v56, %v6635_v0 }
 0x26e   : > { %v4242_v9 = vpack.c.bf16 %v3362_v24, %v3362_v24  ;;  %v4243_v61 = vpack.c.bf16 %v3369_v8, %v3369_v8  ;;  %v3902_v39 = vsel %vm3869_vm13, %v3836_v7, %v3901_v44  ;;  %v4771_v34 = vadd.f32 %v6334_v46, %v6330_v58 }
 0x26f   : > { %v3376_v33 = vmax.f32 %v3374_v1, %v3375_v53  ;;  %v3903_v54 = vsel %vm3871_vm14, %v3837_v41, %v3902_v39  ;;  %v2690_v28 = vadd.f32 %v6315_v51, %v2529_v2  ;;  %v4774_v29 = vadd.f32 %v6365_v21, %v6358_v40 }
 0x270   : > { %v3838_v26 = vunpack.c.l.b16 %v4242_v9  ;;  %v3839_v19 = vunpack.c.l.b16 %v4243_v61  ;;  %v2532_v15 = vadd.f32 %v4771_v34, %v6636_v36  ;;  %v4777_v49 = vadd.f32 %v6380_v50, %v6371_v37 }
 0x271   : > { %v4244_v18 = vpack.c.bf16 %v3376_v33, %v3376_v33  ;;  %v2738_v30 = vmax.f32 %v2682_v13, %v2690_v28  ;;  %v2537_v52 = vadd.f32 %v4774_v29, %v6637_v42  ;;  %v4780_v58 = vadd.f32 %v6409_v12, %v6407_v38 }
 0x272   : > { %v3904_v46 = vsel %vm3873_vm15, %v3838_v26, %v3903_v54  ;;  %v2693_v51 = vadd.f32 %v6317_v35, %v2532_v15  ;;  %v2540_v40 = vadd.f32 %v4777_v49, %v6638_v27  ;;  %v6496_v21 = vadd.f32 %v6416_v22, %v6414_v55  ;;  %v6639_v35 = vld [vmem:[#allocation10_spill] sm:$0xff] }
 0x273   : > { %v3840_v60 = vunpack.c.l.b16 %v4244_v18  ;;  %v3905_v37 = vsel %vm3875_vm0, %v3839_v19, %v3904_v46  ;;  %v2930_v50 = vcombine.high %v2738_v30, %v2738_v30  ;;  %v2937_v13 = vrot.slane %v2738_v30, %v6139_v17 }
 0x274   : > { %v2739_v14 = vmax.f32 %v2685_v62, %v2693_v51  ;;  %v2698_v38 = vadd.f32 %v6339_v16, %v2537_v52  ;;  %v6502_v12 = vadd.f32 %v6348_v59, %v2540_v40  ;;  %v2545_v10 = vadd.f32 %v4780_v58, %v6639_v35 }
 0x275   : > { %v3906_v1 = vsel %vm3877_vm1, %v3840_v60, %v3905_v37  ;;  %v2944_v55 = vrot.slane %v2930_v50, %v6139_v17  ;;  %v2945_v22 = vcombine.high %v2937_v13, %v2937_v13  ;;  %v3377_v32 = vsel %vm3096_vm5, %v2937_v13, -inf }
 0x276   : > { %v3932_v20 = vpack.c.b16 %v3906_v1, %v3906_v1  ;;  %v3378_v3 = vrot.slane %v3377_v32, 4  ;;  %v2947_v11 = vcombine.high %v2739_v14, %v2739_v14  ;;  %v2954_v56 = vrot.slane %v2739_v14, %v6139_v17 }
 0x277   : > { %v2946_v7 = vcombine.high %v2944_v55, %v2944_v55  ;;  %v3384_v16 = vsel %vm3096_vm5, %v2945_v22, -inf  ;;  %v3391_v59 = vsel %vm3096_vm5, %v2944_v55, -inf  ;;  %v2706_v44 = vadd.f32 %v6386_v31, %v2545_v10 }
 0x278   : > { %3948 = vst [vmem:[%s6203_s24 + $0x10] sm:$0xf] %v3932_v20  ;;  %v3379_v24 = vmax.f32 %v3377_v32, %v3378_v3  ;;  %v3385_v8 = vrot.slane %v3384_v16, 4  ;;  %v3392_v53 = vrot.slane %v3391_v59, 4  ;;  %v2961_v41 = vrot.slane %v2947_v11, %v6139_v17 }
 0x279   : > { %v3398_v23 = vsel %vm3096_vm5, %v2946_v7, -inf  ;;  %v2962_v62 = vcombine.high %v2954_v56, %v2954_v56  ;;  %v3405_v0 = vsel %vm3096_vm5, %v2954_v56, -inf  ;;  %v2740_v2 = vmax.f32 %v2698_v38, %v2706_v44 }
 0x27a   : > { %v3380_v9 = vrot.slane %v3379_v24, 2  ;;  %v3386_v61 = vmax.f32 %v3384_v16, %v3385_v8  ;;  %v3393_v39 = vmax.f32 %v3391_v59, %v3392_v53  ;;  %v3399_v34 = vrot.slane %v3398_v23, 4 }
 0x27b   : > { %v2963_v33 = vcombine.high %v2961_v41, %v2961_v41  ;;  %v3406_v54 = vrot.slane %v3405_v0, 4  ;;  %v3412_v31 = vsel %vm3096_vm5, %v2962_v62, -inf  ;;  %v3419_v28 = vsel %vm3096_vm5, %v2961_v41, -inf }
 0x27c   : > { %v3381_v29 = vmax.f32 %v3379_v24, %v3380_v9  ;;  %v3387_v26 = vrot.slane %v3386_v61, 2  ;;  %v3394_v19 = vrot.slane %v3393_v39, 2  ;;  %v3400_v36 = vmax.f32 %v3398_v23, %v3399_v34 }
 0x27d   : > { %v3407_v15 = vmax.f32 %v3405_v0, %v3406_v54  ;;  %v3413_v49 = vrot.slane %v3412_v31, 4  ;;  %v3420_v18 = vrot.slane %v3419_v28, 4  ;;  %v3426_v30 = vsel %vm3096_vm5, %v2963_v33, -inf }
 0x27e   : > { %v3382_v42 = vrot.slane %v3381_v29, 1  ;;  %v3388_v52 = vmax.f32 %v3386_v61, %v3387_v26  ;;  %v3395_v58 = vmax.f32 %v3393_v39, %v3394_v19  ;;  %v3401_v46 = vrot.slane %v3400_v36, 2 }
 0x27f   : > { %v3408_v51 = vrot.slane %v3407_v15, 2  ;;  %v3414_v27 = vmax.f32 %v3412_v31, %v3413_v49  ;;  %v3421_v40 = vmax.f32 %v3419_v28, %v3420_v18  ;;  %v3427_v60 = vrot.slane %v3426_v30, 4 }
 0x280   : > { %v3383_v37 = vmax.f32 %v3381_v29, %v3382_v42  ;;  %v3389_v50 = vrot.slane %v3388_v52, 1  ;;  %v3396_v13 = vrot.slane %v3395_v58, 1  ;;  %v3402_v14 = vmax.f32 %v3400_v36, %v3401_v46 }
 0x281   : > { %v3409_v38 = vmax.f32 %v3407_v15, %v3408_v51  ;;  %v3415_v35 = vrot.slane %v3414_v27, 2  ;;  %v3422_v10 = vrot.slane %v3421_v40, 2  ;;  %v3428_v1 = vmax.f32 %v3426_v30, %v3427_v60 }
 0x282   : > { %v3390_v55 = vmax.f32 %v3388_v52, %v3389_v50  ;;  %v3397_v22 = vmax.f32 %v3395_v58, %v3396_v13  ;;  %v3403_v32 = vrot.slane %v3402_v14, 1  ;;  %v4245_v20 = vpack.c.bf16 %v3383_v37, %v3383_v37 }
 0x283   : > { %v3410_v3 = vrot.slane %v3409_v38, 1  ;;  %v3416_v11 = vmax.f32 %v3414_v27, %v3415_v35  ;;  %v3423_v56 = vmax.f32 %v3421_v40, %v3422_v10  ;;  %v3429_v7 = vrot.slane %v3428_v1, 2 }
 0x284   : > { %v3404_v16 = vmax.f32 %v3402_v14, %v3403_v32  ;;  %v4246_v59 = vpack.c.bf16 %v3390_v55, %v3390_v55  ;;  %v4247_v44 = vpack.c.bf16 %v3397_v22, %v3397_v22  ;;  %v3841_v24 = vunpack.c.l.b16 %v4245_v20  ;;  %v6640_v55 = vld [vmem:[#allocation11_spill] sm:$0xff] }
 0x285   : > { %v3411_v8 = vmax.f32 %v3409_v38, %v3410_v3  ;;  %v3417_v53 = vrot.slane %v3416_v11, 1  ;;  %v3424_v41 = vrot.slane %v3423_v56, 1  ;;  %v3430_v23 = vmax.f32 %v3428_v1, %v3429_v7 }
 0x286   : > { %v4248_v62 = vpack.c.bf16 %v3404_v16, %v3404_v16  ;;  %v3842_v0 = vunpack.c.l.b16 %v4246_v59  ;;  %v3843_v9 = vunpack.c.l.b16 %v4247_v44  ;;  %v2964_v61 = vcombine.high %v2740_v2, %v2740_v2 }
 0x287   : > { %v3418_v39 = vmax.f32 %v3416_v11, %v3417_v53  ;;  %v3425_v34 = vmax.f32 %v3423_v56, %v3424_v41  ;;  %v3431_v33 = vrot.slane %v3430_v23, 1  ;;  %v4249_v54 = vpack.c.bf16 %v3411_v8, %v3411_v8 }
 0x288   : > { %v3844_v31 = vunpack.c.l.b16 %v4248_v62  ;;  %v3907_v28 = vsel %vm3865_vm11, %v3842_v0, %v3841_v24  ;;  %v2971_v29 = vrot.slane %v2740_v2, %v6139_v17  ;;  %v2978_v26 = vrot.slane %v2964_v61, %v6139_v17 }
 0x289   : > { %v3908_v19 = vsel %vm3867_vm12, %v3843_v9, %v3907_v28  ;;  %v3432_v36 = vmax.f32 %v3430_v23, %v3431_v33  ;;  %v4250_v15 = vpack.c.bf16 %v3418_v39, %v3418_v39  ;;  %v4251_v49 = vpack.c.bf16 %v3425_v34, %v3425_v34  ;;  %v6641_v23 = vld [vmem:[#allocation12_spill] sm:$0xff]  ;;  %v6642_v39 = vld [vmem:[#allocation13_spill] sm:$0xff] }
 0x28a   : > { %v3845_v18 = vunpack.c.l.b16 %v4249_v54  ;;  %v3909_v30 = vsel %vm3869_vm13, %v3844_v31, %v3908_v19  ;;  %v2979_v42 = vcombine.high %v2971_v29, %v2971_v29  ;;  %v2980_v52 = vcombine.high %v2978_v26, %v2978_v26 }
 0x28b   : > { %v4252_v58 = vpack.c.bf16 %v3432_v36, %v3432_v36  ;;  %v3846_v46 = vunpack.c.l.b16 %v4250_v15  ;;  %v3847_v51 = vunpack.c.l.b16 %v4251_v49  ;;  %v3433_v27 = vsel %vm3096_vm5, %v2971_v29, -inf }
 0x28c   : > { %v3910_v40 = vsel %vm3871_vm14, %v3845_v18, %v3909_v30  ;;  %v3434_v2 = vrot.slane %v3433_v27, 4  ;;  %v3440_v60 = vsel %vm3096_vm5, %v2979_v42, -inf  ;;  %v3447_v37 = vsel %vm3096_vm5, %v2978_v26, -inf }
 0x28d   : > { %v3848_v50 = vunpack.c.l.b16 %v4252_v58  ;;  %v3911_v13 = vsel %vm3873_vm15, %v3846_v46, %v3910_v40  ;;  %v3441_v14 = vrot.slane %v3440_v60, 4  ;;  %v3448_v38 = vrot.slane %v3447_v37, 4 }
 0x28e   : > { %v3912_v35 = vsel %vm3875_vm0, %v3847_v51, %v3911_v13  ;;  %v3435_v10 = vmax.f32 %v3433_v27, %v3434_v2  ;;  %v3454_v1 = vsel %vm3096_vm5, %v2980_v52, -inf  ;;  %v2548_v22 = vadd.f32 %v6496_v21, %v6640_v55  ;;  %v6644_v55 = vld [vmem:[#allocation4_spill] sm:$0xff] }
 0x28f   : > { %v3913_v32 = vsel %vm3877_vm1, %v3848_v50, %v3912_v35  ;;  %v3442_v20 = vmax.f32 %v3440_v60, %v3441_v14  ;;  %v3449_v3 = vmax.f32 %v3447_v37, %v3448_v38  ;;  %v3455_v11 = vrot.slane %v3454_v1, 4  ;;  %v6643_v38 = vld [vmem:[#allocation14_spill] sm:$0xff] }
 0x290   : > { %v3933_v56 = vpack.c.b16 %v3913_v32, %v3913_v32  ;;  %v3436_v7 = vrot.slane %v3435_v10, 2  ;;  %v2709_v16 = vadd.f32 %v6401_v6, %v2548_v22  ;;  %v4786_v59 = vadd.f32 %v6425_v43, %v6423_v57 }
 0x291   : > { %v3443_v44 = vrot.slane %v3442_v20, 2  ;;  %v3450_v24 = vrot.slane %v3449_v3, 2  ;;  %v3456_v8 = vmax.f32 %v3454_v1, %v3455_v11  ;;  %v4789_v53 = vadd.f32 %v6429_v4, %v6427_v47 }
 0x292   : > { %3949 = vst [vmem:[%s6203_s24 + $0x14] sm:$0xf] %v3933_v56  ;;  %v3437_v21 = vmax.f32 %v3435_v10, %v3436_v7  ;;  %v2741_v41 = vmax.f32 %v6502_v12, %v2709_v16  ;;  %v2553_v62 = vadd.f32 %v4786_v59, %v6641_v23  ;;  %v4792_v0 = vadd.f32 %v6443_v5, %v6439_v48  ;;  %v6645_v7 = vld [vmem:[#allocation16_spill] sm:$0xff]  ;;  %v6646_v59 = vld [vmem:[#allocation15_spill] sm:$0xff] }
 0x293   : > { %v3444_v9 = vmax.f32 %v3442_v20, %v3443_v44  ;;  %v3451_v6 = vmax.f32 %v3449_v3, %v3450_v24  ;;  %v3457_v61 = vrot.slane %v3456_v8, 2  ;;  %v2556_v57 = vadd.f32 %v4789_v53, %v6642_v39 }
 0x294   : > { %v3438_v43 = vrot.slane %v3437_v21, 1  ;;  %v2981_v34 = vcombine.high %v2741_v41, %v2741_v41  ;;  %v2988_v33 = vrot.slane %v2741_v41, %v6139_v17  ;;  %v2714_v47 = vadd.f32 %v6419_v45, %v2553_v62 }
 0x295   : > { %v3445_v4 = vrot.slane %v3444_v9, 1  ;;  %v3452_v54 = vrot.slane %v3451_v6, 1  ;;  %v3458_v31 = vmax.f32 %v3456_v8, %v3457_v61  ;;  %v2717_v12 = vadd.f32 %v6421_v63, %v2556_v57 }
 0x296   : > { %v3439_v28 = vmax.f32 %v3437_v21, %v3438_v43  ;;  %v2995_v29 = vrot.slane %v2981_v34, %v6139_v17  ;;  %v2996_v48 = vcombine.high %v2988_v33, %v2988_v33  ;;  %v3461_v5 = vsel %vm3096_vm5, %v2988_v33, -inf }
 0x297   : > { %v3446_v26 = vmax.f32 %v3444_v9, %v3445_v4  ;;  %v3453_v19 = vmax.f32 %v3451_v6, %v3452_v54  ;;  %v3459_v36 = vrot.slane %v3458_v31, 1  ;;  %v3462_v15 = vrot.slane %v3461_v5, 4 }
 0x298   : > { %v4253_v49 = vpack.c.bf16 %v3439_v28, %v3439_v28  ;;  %v2997_v18 = vcombine.high %v2995_v29, %v2995_v29  ;;  %v3468_v30 = vsel %vm3096_vm5, %v2996_v48, -inf  ;;  %v3475_v45 = vsel %vm3096_vm5, %v2995_v29, -inf }
 0x299   : > { %v3460_v42 = vmax.f32 %v3458_v31, %v3459_v36  ;;  %v4254_v52 = vpack.c.bf16 %v3446_v26, %v3446_v26  ;;  %v4255_v58 = vpack.c.bf16 %v3453_v19, %v3453_v19  ;;  %v3463_v63 = vmax.f32 %v3461_v5, %v3462_v15 }
 0x29a   : > { %v3469_v46 = vrot.slane %v3468_v30, 4  ;;  %v3476_v51 = vrot.slane %v3475_v45, 4  ;;  %v3482_v27 = vsel %vm3096_vm5, %v2997_v18, -inf  ;;  %v3849_v2 = vunpack.c.l.b16 %v4253_v49 }
 0x29b   : > { %v4256_v40 = vpack.c.bf16 %v3460_v42, %v3460_v42  ;;  %v3850_v60 = vunpack.c.l.b16 %v4254_v52  ;;  %v3464_v37 = vrot.slane %v3463_v63, 2  ;;  %v3483_v14 = vrot.slane %v3482_v27, 4 }
 0x29c   : > { %v3470_v50 = vmax.f32 %v3468_v30, %v3469_v46  ;;  %v3477_v13 = vmax.f32 %v3475_v45, %v3476_v51  ;;  %v2561_v35 = vadd.f32 %v4792_v0, %v6643_v38  ;;  %v3851_v10 = vunpack.c.l.b16 %v4255_v58  ;;  %v6647_v0 = vld [vmem:[#allocation3_spill] sm:$0xff] }
 0x29d   : > { %v3465_v1 = vmax.f32 %v3463_v63, %v3464_v37  ;;  %v4795_v22 = vadd.f32 %v6644_v55, %v6446_v25  ;;  %v3914_v32 = vsel %vm3865_vm11, %v3850_v60, %v3849_v2  ;;  %v3484_v11 = vmax.f32 %v3482_v27, %v3483_v14 }
 0x29e   : > { %v3471_v20 = vrot.slane %v3470_v50, 2  ;;  %v3478_v3 = vrot.slane %v3477_v13, 2  ;;  %v2722_v16 = vadd.f32 %v6645_v7, %v2561_v35  ;;  %v3852_v24 = vunpack.c.l.b16 %v4256_v40 }
 0x29f   : > { %v3466_v56 = vrot.slane %v3465_v1, 1  ;;  %v2564_v44 = vadd.f32 %v4795_v22, %v6646_v59  ;;  %v3485_v21 = vrot.slane %v3484_v11, 2  ;;  %v3915_v41 = vsel %vm3867_vm12, %v3851_v10, %v3914_v32 }
 0x2a0   : > { %v3472_v8 = vmax.f32 %v3470_v50, %v3471_v20  ;;  %v3479_v53 = vmax.f32 %v3477_v13, %v3478_v3  ;;  %v2742_v62 = vmax.f32 %v2714_v47, %v2722_v16  ;;  %v3916_v31 = vsel %vm3869_vm13, %v3852_v24, %v3915_v41 }
 0x2a1   : > { %v3467_v23 = vmax.f32 %v3465_v1, %v3466_v56  ;;  %v2725_v25 = vadd.f32 %v6647_v0, %v2564_v44  ;;  %v3486_v61 = vmax.f32 %v3484_v11, %v3485_v21 }
 0x2a2   : > { %v3473_v9 = vrot.slane %v3472_v8, 1  ;;  %v3480_v6 = vrot.slane %v3479_v53, 1  ;;  %v2998_v57 = vcombine.high %v2742_v62, %v2742_v62  ;;  %v3005_v43 = vrot.slane %v2742_v62, %v6139_v17 }
 0x2a3   : > { %v4257_v39 = vpack.c.bf16 %v3467_v23, %v3467_v23  ;;  %v2743_v34 = vmax.f32 %v2717_v12, %v2725_v25  ;;  %v3487_v54 = vrot.slane %v3486_v61, 1 }
 0x2a4   : > { %v3474_v33 = vmax.f32 %v3472_v8, %v3473_v9  ;;  %v3481_v4 = vmax.f32 %v3479_v53, %v3480_v6  ;;  %v3012_v29 = vrot.slane %v2998_v57, %v6139_v17  ;;  %v3013_v48 = vcombine.high %v3005_v43, %v3005_v43 }
 0x2a5   : > { %v3853_v28 = vunpack.c.l.b16 %v4257_v39  ;;  %v3489_v47 = vsel %vm3096_vm5, %v3005_v43, -inf  ;;  %v3488_v5 = vmax.f32 %v3486_v61, %v3487_v54  ;;  %v3015_v51 = vcombine.high %v2743_v34, %v2743_v34 }
 0x2a6   : > { %v4258_v26 = vpack.c.bf16 %v3474_v33, %v3474_v33  ;;  %v4259_v19 = vpack.c.bf16 %v3481_v4, %v3481_v4  ;;  %v3490_v36 = vrot.slane %v3489_v47, 4  ;;  %v3014_v49 = vcombine.high %v3012_v29, %v3012_v29 }
 0x2a7   : > { %v3917_v15 = vsel %vm3871_vm14, %v3853_v28, %v3916_v31  ;;  %v3496_v12 = vsel %vm3096_vm5, %v3013_v48, -inf  ;;  %v3503_v18 = vsel %vm3096_vm5, %v3012_v29, -inf  ;;  %v4260_v30 = vpack.c.bf16 %v3488_v5, %v3488_v5 }
 0x2a8   : > { %v3854_v45 = vunpack.c.l.b16 %v4258_v26  ;;  %v3855_v42 = vunpack.c.l.b16 %v4259_v19  ;;  %v3491_v52 = vmax.f32 %v3489_v47, %v3490_v36  ;;  %v3497_v58 = vrot.slane %v3496_v12, 4 }
 0x2a9   : > { %v3504_v63 = vrot.slane %v3503_v18, 4  ;;  %v3510_v46 = vsel %vm3096_vm5, %v3014_v49, -inf  ;;  %v3856_v27 = vunpack.c.l.b16 %v4260_v30  ;;  %v3022_v14 = vrot.slane %v2743_v34, %v6139_v17 }
 0x2aa   : > { %v3918_v40 = vsel %vm3873_vm15, %v3854_v45, %v3917_v15  ;;  %v3492_v2 = vrot.slane %v3491_v52, 2  ;;  %v3511_v60 = vrot.slane %v3510_v46, 4  ;;  %v3498_v50 = vmax.f32 %v3496_v12, %v3497_v58 }
 0x2ab   : > { %v3919_v37 = vsel %vm3875_vm0, %v3855_v42, %v3918_v40  ;;  %v3505_v13 = vmax.f32 %v3503_v18, %v3504_v63  ;;  %v3029_v1 = vrot.slane %v3015_v51, %v6139_v17  ;;  %v3030_v20 = vcombine.high %v3022_v14, %v3022_v14 }
 0x2ac   : > { %v3920_v38 = vsel %vm3877_vm1, %v3856_v27, %v3919_v37  ;;  %v3493_v35 = vmax.f32 %v3491_v52, %v3492_v2  ;;  %v3512_v10 = vmax.f32 %v3510_v46, %v3511_v60  ;;  %v3499_v22 = vrot.slane %v3498_v50, 2 }
 0x2ad   : > { %v3934_v55 = vpack.c.b16 %v3920_v38, %v3920_v38  ;;  %v3506_v32 = vrot.slane %v3505_v13, 2  ;;  %v3031_v56 = vcombine.high %v3029_v1, %v3029_v1  ;;  %v3517_v7 = vsel %vm3096_vm5, %v3022_v14, -inf }
 0x2ae   : > { %v3494_v3 = vrot.slane %v3493_v35, 1  ;;  %v3513_v11 = vrot.slane %v3512_v10, 2  ;;  %v3500_v16 = vmax.f32 %v3498_v50, %v3499_v22  ;;  %v3518_v44 = vrot.slane %v3517_v7, 4 }
 0x2af   : > { %3950 = vst [vmem:[%s6203_s24 + $0x18] sm:$0xf] %v3934_v55  ;;  %v3507_v59 = vmax.f32 %v3505_v13, %v3506_v32  ;;  %v3524_v24 = vsel %vm3096_vm5, %v3030_v20, -inf  ;;  %v3531_v17 = vsel %vm3096_vm5, %v3029_v1, -inf  ;;  %v3538_v61 = vsel %vm3096_vm5, %v3031_v56, -inf }
 0x2b0   : > { %v3495_v8 = vmax.f32 %v3493_v35, %v3494_v3  ;;  %v3514_v53 = vmax.f32 %v3512_v10, %v3513_v11  ;;  %v3525_v21 = vrot.slane %v3524_v24, 4  ;;  %v3501_v41 = vrot.slane %v3500_v16, 1 }
 0x2b1   : > { %v3508_v23 = vrot.slane %v3507_v59, 1  ;;  %v3519_v62 = vmax.f32 %v3517_v7, %v3518_v44  ;;  %v3532_v0 = vrot.slane %v3531_v17, 4  ;;  %v3539_v54 = vrot.slane %v3538_v61, 4 }
 0x2b2   : > { %v3515_v25 = vrot.slane %v3514_v53, 1  ;;  %v4261_v9 = vpack.c.bf16 %v3495_v8, %v3495_v8  ;;  %v3526_v6 = vmax.f32 %v3524_v24, %v3525_v21  ;;  %v3502_v39 = vmax.f32 %v3500_v16, %v3501_v41 }
 0x2b3   : > { %v3509_v57 = vmax.f32 %v3507_v59, %v3508_v23  ;;  %v3520_v43 = vrot.slane %v3519_v62, 2  ;;  %v3533_v34 = vmax.f32 %v3531_v17, %v3532_v0  ;;  %v3540_v19 = vmax.f32 %v3538_v61, %v3539_v54 }
 0x2b4   : > { %v3516_v33 = vmax.f32 %v3514_v53, %v3515_v25  ;;  %v3527_v4 = vrot.slane %v3526_v6, 2  ;;  %v4262_v31 = vpack.c.bf16 %v3502_v39, %v3502_v39  ;;  %v3857_v5 = vunpack.c.l.b16 %v4261_v9 }
 0x2b5   : > { %v4263_v28 = vpack.c.bf16 %v3509_v57, %v3509_v57  ;;  %v3521_v29 = vmax.f32 %v3519_v62, %v3520_v43  ;;  %v3534_v48 = vrot.slane %v3533_v34, 2  ;;  %v3541_v45 = vrot.slane %v3540_v19, 2 }
 0x2b6   : > { %v4264_v47 = vpack.c.bf16 %v3516_v33, %v3516_v33  ;;  %v3528_v26 = vmax.f32 %v3526_v6, %v3527_v4  ;;  %v3858_v36 = vunpack.c.l.b16 %v4262_v31 }
 0x2b7   : > { %v3859_v15 = vunpack.c.l.b16 %v4263_v28  ;;  %v3522_v49 = vrot.slane %v3521_v29, 1  ;;  %v3535_v12 = vmax.f32 %v3533_v34, %v3534_v48  ;;  %v3542_v51 = vmax.f32 %v3540_v19, %v3541_v45 }
 0x2b8   : > { %v3860_v18 = vunpack.c.l.b16 %v4264_v47  ;;  %v3529_v30 = vrot.slane %v3528_v26, 1  ;;  %v3921_v42 = vsel %vm3865_vm11, %v3858_v36, %v3857_v5 }
 0x2b9   : > { %v3523_v52 = vmax.f32 %v3521_v29, %v3522_v49  ;;  %v3536_v58 = vrot.slane %v3535_v12, 1  ;;  %v3922_v63 = vsel %vm3867_vm12, %v3859_v15, %v3921_v42  ;;  %v3543_v2 = vrot.slane %v3542_v51, 1 }
 0x2ba   : > { %v3530_v46 = vmax.f32 %v3528_v26, %v3529_v30  ;;  %v3923_v37 = vsel %vm3869_vm13, %v3860_v18, %v3922_v63 }
 0x2bb   : > { %v3537_v27 = vmax.f32 %v3535_v12, %v3536_v58  ;;  %v4265_v40 = vpack.c.bf16 %v3523_v52, %v3523_v52  ;;  %v3544_v14 = vmax.f32 %v3542_v51, %v3543_v2 }
 0x2bc   : > { %v4266_v60 = vpack.c.bf16 %v3530_v46, %v3530_v46 }
 0x2bd   : > { %v4267_v50 = vpack.c.bf16 %v3537_v27, %v3537_v27  ;;  %v3861_v13 = vunpack.c.l.b16 %v4265_v40  ;;  %v4268_v1 = vpack.c.bf16 %v3544_v14, %v3544_v14 }
 0x2be   : > { %v3862_v38 = vunpack.c.l.b16 %v4266_v60 }
 0x2bf   : > { %v3863_v35 = vunpack.c.l.b16 %v4267_v50  ;;  %v3924_v10 = vsel %vm3871_vm14, %v3861_v13, %v3923_v37  ;;  %v3864_v32 = vunpack.c.l.b16 %v4268_v1 }
 0x2c0   : > { %v3925_v55 = vsel %vm3873_vm15, %v3862_v38, %v3924_v10 }
 0x2c1   : > { %v3926_v22 = vsel %vm3875_vm0, %v3863_v35, %v3925_v55 }
 0x2c2   : > { %v3927_v20 = vsel %vm3877_vm1, %v3864_v32, %v3926_v22 }
 0x2c3   : > { %v3935_v3 = vpack.c.b16 %v3927_v20, %v3927_v20 }
 0x2c5   : > { %3951 = vst [vmem:[%s6203_s24 + $0x1c] sm:$0xf] %v3935_v3 }
 0x2c6 PF: > { %s18_s27 = sadd.s32 1, %s4921_s27  }
 0x2c7   : > { %p15_p4 = scmp.ge.s32.totalorder %s18_s27, 4  }
 0x2c9   :  { %17 = sbr.rel (!%p15_p4) target bundleno = 1 (0x1), region = 85 }

</bundles_post_ra>
